<compile_context>
chip_gen: v6e
topology: v6e:2x2x1
jax: 0.10.0
libtpu: 0.0.40
codegen_flags: <defaults>
</compile_context>

<pallas_src>
import jax
import jax.numpy as jnp
import numpy as np
from jax import lax
from jax.experimental import pallas as pl
from jax.experimental.pallas import tpu as pltpu  # noqa: F401  (TPU backend)

BN_EPS = 1e-5


# ------------------------------ Pallas kernel --------------------------------

def _conv_net_kernel(x_ref, b1_ref, b2_ref, b3_ref, b4_ref,
                     s1_ref, s2_ref, s3_ref, s4_ref, sf_ref,
                     rm_ref, g_ref, be_ref, wl_ref, bl_ref, out_ref):
    """Whole conv_net forward; everything resident in VMEM (grid=(1,))."""
    f32 = jnp.float32

    def conv(act, sel_ref, b_ref):
        # act: (M_in, 128). sel_ref: (4, M_out, M_in). b_ref: (4, 128, 128).
        acc = None
        for j in range(4):                      # vertical tap index (ki)
            rows = jnp.dot(sel_ref[j], act, preferred_element_type=f32)
            part = jnp.dot(rows, b_ref[j], preferred_element_type=f32)
            acc = part if acc is None else acc + part
        return acc                              # (M_out, 128)

    def bn_relu(y, l):
        # Single-pass batch statistics over all rows (n, oh) and the
        # same-channel lanes; rm_ref[l] already contains the 1/count factor.
        s = jnp.sum(y, axis=0, keepdims=True)          # (1, 128)
        ss = jnp.sum(y * y, axis=0, keepdims=True)     # (1, 128)
        rm = rm_ref[l]                                  # (128, 128)
        mean = jnp.dot(s, rm, preferred_element_type=f32)
        var = jnp.dot(ss, rm, preferred_element_type=f32) - mean * mean
        scale = lax.rsqrt(var + BN_EPS) * g_ref[l]      # (1, 128)
        shift = be_ref[l] - mean * scale                # (1, 128)
        return jnp.maximum(y * scale + shift, 0.0)

    x = x_ref[...]                                      # (N*32, 128)
    a = bn_relu(conv(x, s1_ref, b1_ref), 0)             # (N*16, 128)
    a = bn_relu(conv(a, s2_ref, b2_ref), 1)             # (N*8,  128)
    a = bn_relu(conv(a, s3_ref, b3_ref), 2)             # (N*4,  128)
    a = conv(a, s4_ref, b4_ref)                         # (N*2,  128)  conv4 (bias folded below)

    # flatten(start_dim=1) over NCHW + Linear: the permutation and conv4 bias
    # are folded into wl / bl on the host, so this is just two (128,10) matmuls.
    z = None
    for j in range(2):                                  # j = conv4 output row (oh)
        rows = jnp.dot(sf_ref[j], a, preferred_element_type=f32)      # (N, 128)
        part = jnp.dot(rows, wl_ref[j], preferred_element_type=f32)   # (N, 10)
        z = part if z is None else z + part
    z = z + bl_ref[...]

    # Softmax over the class dimension.
    z = z - jnp.max(z, axis=-1, keepdims=True)
    e = jnp.exp(z)
    out_ref[...] = e * pl.reciprocal(jnp.sum(e, axis=-1, keepdims=True),
                                     approx=True)


# ------------------------------ wrapper ---------------------------------------

def _full_spec(shape):
    nd = len(shape)
    return pl.BlockSpec(shape, lambda i, _nd=nd: (0,) * _nd)


def conv_net_forward(x_nchw, consts):
    N, C, H, W = x_nchw.shape
    # NCHW -> rows (n*H + h) x lanes (w*C + c);  W*C == 128 for this net.
    x_rows = jnp.transpose(x_nchw, (0, 2, 3, 1)).reshape(N * H, W * C)
    args = (x_rows, consts["b1"], consts["b2"], consts["b3"], consts["b4"],
            consts["s1"], consts["s2"], consts["s3"], consts["s4"],
            consts["sf"], consts["rm"], consts["gamma"], consts["beta"],
            consts["wl"], consts["bl"])
    return pl.pallas_call(
        _conv_net_kernel,
        out_shape=jax.ShapeDtypeStruct((N, 10), jnp.float32),
        grid=(1,),
        in_specs=[_full_spec(a.shape) for a in args],
        out_specs=_full_spec((N, 10)),
    )(*args)


# --------------------- host-side constant preparation -------------------------

def _build_banded_weight(w, w_in, c_in, w_out, c_out):
    """torch (Cout,Cin,4,4) conv weight -> (4, w_in*c_in, w_out*c_out) banded."""
    w = np.asarray(w, np.float32)
    B = np.zeros((4, w_in * c_in, w_out * c_out), np.float32)
    for r in range(4):                    # vertical tap ki
        for ow in range(w_out):
            for kj in range(4):           # horizontal tap
                iw = 2 * ow - 1 + kj      # input column (padding=1, stride=2)
                if 0 <= iw < w_in:
                    B[r, iw * c_in:(iw + 1) * c_in,
                      ow * c_out:(ow + 1) * c_out] = w[:, :, r, kj].T
    return B


def _build_row_select(n, h_out, h_in):
    """(4, n*h_out, n*h_in): sel[j] gathers source row 2*g + j - 1 (zero if OOB)."""
    S = np.zeros((4, n * h_out, n * h_in), np.float32)
    for j in range(4):
        for b in range(n):
            for g in range(h_out):
                h = 2 * g + j - 1
                if 0 <= h < h_in:
                    S[j, b * h_out + g, b * h_in + h] = 1.0
    return S


def _build_flatten_select(n, h_in=2):
    S = np.zeros((2, n, n * h_in), np.float32)
    for j in range(2):
        for b in range(n):
            S[j, b, b * h_in + j] = 1.0
    return S


def build_constants(params, batch):
    # (W_in, C_in, W_out, C_out) per conv layer for a 32x32, input_ch=4,
    # output_ch=4 network (the Linear(256, 10) in the spec fixes these sizes).
    dims = [(32, 4, 16, 8), (16, 8, 8, 16), (8, 16, 4, 32), (4, 32, 2, 64)]
    conv_ws = [params["blocks"][i][0] for i in range(3)] + [params["conv4"][0]]
    B = [_build_banded_weight(conv_ws[i], *dims[i]) for i in range(4)]
    sels = [_build_row_select(batch, dims[i][2], dims[i][0]) for i in range(4)]
    sf = _build_flatten_select(batch, 2)

    rm = np.zeros((3, 128, 128), np.float32)
    gam = np.zeros((3, 1, 128), np.float32)
    bet = np.zeros((3, 1, 128), np.float32)
    for l in range(3):
        _, _, w_out, c_out = dims[l]
        count = batch * w_out * w_out                    # N * Ho * Wo
        ch = np.arange(128) % c_out                      # channel of each lane
        rm[l] = (ch[:, None] == ch[None, :]).astype(np.float32) / count
        gam[l, 0] = np.asarray(params["blocks"][l][2])[ch]
        bet[l, 0] = np.asarray(params["blocks"][l][3])[ch]

    wl = np.asarray(params["linear"][0], np.float32)     # (10, 256)
    bl = np.asarray(params["linear"][1], np.float32)     # (10,)
    b4 = np.asarray(params["conv4"][1], np.float32)      # (64,)
    lanes = np.arange(128)
    ow, co = lanes // 64, lanes % 64
    WL = np.zeros((2, 128, 10), np.float32)
    for j in range(2):                                   # j == oh of conv4 output
        WL[j] = wl[:, co * 4 + j * 2 + ow].T             # NCHW flatten folded in
    bl_eff = bl + wl @ np.repeat(b4, 4)                  # conv4 bias folded in

    consts = dict(b1=B[0], b2=B[1], b3=B[2], b4=B[3],
                  s1=sels[0], s2=sels[1], s3=sels[2], s4=sels[3], sf=sf,
                  rm=rm, gamma=gam, beta=bet,
                  wl=WL, bl=bl_eff.reshape(1, 10))
    return {k: jnp.asarray(v, jnp.float32) for k, v in consts.items()}


# --------------------------- reference (pure JAX) ------------------------------

def reference_forward(x, params):
    def conv(x, w, b):
        y = lax.conv_general_dilated(
            x, w, window_strides=(2, 2), padding=((1, 1), (1, 1)),
            dimension_numbers=("NCHW", "OIHW", "NCHW"),
            precision=lax.Precision.HIGHEST)
        return y + b.reshape(1, -1, 1, 1)

    for (w, b, g, be) in params["blocks"]:
        x = conv(x, w, b)
        mean = jnp.mean(x, axis=(0, 2, 3), keepdims=True)
        var = jnp.mean(jnp.square(x - mean), axis=(0, 2, 3), keepdims=True)
        x = (x - mean) * lax.rsqrt(var + BN_EPS)
        x = x * g.reshape(1, -1, 1, 1) + be.reshape(1, -1, 1, 1)
        x = jnp.maximum(x, 0.0)
    w, b = params["conv4"]
    x = conv(x, w, b)
    flat = x.reshape(x.shape[0], -1)
    wl, bl = params["linear"]
    z = jnp.dot(flat, wl.T, precision=lax.Precision.HIGHEST) + bl
    z = z - jnp.max(z, axis=-1, keepdims=True)
    e = jnp.exp(z)
    return e / jnp.sum(e, axis=-1, keepdims=True)


# ------------------------------- params ----------------------------------------

def init_params(key, input_ch, output_ch):
    def conv_init(k, cin, cout, ksz=4):
        k1, k2 = jax.random.split(k)
        bound = 1.0 / np.sqrt(cin * ksz * ksz)
        w = jax.random.uniform(k1, (cout, cin, ksz, ksz), jnp.float32, -bound, bound)
        b = jax.random.uniform(k2, (cout,), jnp.float32, -bound, bound)
        return w, b

    keys = jax.random.split(key, 5)
    chans = [input_ch, output_ch * 2, output_ch * 4, output_ch * 8, output_ch * 16]
    blocks = []
    for i in range(3):
        kw, kg, kb = jax.random.split(keys[i], 3)
        w, b = conv_init(kw, chans[i], chans[i + 1])
        # BN affine params (randomized slightly to exercise the channel mapping)
        gamma = 1.0 + 0.1 * jax.random.normal(kg, (chans[i + 1],), jnp.float32)
        beta = 0.1 * jax.random.normal(kb, (chans[i + 1],), jnp.float32)
        blocks.append((w, b, gamma, beta))
    conv4 = conv_init(keys[3], chans[3], chans[4])
    k1, k2 = jax.random.split(keys[4])
    bound = 1.0 / np.sqrt(256.0)
    wl = jax.random.uniform(k1, (10, 256), jnp.float32, -bound, bound)
    bl = jax.random.uniform(k2, (10,), jnp.float32, -bound, bound)
    return {"blocks": blocks, "conv4": conv4, "linear": (wl, bl)}


# -------------------------------- main ------------------------------------------

if __name__ == "__main__":
    # conv_net(input_ch=4, output_ch=4); 32x32 input so flatten -> 64ch * 2*2 = 256
    input_ch, output_ch, batch = 4, 4, 2
    key = jax.random.PRNGKey(0)
    k_param, k_x = jax.random.split(key)
    params = init_params(k_param, input_ch, output_ch)
    x = jax.random.normal(k_x, (batch, input_ch, 32, 32), jnp.float32)

    consts = build_constants(params, batch)
    fwd = jax.jit(conv_net_forward)
    out = jax.block_until_ready(fwd(x, consts))

    ref = jax.block_until_ready(reference_forward(x, params))
    np.testing.assert_allclose(np.asarray(out), np.asarray(ref),
                               atol=1e-3, rtol=1e-2)
    assert out.shape == (batch, 10)
    print("KERNEL_OK")
</pallas_src>

<mosaic_0001>
module attributes {stable_mosaic.version = 11 : i64} {
  func.func @_conv_net_kernel(%arg0: i32, %arg1: memref<64x128xf32, #tpu.memory_space<vmem>>, %arg2: memref<4x128x128xf32, #tpu.memory_space<vmem>>, %arg3: memref<4x128x128xf32, #tpu.memory_space<vmem>>, %arg4: memref<4x128x128xf32, #tpu.memory_space<vmem>>, %arg5: memref<4x128x128xf32, #tpu.memory_space<vmem>>, %arg6: memref<4x32x64xf32, #tpu.memory_space<vmem>>, %arg7: memref<4x16x32xf32, #tpu.memory_space<vmem>>, %arg8: memref<4x8x16xf32, #tpu.memory_space<vmem>>, %arg9: memref<4x4x8xf32, #tpu.memory_space<vmem>>, %arg10: memref<2x2x4xf32, #tpu.memory_space<vmem>>, %arg11: memref<3x128x128xf32, #tpu.memory_space<vmem>>, %arg12: memref<3x1x128xf32, #tpu.memory_space<vmem>>, %arg13: memref<3x1x128xf32, #tpu.memory_space<vmem>>, %arg14: memref<2x128x10xf32, #tpu.memory_space<vmem>>, %arg15: memref<1x10xf32, #tpu.memory_space<vmem>>, %arg16: memref<2x10xf32, #tpu.memory_space<vmem>>) attributes {dimension_semantics = [#tpu.dimension_semantics<arbitrary>], iteration_bounds = array<i64: 1>, scalar_prefetch = 0 : i64, scratch_operands = 0 : i64, tpu.core_type = #tpu.core_type<tc>, window_params = [{pipeline_mode = #tpu.pipeline_mode<synchronous>, transform_indices = @transform_0, window_bounds = array<i64: 64, 128>}, {pipeline_mode = #tpu.pipeline_mode<synchronous>, transform_indices = @transform_1, window_bounds = array<i64: 4, 128, 128>}, {pipeline_mode = #tpu.pipeline_mode<synchronous>, transform_indices = @transform_2, window_bounds = array<i64: 4, 128, 128>}, {pipeline_mode = #tpu.pipeline_mode<synchronous>, transform_indices = @transform_3, window_bounds = array<i64: 4, 128, 128>}, {pipeline_mode = #tpu.pipeline_mode<synchronous>, transform_indices = @transform_4, window_bounds = array<i64: 4, 128, 128>}, {pipeline_mode = #tpu.pipeline_mode<synchronous>, transform_indices = @transform_5, window_bounds = array<i64: 4, 32, 64>}, {pipeline_mode = #tpu.pipeline_mode<synchronous>, transform_indices = @transform_6, window_bounds = array<i64: 4, 16, 32>}, {pipeline_mode = #tpu.pipeline_mode<synchronous>, transform_indices = @transform_7, window_bounds = array<i64: 4, 8, 16>}, {pipeline_mode = #tpu.pipeline_mode<synchronous>, transform_indices = @transform_8, window_bounds = array<i64: 4, 4, 8>}, {pipeline_mode = #tpu.pipeline_mode<synchronous>, transform_indices = @transform_9, window_bounds = array<i64: 2, 2, 4>}, {pipeline_mode = #tpu.pipeline_mode<synchronous>, transform_indices = @transform_10, window_bounds = array<i64: 3, 128, 128>}, {pipeline_mode = #tpu.pipeline_mode<synchronous>, transform_indices = @transform_11, window_bounds = array<i64: 3, 1, 128>}, {pipeline_mode = #tpu.pipeline_mode<synchronous>, transform_indices = @transform_12, window_bounds = array<i64: 3, 1, 128>}, {pipeline_mode = #tpu.pipeline_mode<synchronous>, transform_indices = @transform_13, window_bounds = array<i64: 2, 128, 10>}, {pipeline_mode = #tpu.pipeline_mode<synchronous>, transform_indices = @transform_14, window_bounds = array<i64: 1, 10>}, {pipeline_mode = #tpu.pipeline_mode<synchronous>, transform_indices = @transform_15, window_bounds = array<i64: 2, 10>}]} {
    %c0 = arith.constant 0 : index
    %c0_0 = arith.constant 0 : index
    %0 = vector.load %arg1[%c0, %c0_0] : memref<64x128xf32, #tpu.memory_space<vmem>>, vector<64x128xf32>
    %c0_1 = arith.constant 0 : index
    %c0_2 = arith.constant 0 : index
    %c0_3 = arith.constant 0 : index
    %1 = vector.load %arg6[%c0_1, %c0_2, %c0_3] : memref<4x32x64xf32, #tpu.memory_space<vmem>>, vector<1x32x64xf32>
    %2 = vector.shape_cast %1 : vector<1x32x64xf32> to vector<32x64xf32>
    %cst = arith.constant dense<0.000000e+00> : vector<32x128xf32>
    %3 = tpu.matmul %2, %0, %cst {dimension_numbers = #tpu.dot_dimension_numbers<[1], [0], [0], [1], [0, 0, 1, 1], [], []>} : vector<32x64xf32>, vector<64x128xf32>, vector<32x128xf32> -> vector<32x128xf32>
    %c0_4 = arith.constant 0 : index
    %c0_5 = arith.constant 0 : index
    %c0_6 = arith.constant 0 : index
    %4 = vector.load %arg2[%c0_4, %c0_5, %c0_6] : memref<4x128x128xf32, #tpu.memory_space<vmem>>, vector<1x128x128xf32>
    %5 = vector.shape_cast %4 : vector<1x128x128xf32> to vector<128x128xf32>
    %cst_7 = arith.constant dense<0.000000e+00> : vector<32x128xf32>
    %6 = tpu.matmul %3, %5, %cst_7 {dimension_numbers = #tpu.dot_dimension_numbers<[1], [0], [0], [1], [0, 0, 1, 1], [], []>} : vector<32x128xf32>, vector<128x128xf32>, vector<32x128xf32> -> vector<32x128xf32>
    %c1 = arith.constant 1 : index
    %c0_8 = arith.constant 0 : index
    %c0_9 = arith.constant 0 : index
    %7 = vector.load %arg6[%c1, %c0_8, %c0_9] : memref<4x32x64xf32, #tpu.memory_space<vmem>>, vector<1x32x64xf32>
    %8 = vector.shape_cast %7 : vector<1x32x64xf32> to vector<32x64xf32>
    %cst_10 = arith.constant dense<0.000000e+00> : vector<32x128xf32>
    %9 = tpu.matmul %8, %0, %cst_10 {dimension_numbers = #tpu.dot_dimension_numbers<[1], [0], [0], [1], [0, 0, 1, 1], [], []>} : vector<32x64xf32>, vector<64x128xf32>, vector<32x128xf32> -> vector<32x128xf32>
    %c1_11 = arith.constant 1 : index
    %c0_12 = arith.constant 0 : index
    %c0_13 = arith.constant 0 : index
    %10 = vector.load %arg2[%c1_11, %c0_12, %c0_13] : memref<4x128x128xf32, #tpu.memory_space<vmem>>, vector<1x128x128xf32>
    %11 = vector.shape_cast %10 : vector<1x128x128xf32> to vector<128x128xf32>
    %cst_14 = arith.constant dense<0.000000e+00> : vector<32x128xf32>
    %12 = tpu.matmul %9, %11, %cst_14 {dimension_numbers = #tpu.dot_dimension_numbers<[1], [0], [0], [1], [0, 0, 1, 1], [], []>} : vector<32x128xf32>, vector<128x128xf32>, vector<32x128xf32> -> vector<32x128xf32>
    %13 = arith.addf %6, %12 : vector<32x128xf32>
    %c2 = arith.constant 2 : index
    %c0_15 = arith.constant 0 : index
    %c0_16 = arith.constant 0 : index
    %14 = vector.load %arg6[%c2, %c0_15, %c0_16] : memref<4x32x64xf32, #tpu.memory_space<vmem>>, vector<1x32x64xf32>
    %15 = vector.shape_cast %14 : vector<1x32x64xf32> to vector<32x64xf32>
    %cst_17 = arith.constant dense<0.000000e+00> : vector<32x128xf32>
    %16 = tpu.matmul %15, %0, %cst_17 {dimension_numbers = #tpu.dot_dimension_numbers<[1], [0], [0], [1], [0, 0, 1, 1], [], []>} : vector<32x64xf32>, vector<64x128xf32>, vector<32x128xf32> -> vector<32x128xf32>
    %c2_18 = arith.constant 2 : index
    %c0_19 = arith.constant 0 : index
    %c0_20 = arith.constant 0 : index
    %17 = vector.load %arg2[%c2_18, %c0_19, %c0_20] : memref<4x128x128xf32, #tpu.memory_space<vmem>>, vector<1x128x128xf32>
    %18 = vector.shape_cast %17 : vector<1x128x128xf32> to vector<128x128xf32>
    %cst_21 = arith.constant dense<0.000000e+00> : vector<32x128xf32>
    %19 = tpu.matmul %16, %18, %cst_21 {dimension_numbers = #tpu.dot_dimension_numbers<[1], [0], [0], [1], [0, 0, 1, 1], [], []>} : vector<32x128xf32>, vector<128x128xf32>, vector<32x128xf32> -> vector<32x128xf32>
    %20 = arith.addf %13, %19 : vector<32x128xf32>
    %c3 = arith.constant 3 : index
    %c0_22 = arith.constant 0 : index
    %c0_23 = arith.constant 0 : index
    %21 = vector.load %arg6[%c3, %c0_22, %c0_23] : memref<4x32x64xf32, #tpu.memory_space<vmem>>, vector<1x32x64xf32>
    %22 = vector.shape_cast %21 : vector<1x32x64xf32> to vector<32x64xf32>
    %cst_24 = arith.constant dense<0.000000e+00> : vector<32x128xf32>
    %23 = tpu.matmul %22, %0, %cst_24 {dimension_numbers = #tpu.dot_dimension_numbers<[1], [0], [0], [1], [0, 0, 1, 1], [], []>} : vector<32x64xf32>, vector<64x128xf32>, vector<32x128xf32> -> vector<32x128xf32>
    %c3_25 = arith.constant 3 : index
    %c0_26 = arith.constant 0 : index
    %c0_27 = arith.constant 0 : index
    %24 = vector.load %arg2[%c3_25, %c0_26, %c0_27] : memref<4x128x128xf32, #tpu.memory_space<vmem>>, vector<1x128x128xf32>
    %25 = vector.shape_cast %24 : vector<1x128x128xf32> to vector<128x128xf32>
    %cst_28 = arith.constant dense<0.000000e+00> : vector<32x128xf32>
    %26 = tpu.matmul %23, %25, %cst_28 {dimension_numbers = #tpu.dot_dimension_numbers<[1], [0], [0], [1], [0, 0, 1, 1], [], []>} : vector<32x128xf32>, vector<128x128xf32>, vector<32x128xf32> -> vector<32x128xf32>
    %27 = arith.addf %20, %26 : vector<32x128xf32>
    %cst_29 = arith.constant dense<0.000000e+00> : vector<128xf32>
    %28 = vector.multi_reduction <add>, %27, %cst_29 [0] : vector<32x128xf32> to vector<128xf32>
    %29 = vector.shape_cast %28 : vector<128xf32> to vector<1x128xf32>
    %30 = arith.mulf %27, %27 : vector<32x128xf32>
    %cst_30 = arith.constant dense<0.000000e+00> : vector<128xf32>
    %31 = vector.multi_reduction <add>, %30, %cst_30 [0] : vector<32x128xf32> to vector<128xf32>
    %32 = vector.shape_cast %31 : vector<128xf32> to vector<1x128xf32>
    %c0_31 = arith.constant 0 : index
    %c0_32 = arith.constant 0 : index
    %c0_33 = arith.constant 0 : index
    %33 = vector.load %arg11[%c0_31, %c0_32, %c0_33] : memref<3x128x128xf32, #tpu.memory_space<vmem>>, vector<1x128x128xf32>
    %34 = vector.shape_cast %33 : vector<1x128x128xf32> to vector<128x128xf32>
    %cst_34 = arith.constant dense<0.000000e+00> : vector<1x128xf32>
    %35 = tpu.matmul %29, %34, %cst_34 {dimension_numbers = #tpu.dot_dimension_numbers<[1], [0], [0], [1], [0, 0, 1, 1], [], []>} : vector<1x128xf32>, vector<128x128xf32>, vector<1x128xf32> -> vector<1x128xf32>
    %cst_35 = arith.constant dense<0.000000e+00> : vector<1x128xf32>
    %36 = tpu.matmul %32, %34, %cst_35 {dimension_numbers = #tpu.dot_dimension_numbers<[1], [0], [0], [1], [0, 0, 1, 1], [], []>} : vector<1x128xf32>, vector<128x128xf32>, vector<1x128xf32> -> vector<1x128xf32>
    %37 = arith.mulf %35, %35 : vector<1x128xf32>
    %38 = arith.subf %36, %37 : vector<1x128xf32>
    %cst_36 = arith.constant 9.99999974E-6 : f32
    %39 = vector.broadcast %cst_36 : f32 to vector<1x128xf32>
    %40 = arith.addf %38, %39 : vector<1x128xf32>
    %41 = math.rsqrt %40 : vector<1x128xf32>
    %c0_37 = arith.constant 0 : index
    %c0_38 = arith.constant 0 : index
    %c0_39 = arith.constant 0 : index
    %42 = vector.load %arg12[%c0_37, %c0_38, %c0_39] : memref<3x1x128xf32, #tpu.memory_space<vmem>>, vector<1x1x128xf32>
    %43 = vector.shape_cast %42 : vector<1x1x128xf32> to vector<1x128xf32>
    %44 = arith.mulf %41, %43 : vector<1x128xf32>
    %c0_40 = arith.constant 0 : index
    %c0_41 = arith.constant 0 : index
    %c0_42 = arith.constant 0 : index
    %45 = vector.load %arg13[%c0_40, %c0_41, %c0_42] : memref<3x1x128xf32, #tpu.memory_space<vmem>>, vector<1x1x128xf32>
    %46 = vector.shape_cast %45 : vector<1x1x128xf32> to vector<1x128xf32>
    %47 = arith.mulf %35, %44 : vector<1x128xf32>
    %48 = arith.subf %46, %47 : vector<1x128xf32>
    %49 = vector.broadcast %44 : vector<1x128xf32> to vector<32x128xf32>
    %50 = arith.mulf %27, %49 : vector<32x128xf32>
    %51 = vector.broadcast %48 : vector<1x128xf32> to vector<32x128xf32>
    %52 = arith.addf %50, %51 : vector<32x128xf32>
    %cst_43 = arith.constant 0.000000e+00 : f32
    %53 = vector.broadcast %cst_43 : f32 to vector<32x128xf32>
    %54 = arith.maximumf %52, %53 : vector<32x128xf32>
    %c0_44 = arith.constant 0 : index
    %c0_45 = arith.constant 0 : index
    %c0_46 = arith.constant 0 : index
    %55 = vector.load %arg7[%c0_44, %c0_45, %c0_46] : memref<4x16x32xf32, #tpu.memory_space<vmem>>, vector<1x16x32xf32>
    %56 = vector.shape_cast %55 : vector<1x16x32xf32> to vector<16x32xf32>
    %cst_47 = arith.constant dense<0.000000e+00> : vector<16x128xf32>
    %57 = tpu.matmul %56, %54, %cst_47 {dimension_numbers = #tpu.dot_dimension_numbers<[1], [0], [0], [1], [0, 0, 1, 1], [], []>} : vector<16x32xf32>, vector<32x128xf32>, vector<16x128xf32> -> vector<16x128xf32>
    %c0_48 = arith.constant 0 : index
    %c0_49 = arith.constant 0 : index
    %c0_50 = arith.constant 0 : index
    %58 = vector.load %arg3[%c0_48, %c0_49, %c0_50] : memref<4x128x128xf32, #tpu.memory_space<vmem>>, vector<1x128x128xf32>
    %59 = vector.shape_cast %58 : vector<1x128x128xf32> to vector<128x128xf32>
    %cst_51 = arith.constant dense<0.000000e+00> : vector<16x128xf32>
    %60 = tpu.matmul %57, %59, %cst_51 {dimension_numbers = #tpu.dot_dimension_numbers<[1], [0], [0], [1], [0, 0, 1, 1], [], []>} : vector<16x128xf32>, vector<128x128xf32>, vector<16x128xf32> -> vector<16x128xf32>
    %c1_52 = arith.constant 1 : index
    %c0_53 = arith.constant 0 : index
    %c0_54 = arith.constant 0 : index
    %61 = vector.load %arg7[%c1_52, %c0_53, %c0_54] : memref<4x16x32xf32, #tpu.memory_space<vmem>>, vector<1x16x32xf32>
    %62 = vector.shape_cast %61 : vector<1x16x32xf32> to vector<16x32xf32>
    %cst_55 = arith.constant dense<0.000000e+00> : vector<16x128xf32>
    %63 = tpu.matmul %62, %54, %cst_55 {dimension_numbers = #tpu.dot_dimension_numbers<[1], [0], [0], [1], [0, 0, 1, 1], [], []>} : vector<16x32xf32>, vector<32x128xf32>, vector<16x128xf32> -> vector<16x128xf32>
    %c1_56 = arith.constant 1 : index
    %c0_57 = arith.constant 0 : index
    %c0_58 = arith.constant 0 : index
    %64 = vector.load %arg3[%c1_56, %c0_57, %c0_58] : memref<4x128x128xf32, #tpu.memory_space<vmem>>, vector<1x128x128xf32>
    %65 = vector.shape_cast %64 : vector<1x128x128xf32> to vector<128x128xf32>
    %cst_59 = arith.constant dense<0.000000e+00> : vector<16x128xf32>
    %66 = tpu.matmul %63, %65, %cst_59 {dimension_numbers = #tpu.dot_dimension_numbers<[1], [0], [0], [1], [0, 0, 1, 1], [], []>} : vector<16x128xf32>, vector<128x128xf32>, vector<16x128xf32> -> vector<16x128xf32>
    %67 = arith.addf %60, %66 : vector<16x128xf32>
    %c2_60 = arith.constant 2 : index
    %c0_61 = arith.constant 0 : index
    %c0_62 = arith.constant 0 : index
    %68 = vector.load %arg7[%c2_60, %c0_61, %c0_62] : memref<4x16x32xf32, #tpu.memory_space<vmem>>, vector<1x16x32xf32>
    %69 = vector.shape_cast %68 : vector<1x16x32xf32> to vector<16x32xf32>
    %cst_63 = arith.constant dense<0.000000e+00> : vector<16x128xf32>
    %70 = tpu.matmul %69, %54, %cst_63 {dimension_numbers = #tpu.dot_dimension_numbers<[1], [0], [0], [1], [0, 0, 1, 1], [], []>} : vector<16x32xf32>, vector<32x128xf32>, vector<16x128xf32> -> vector<16x128xf32>
    %c2_64 = arith.constant 2 : index
    %c0_65 = arith.constant 0 : index
    %c0_66 = arith.constant 0 : index
    %71 = vector.load %arg3[%c2_64, %c0_65, %c0_66] : memref<4x128x128xf32, #tpu.memory_space<vmem>>, vector<1x128x128xf32>
    %72 = vector.shape_cast %71 : vector<1x128x128xf32> to vector<128x128xf32>
    %cst_67 = arith.constant dense<0.000000e+00> : vector<16x128xf32>
    %73 = tpu.matmul %70, %72, %cst_67 {dimension_numbers = #tpu.dot_dimension_numbers<[1], [0], [0], [1], [0, 0, 1, 1], [], []>} : vector<16x128xf32>, vector<128x128xf32>, vector<16x128xf32> -> vector<16x128xf32>
    %74 = arith.addf %67, %73 : vector<16x128xf32>
    %c3_68 = arith.constant 3 : index
    %c0_69 = arith.constant 0 : index
    %c0_70 = arith.constant 0 : index
    %75 = vector.load %arg7[%c3_68, %c0_69, %c0_70] : memref<4x16x32xf32, #tpu.memory_space<vmem>>, vector<1x16x32xf32>
    %76 = vector.shape_cast %75 : vector<1x16x32xf32> to vector<16x32xf32>
    %cst_71 = arith.constant dense<0.000000e+00> : vector<16x128xf32>
    %77 = tpu.matmul %76, %54, %cst_71 {dimension_numbers = #tpu.dot_dimension_numbers<[1], [0], [0], [1], [0, 0, 1, 1], [], []>} : vector<16x32xf32>, vector<32x128xf32>, vector<16x128xf32> -> vector<16x128xf32>
    %c3_72 = arith.constant 3 : index
    %c0_73 = arith.constant 0 : index
    %c0_74 = arith.constant 0 : index
    %78 = vector.load %arg3[%c3_72, %c0_73, %c0_74] : memref<4x128x128xf32, #tpu.memory_space<vmem>>, vector<1x128x128xf32>
    %79 = vector.shape_cast %78 : vector<1x128x128xf32> to vector<128x128xf32>
    %cst_75 = arith.constant dense<0.000000e+00> : vector<16x128xf32>
    %80 = tpu.matmul %77, %79, %cst_75 {dimension_numbers = #tpu.dot_dimension_numbers<[1], [0], [0], [1], [0, 0, 1, 1], [], []>} : vector<16x128xf32>, vector<128x128xf32>, vector<16x128xf32> -> vector<16x128xf32>
    %81 = arith.addf %74, %80 : vector<16x128xf32>
    %cst_76 = arith.constant dense<0.000000e+00> : vector<128xf32>
    %82 = vector.multi_reduction <add>, %81, %cst_76 [0] : vector<16x128xf32> to vector<128xf32>
    %83 = vector.shape_cast %82 : vector<128xf32> to vector<1x128xf32>
    %84 = arith.mulf %81, %81 : vector<16x128xf32>
    %cst_77 = arith.constant dense<0.000000e+00> : vector<128xf32>
    %85 = vector.multi_reduction <add>, %84, %cst_77 [0] : vector<16x128xf32> to vector<128xf32>
    %86 = vector.shape_cast %85 : vector<128xf32> to vector<1x128xf32>
    %c1_78 = arith.constant 1 : index
    %c0_79 = arith.constant 0 : index
    %c0_80 = arith.constant 0 : index
    %87 = vector.load %arg11[%c1_78, %c0_79, %c0_80] : memref<3x128x128xf32, #tpu.memory_space<vmem>>, vector<1x128x128xf32>
    %88 = vector.shape_cast %87 : vector<1x128x128xf32> to vector<128x128xf32>
    %cst_81 = arith.constant dense<0.000000e+00> : vector<1x128xf32>
    %89 = tpu.matmul %83, %88, %cst_81 {dimension_numbers = #tpu.dot_dimension_numbers<[1], [0], [0], [1], [0, 0, 1, 1], [], []>} : vector<1x128xf32>, vector<128x128xf32>, vector<1x128xf32> -> vector<1x128xf32>
    %cst_82 = arith.constant dense<0.000000e+00> : vector<1x128xf32>
    %90 = tpu.matmul %86, %88, %cst_82 {dimension_numbers = #tpu.dot_dimension_numbers<[1], [0], [0], [1], [0, 0, 1, 1], [], []>} : vector<1x128xf32>, vector<128x128xf32>, vector<1x128xf32> -> vector<1x128xf32>
    %91 = arith.mulf %89, %89 : vector<1x128xf32>
    %92 = arith.subf %90, %91 : vector<1x128xf32>
    %cst_83 = arith.constant 9.99999974E-6 : f32
    %93 = vector.broadcast %cst_83 : f32 to vector<1x128xf32>
    %94 = arith.addf %92, %93 : vector<1x128xf32>
    %95 = math.rsqrt %94 : vector<1x128xf32>
    %c1_84 = arith.constant 1 : index
    %c0_85 = arith.constant 0 : index
    %c0_86 = arith.constant 0 : index
    %96 = vector.load %arg12[%c1_84, %c0_85, %c0_86] : memref<3x1x128xf32, #tpu.memory_space<vmem>>, vector<1x1x128xf32>
    %97 = vector.shape_cast %96 : vector<1x1x128xf32> to vector<1x128xf32>
    %98 = arith.mulf %95, %97 : vector<1x128xf32>
    %c1_87 = arith.constant 1 : index
    %c0_88 = arith.constant 0 : index
    %c0_89 = arith.constant 0 : index
    %99 = vector.load %arg13[%c1_87, %c0_88, %c0_89] : memref<3x1x128xf32, #tpu.memory_space<vmem>>, vector<1x1x128xf32>
    %100 = vector.shape_cast %99 : vector<1x1x128xf32> to vector<1x128xf32>
    %101 = arith.mulf %89, %98 : vector<1x128xf32>
    %102 = arith.subf %100, %101 : vector<1x128xf32>
    %103 = vector.broadcast %98 : vector<1x128xf32> to vector<16x128xf32>
    %104 = arith.mulf %81, %103 : vector<16x128xf32>
    %105 = vector.broadcast %102 : vector<1x128xf32> to vector<16x128xf32>
    %106 = arith.addf %104, %105 : vector<16x128xf32>
    %cst_90 = arith.constant 0.000000e+00 : f32
    %107 = vector.broadcast %cst_90 : f32 to vector<16x128xf32>
    %108 = arith.maximumf %106, %107 : vector<16x128xf32>
    %c0_91 = arith.constant 0 : index
    %c0_92 = arith.constant 0 : index
    %c0_93 = arith.constant 0 : index
    %109 = vector.load %arg8[%c0_91, %c0_92, %c0_93] : memref<4x8x16xf32, #tpu.memory_space<vmem>>, vector<1x8x16xf32>
    %110 = vector.shape_cast %109 : vector<1x8x16xf32> to vector<8x16xf32>
    %cst_94 = arith.constant dense<0.000000e+00> : vector<8x128xf32>
    %111 = tpu.matmul %110, %108, %cst_94 {dimension_numbers = #tpu.dot_dimension_numbers<[1], [0], [0], [1], [0, 0, 1, 1], [], []>} : vector<8x16xf32>, vector<16x128xf32>, vector<8x128xf32> -> vector<8x128xf32>
    %c0_95 = arith.constant 0 : index
    %c0_96 = arith.constant 0 : index
    %c0_97 = arith.constant 0 : index
    %112 = vector.load %arg4[%c0_95, %c0_96, %c0_97] : memref<4x128x128xf32, #tpu.memory_space<vmem>>, vector<1x128x128xf32>
    %113 = vector.shape_cast %112 : vector<1x128x128xf32> to vector<128x128xf32>
    %cst_98 = arith.constant dense<0.000000e+00> : vector<8x128xf32>
    %114 = tpu.matmul %111, %113, %cst_98 {dimension_numbers = #tpu.dot_dimension_numbers<[1], [0], [0], [1], [0, 0, 1, 1], [], []>} : vector<8x128xf32>, vector<128x128xf32>, vector<8x128xf32> -> vector<8x128xf32>
    %c1_99 = arith.constant 1 : index
    %c0_100 = arith.constant 0 : index
    %c0_101 = arith.constant 0 : index
    %115 = vector.load %arg8[%c1_99, %c0_100, %c0_101] : memref<4x8x16xf32, #tpu.memory_space<vmem>>, vector<1x8x16xf32>
    %116 = vector.shape_cast %115 : vector<1x8x16xf32> to vector<8x16xf32>
    %cst_102 = arith.constant dense<0.000000e+00> : vector<8x128xf32>
    %117 = tpu.matmul %116, %108, %cst_102 {dimension_numbers = #tpu.dot_dimension_numbers<[1], [0], [0], [1], [0, 0, 1, 1], [], []>} : vector<8x16xf32>, vector<16x128xf32>, vector<8x128xf32> -> vector<8x128xf32>
    %c1_103 = arith.constant 1 : index
    %c0_104 = arith.constant 0 : index
    %c0_105 = arith.constant 0 : index
    %118 = vector.load %arg4[%c1_103, %c0_104, %c0_105] : memref<4x128x128xf32, #tpu.memory_space<vmem>>, vector<1x128x128xf32>
    %119 = vector.shape_cast %118 : vector<1x128x128xf32> to vector<128x128xf32>
    %cst_106 = arith.constant dense<0.000000e+00> : vector<8x128xf32>
    %120 = tpu.matmul %117, %119, %cst_106 {dimension_numbers = #tpu.dot_dimension_numbers<[1], [0], [0], [1], [0, 0, 1, 1], [], []>} : vector<8x128xf32>, vector<128x128xf32>, vector<8x128xf32> -> vector<8x128xf32>
    %121 = arith.addf %114, %120 : vector<8x128xf32>
    %c2_107 = arith.constant 2 : index
    %c0_108 = arith.constant 0 : index
    %c0_109 = arith.constant 0 : index
    %122 = vector.load %arg8[%c2_107, %c0_108, %c0_109] : memref<4x8x16xf32, #tpu.memory_space<vmem>>, vector<1x8x16xf32>
    %123 = vector.shape_cast %122 : vector<1x8x16xf32> to vector<8x16xf32>
    %cst_110 = arith.constant dense<0.000000e+00> : vector<8x128xf32>
    %124 = tpu.matmul %123, %108, %cst_110 {dimension_numbers = #tpu.dot_dimension_numbers<[1], [0], [0], [1], [0, 0, 1, 1], [], []>} : vector<8x16xf32>, vector<16x128xf32>, vector<8x128xf32> -> vector<8x128xf32>
    %c2_111 = arith.constant 2 : index
    %c0_112 = arith.constant 0 : index
    %c0_113 = arith.constant 0 : index
    %125 = vector.load %arg4[%c2_111, %c0_112, %c0_113] : memref<4x128x128xf32, #tpu.memory_space<vmem>>, vector<1x128x128xf32>
    %126 = vector.shape_cast %125 : vector<1x128x128xf32> to vector<128x128xf32>
    %cst_114 = arith.constant dense<0.000000e+00> : vector<8x128xf32>
    %127 = tpu.matmul %124, %126, %cst_114 {dimension_numbers = #tpu.dot_dimension_numbers<[1], [0], [0], [1], [0, 0, 1, 1], [], []>} : vector<8x128xf32>, vector<128x128xf32>, vector<8x128xf32> -> vector<8x128xf32>
    %128 = arith.addf %121, %127 : vector<8x128xf32>
    %c3_115 = arith.constant 3 : index
    %c0_116 = arith.constant 0 : index
    %c0_117 = arith.constant 0 : index
    %129 = vector.load %arg8[%c3_115, %c0_116, %c0_117] : memref<4x8x16xf32, #tpu.memory_space<vmem>>, vector<1x8x16xf32>
    %130 = vector.shape_cast %129 : vector<1x8x16xf32> to vector<8x16xf32>
    %cst_118 = arith.constant dense<0.000000e+00> : vector<8x128xf32>
    %131 = tpu.matmul %130, %108, %cst_118 {dimension_numbers = #tpu.dot_dimension_numbers<[1], [0], [0], [1], [0, 0, 1, 1], [], []>} : vector<8x16xf32>, vector<16x128xf32>, vector<8x128xf32> -> vector<8x128xf32>
    %c3_119 = arith.constant 3 : index
    %c0_120 = arith.constant 0 : index
    %c0_121 = arith.constant 0 : index
    %132 = vector.load %arg4[%c3_119, %c0_120, %c0_121] : memref<4x128x128xf32, #tpu.memory_space<vmem>>, vector<1x128x128xf32>
    %133 = vector.shape_cast %132 : vector<1x128x128xf32> to vector<128x128xf32>
    %cst_122 = arith.constant dense<0.000000e+00> : vector<8x128xf32>
    %134 = tpu.matmul %131, %133, %cst_122 {dimension_numbers = #tpu.dot_dimension_numbers<[1], [0], [0], [1], [0, 0, 1, 1], [], []>} : vector<8x128xf32>, vector<128x128xf32>, vector<8x128xf32> -> vector<8x128xf32>
    %135 = arith.addf %128, %134 : vector<8x128xf32>
    %cst_123 = arith.constant dense<0.000000e+00> : vector<128xf32>
    %136 = vector.multi_reduction <add>, %135, %cst_123 [0] : vector<8x128xf32> to vector<128xf32>
    %137 = vector.shape_cast %136 : vector<128xf32> to vector<1x128xf32>
    %138 = arith.mulf %135, %135 : vector<8x128xf32>
    %cst_124 = arith.constant dense<0.000000e+00> : vector<128xf32>
    %139 = vector.multi_reduction <add>, %138, %cst_124 [0] : vector<8x128xf32> to vector<128xf32>
    %140 = vector.shape_cast %139 : vector<128xf32> to vector<1x128xf32>
    %c2_125 = arith.constant 2 : index
    %c0_126 = arith.constant 0 : index
    %c0_127 = arith.constant 0 : index
    %141 = vector.load %arg11[%c2_125, %c0_126, %c0_127] : memref<3x128x128xf32, #tpu.memory_space<vmem>>, vector<1x128x128xf32>
    %142 = vector.shape_cast %141 : vector<1x128x128xf32> to vector<128x128xf32>
    %cst_128 = arith.constant dense<0.000000e+00> : vector<1x128xf32>
    %143 = tpu.matmul %137, %142, %cst_128 {dimension_numbers = #tpu.dot_dimension_numbers<[1], [0], [0], [1], [0, 0, 1, 1], [], []>} : vector<1x128xf32>, vector<128x128xf32>, vector<1x128xf32> -> vector<1x128xf32>
    %cst_129 = arith.constant dense<0.000000e+00> : vector<1x128xf32>
    %144 = tpu.matmul %140, %142, %cst_129 {dimension_numbers = #tpu.dot_dimension_numbers<[1], [0], [0], [1], [0, 0, 1, 1], [], []>} : vector<1x128xf32>, vector<128x128xf32>, vector<1x128xf32> -> vector<1x128xf32>
    %145 = arith.mulf %143, %143 : vector<1x128xf32>
    %146 = arith.subf %144, %145 : vector<1x128xf32>
    %cst_130 = arith.constant 9.99999974E-6 : f32
    %147 = vector.broadcast %cst_130 : f32 to vector<1x128xf32>
    %148 = arith.addf %146, %147 : vector<1x128xf32>
    %149 = math.rsqrt %148 : vector<1x128xf32>
    %c2_131 = arith.constant 2 : index
    %c0_132 = arith.constant 0 : index
    %c0_133 = arith.constant 0 : index
    %150 = vector.load %arg12[%c2_131, %c0_132, %c0_133] : memref<3x1x128xf32, #tpu.memory_space<vmem>>, vector<1x1x128xf32>
    %151 = vector.shape_cast %150 : vector<1x1x128xf32> to vector<1x128xf32>
    %152 = arith.mulf %149, %151 : vector<1x128xf32>
    %c2_134 = arith.constant 2 : index
    %c0_135 = arith.constant 0 : index
    %c0_136 = arith.constant 0 : index
    %153 = vector.load %arg13[%c2_134, %c0_135, %c0_136] : memref<3x1x128xf32, #tpu.memory_space<vmem>>, vector<1x1x128xf32>
    %154 = vector.shape_cast %153 : vector<1x1x128xf32> to vector<1x128xf32>
    %155 = arith.mulf %143, %152 : vector<1x128xf32>
    %156 = arith.subf %154, %155 : vector<1x128xf32>
    %157 = vector.broadcast %152 : vector<1x128xf32> to vector<8x128xf32>
    %158 = arith.mulf %135, %157 : vector<8x128xf32>
    %159 = vector.broadcast %156 : vector<1x128xf32> to vector<8x128xf32>
    %160 = arith.addf %158, %159 : vector<8x128xf32>
    %cst_137 = arith.constant 0.000000e+00 : f32
    %161 = vector.broadcast %cst_137 : f32 to vector<8x128xf32>
    %162 = arith.maximumf %160, %161 : vector<8x128xf32>
    %c0_138 = arith.constant 0 : index
    %c0_139 = arith.constant 0 : index
    %c0_140 = arith.constant 0 : index
    %163 = vector.load %arg9[%c0_138, %c0_139, %c0_140] : memref<4x4x8xf32, #tpu.memory_space<vmem>>, vector<1x4x8xf32>
    %164 = vector.shape_cast %163 : vector<1x4x8xf32> to vector<4x8xf32>
    %cst_141 = arith.constant dense<0.000000e+00> : vector<4x128xf32>
    %165 = tpu.matmul %164, %162, %cst_141 {dimension_numbers = #tpu.dot_dimension_numbers<[1], [0], [0], [1], [0, 0, 1, 1], [], []>} : vector<4x8xf32>, vector<8x128xf32>, vector<4x128xf32> -> vector<4x128xf32>
    %c0_142 = arith.constant 0 : index
    %c0_143 = arith.constant 0 : index
    %c0_144 = arith.constant 0 : index
    %166 = vector.load %arg5[%c0_142, %c0_143, %c0_144] : memref<4x128x128xf32, #tpu.memory_space<vmem>>, vector<1x128x128xf32>
    %167 = vector.shape_cast %166 : vector<1x128x128xf32> to vector<128x128xf32>
    %cst_145 = arith.constant dense<0.000000e+00> : vector<4x128xf32>
    %168 = tpu.matmul %165, %167, %cst_145 {dimension_numbers = #tpu.dot_dimension_numbers<[1], [0], [0], [1], [0, 0, 1, 1], [], []>} : vector<4x128xf32>, vector<128x128xf32>, vector<4x128xf32> -> vector<4x128xf32>
    %c1_146 = arith.constant 1 : index
    %c0_147 = arith.constant 0 : index
    %c0_148 = arith.constant 0 : index
    %169 = vector.load %arg9[%c1_146, %c0_147, %c0_148] : memref<4x4x8xf32, #tpu.memory_space<vmem>>, vector<1x4x8xf32>
    %170 = vector.shape_cast %169 : vector<1x4x8xf32> to vector<4x8xf32>
    %cst_149 = arith.constant dense<0.000000e+00> : vector<4x128xf32>
    %171 = tpu.matmul %170, %162, %cst_149 {dimension_numbers = #tpu.dot_dimension_numbers<[1], [0], [0], [1], [0, 0, 1, 1], [], []>} : vector<4x8xf32>, vector<8x128xf32>, vector<4x128xf32> -> vector<4x128xf32>
    %c1_150 = arith.constant 1 : index
    %c0_151 = arith.constant 0 : index
    %c0_152 = arith.constant 0 : index
    %172 = vector.load %arg5[%c1_150, %c0_151, %c0_152] : memref<4x128x128xf32, #tpu.memory_space<vmem>>, vector<1x128x128xf32>
    %173 = vector.shape_cast %172 : vector<1x128x128xf32> to vector<128x128xf32>
    %cst_153 = arith.constant dense<0.000000e+00> : vector<4x128xf32>
    %174 = tpu.matmul %171, %173, %cst_153 {dimension_numbers = #tpu.dot_dimension_numbers<[1], [0], [0], [1], [0, 0, 1, 1], [], []>} : vector<4x128xf32>, vector<128x128xf32>, vector<4x128xf32> -> vector<4x128xf32>
    %175 = arith.addf %168, %174 : vector<4x128xf32>
    %c2_154 = arith.constant 2 : index
    %c0_155 = arith.constant 0 : index
    %c0_156 = arith.constant 0 : index
    %176 = vector.load %arg9[%c2_154, %c0_155, %c0_156] : memref<4x4x8xf32, #tpu.memory_space<vmem>>, vector<1x4x8xf32>
    %177 = vector.shape_cast %176 : vector<1x4x8xf32> to vector<4x8xf32>
    %cst_157 = arith.constant dense<0.000000e+00> : vector<4x128xf32>
    %178 = tpu.matmul %177, %162, %cst_157 {dimension_numbers = #tpu.dot_dimension_numbers<[1], [0], [0], [1], [0, 0, 1, 1], [], []>} : vector<4x8xf32>, vector<8x128xf32>, vector<4x128xf32> -> vector<4x128xf32>
    %c2_158 = arith.constant 2 : index
    %c0_159 = arith.constant 0 : index
    %c0_160 = arith.constant 0 : index
    %179 = vector.load %arg5[%c2_158, %c0_159, %c0_160] : memref<4x128x128xf32, #tpu.memory_space<vmem>>, vector<1x128x128xf32>
    %180 = vector.shape_cast %179 : vector<1x128x128xf32> to vector<128x128xf32>
    %cst_161 = arith.constant dense<0.000000e+00> : vector<4x128xf32>
    %181 = tpu.matmul %178, %180, %cst_161 {dimension_numbers = #tpu.dot_dimension_numbers<[1], [0], [0], [1], [0, 0, 1, 1], [], []>} : vector<4x128xf32>, vector<128x128xf32>, vector<4x128xf32> -> vector<4x128xf32>
    %182 = arith.addf %175, %181 : vector<4x128xf32>
    %c3_162 = arith.constant 3 : index
    %c0_163 = arith.constant 0 : index
    %c0_164 = arith.constant 0 : index
    %183 = vector.load %arg9[%c3_162, %c0_163, %c0_164] : memref<4x4x8xf32, #tpu.memory_space<vmem>>, vector<1x4x8xf32>
    %184 = vector.shape_cast %183 : vector<1x4x8xf32> to vector<4x8xf32>
    %cst_165 = arith.constant dense<0.000000e+00> : vector<4x128xf32>
    %185 = tpu.matmul %184, %162, %cst_165 {dimension_numbers = #tpu.dot_dimension_numbers<[1], [0], [0], [1], [0, 0, 1, 1], [], []>} : vector<4x8xf32>, vector<8x128xf32>, vector<4x128xf32> -> vector<4x128xf32>
    %c3_166 = arith.constant 3 : index
    %c0_167 = arith.constant 0 : index
    %c0_168 = arith.constant 0 : index
    %186 = vector.load %arg5[%c3_166, %c0_167, %c0_168] : memref<4x128x128xf32, #tpu.memory_space<vmem>>, vector<1x128x128xf32>
    %187 = vector.shape_cast %186 : vector<1x128x128xf32> to vector<128x128xf32>
    %cst_169 = arith.constant dense<0.000000e+00> : vector<4x128xf32>
    %188 = tpu.matmul %185, %187, %cst_169 {dimension_numbers = #tpu.dot_dimension_numbers<[1], [0], [0], [1], [0, 0, 1, 1], [], []>} : vector<4x128xf32>, vector<128x128xf32>, vector<4x128xf32> -> vector<4x128xf32>
    %189 = arith.addf %182, %188 : vector<4x128xf32>
    %c0_170 = arith.constant 0 : index
    %c0_171 = arith.constant 0 : index
    %c0_172 = arith.constant 0 : index
    %190 = vector.load %arg10[%c0_170, %c0_171, %c0_172] : memref<2x2x4xf32, #tpu.memory_space<vmem>>, vector<1x2x4xf32>
    %191 = vector.shape_cast %190 : vector<1x2x4xf32> to vector<2x4xf32>
    %cst_173 = arith.constant dense<0.000000e+00> : vector<2x128xf32>
    %192 = tpu.matmul %191, %189, %cst_173 {dimension_numbers = #tpu.dot_dimension_numbers<[1], [0], [0], [1], [0, 0, 1, 1], [], []>} : vector<2x4xf32>, vector<4x128xf32>, vector<2x128xf32> -> vector<2x128xf32>
    %c0_174 = arith.constant 0 : index
    %c0_175 = arith.constant 0 : index
    %c0_176 = arith.constant 0 : index
    %193 = vector.load %arg14[%c0_174, %c0_175, %c0_176] : memref<2x128x10xf32, #tpu.memory_space<vmem>>, vector<1x128x10xf32>
    %194 = vector.shape_cast %193 : vector<1x128x10xf32> to vector<128x10xf32>
    %cst_177 = arith.constant dense<0.000000e+00> : vector<2x10xf32>
    %195 = tpu.matmul %192, %194, %cst_177 {dimension_numbers = #tpu.dot_dimension_numbers<[1], [0], [0], [1], [0, 0, 1, 1], [], []>} : vector<2x128xf32>, vector<128x10xf32>, vector<2x10xf32> -> vector<2x10xf32>
    %c1_178 = arith.constant 1 : index
    %c0_179 = arith.constant 0 : index
    %c0_180 = arith.constant 0 : index
    %196 = vector.load %arg10[%c1_178, %c0_179, %c0_180] : memref<2x2x4xf32, #tpu.memory_space<vmem>>, vector<1x2x4xf32>
    %197 = vector.shape_cast %196 : vector<1x2x4xf32> to vector<2x4xf32>
    %cst_181 = arith.constant dense<0.000000e+00> : vector<2x128xf32>
    %198 = tpu.matmul %197, %189, %cst_181 {dimension_numbers = #tpu.dot_dimension_numbers<[1], [0], [0], [1], [0, 0, 1, 1], [], []>} : vector<2x4xf32>, vector<4x128xf32>, vector<2x128xf32> -> vector<2x128xf32>
    %c1_182 = arith.constant 1 : index
    %c0_183 = arith.constant 0 : index
    %c0_184 = arith.constant 0 : index
    %199 = vector.load %arg14[%c1_182, %c0_183, %c0_184] : memref<2x128x10xf32, #tpu.memory_space<vmem>>, vector<1x128x10xf32>
    %200 = vector.shape_cast %199 : vector<1x128x10xf32> to vector<128x10xf32>
    %cst_185 = arith.constant dense<0.000000e+00> : vector<2x10xf32>
    %201 = tpu.matmul %198, %200, %cst_185 {dimension_numbers = #tpu.dot_dimension_numbers<[1], [0], [0], [1], [0, 0, 1, 1], [], []>} : vector<2x128xf32>, vector<128x10xf32>, vector<2x10xf32> -> vector<2x10xf32>
    %202 = arith.addf %195, %201 : vector<2x10xf32>
    %c0_186 = arith.constant 0 : index
    %c0_187 = arith.constant 0 : index
    %203 = vector.load %arg15[%c0_186, %c0_187] : memref<1x10xf32, #tpu.memory_space<vmem>>, vector<1x10xf32>
    %204 = vector.broadcast %203 : vector<1x10xf32> to vector<2x10xf32>
    %205 = arith.addf %202, %204 : vector<2x10xf32>
    %cst_188 = arith.constant dense<0xFF800000> : vector<2xf32>
    %206 = vector.multi_reduction <maximumf>, %205, %cst_188 [1] : vector<2x10xf32> to vector<2xf32>
    %207 = vector.shape_cast %206 : vector<2xf32> to vector<2x1xf32>
    %208 = vector.broadcast %207 : vector<2x1xf32> to vector<2x10xf32>
    %209 = arith.subf %205, %208 : vector<2x10xf32>
    %210 = math.exp %209 : vector<2x10xf32>
    %cst_189 = arith.constant dense<0.000000e+00> : vector<2xf32>
    %211 = vector.multi_reduction <add>, %210, %cst_189 [1] : vector<2x10xf32> to vector<2xf32>
    %212 = vector.shape_cast %211 : vector<2xf32> to vector<2x1xf32>
    %213 = tpu.reciprocal %212 {approx = true} : vector<2x1xf32> -> vector<2x1xf32>
    %214 = vector.broadcast %213 : vector<2x1xf32> to vector<2x10xf32>
    %215 = arith.mulf %210, %214 : vector<2x10xf32>
    %c0_190 = arith.constant 0 : index
    %c0_191 = arith.constant 0 : index
    %216 = vector.load %arg16[%c0_190, %c0_191] : memref<2x10xf32, #tpu.memory_space<vmem>>, vector<2x10xf32>
    tpu.vector_store %arg16[%c0_190, %c0_191], %215 {strides = array<i32>} : memref<2x10xf32, #tpu.memory_space<vmem>>, vector<2x10xf32>,
    return
  }
  func.func @transform_0(%arg0: i32) -> (i32, i32) {
    %c0_i32 = arith.constant 0 : i32
    %c0_i32_0 = arith.constant 0 : i32
    %c0_i32_1 = arith.constant 0 : i32
    return %c0_i32, %c0_i32_0 : i32, i32
  }
  func.func @transform_1(%arg0: i32) -> (i32, i32, i32) {
    %c0_i32 = arith.constant 0 : i32
    %c0_i32_0 = arith.constant 0 : i32
    %c0_i32_1 = arith.constant 0 : i32
    %c0_i32_2 = arith.constant 0 : i32
    return %c0_i32, %c0_i32_0, %c0_i32_1 : i32, i32, i32
  }
  func.func @transform_2(%arg0: i32) -> (i32, i32, i32) {
    %c0_i32 = arith.constant 0 : i32
    %c0_i32_0 = arith.constant 0 : i32
    %c0_i32_1 = arith.constant 0 : i32
    %c0_i32_2 = arith.constant 0 : i32
    return %c0_i32, %c0_i32_0, %c0_i32_1 : i32, i32, i32
  }
  func.func @transform_3(%arg0: i32) -> (i32, i32, i32) {
    %c0_i32 = arith.constant 0 : i32
    %c0_i32_0 = arith.constant 0 : i32
    %c0_i32_1 = arith.constant 0 : i32
    %c0_i32_2 = arith.constant 0 : i32
    return %c0_i32, %c0_i32_0, %c0_i32_1 : i32, i32, i32
  }
  func.func @transform_4(%arg0: i32) -> (i32, i32, i32) {
    %c0_i32 = arith.constant 0 : i32
    %c0_i32_0 = arith.constant 0 : i32
    %c0_i32_1 = arith.constant 0 : i32
    %c0_i32_2 = arith.constant 0 : i32
    return %c0_i32, %c0_i32_0, %c0_i32_1 : i32, i32, i32
  }
  func.func @transform_5(%arg0: i32) -> (i32, i32, i32) {
    %c0_i32 = arith.constant 0 : i32
    %c0_i32_0 = arith.constant 0 : i32
    %c0_i32_1 = arith.constant 0 : i32
    %c0_i32_2 = arith.constant 0 : i32
    return %c0_i32, %c0_i32_0, %c0_i32_1 : i32, i32, i32
  }
  func.func @transform_6(%arg0: i32) -> (i32, i32, i32) {
    %c0_i32 = arith.constant 0 : i32
    %c0_i32_0 = arith.constant 0 : i32
    %c0_i32_1 = arith.constant 0 : i32
    %c0_i32_2 = arith.constant 0 : i32
    return %c0_i32, %c0_i32_0, %c0_i32_1 : i32, i32, i32
  }
  func.func @transform_7(%arg0: i32) -> (i32, i32, i32) {
    %c0_i32 = arith.constant 0 : i32
    %c0_i32_0 = arith.constant 0 : i32
    %c0_i32_1 = arith.constant 0 : i32
    %c0_i32_2 = arith.constant 0 : i32
    return %c0_i32, %c0_i32_0, %c0_i32_1 : i32, i32, i32
  }
  func.func @transform_8(%arg0: i32) -> (i32, i32, i32) {
    %c0_i32 = arith.constant 0 : i32
    %c0_i32_0 = arith.constant 0 : i32
    %c0_i32_1 = arith.constant 0 : i32
    %c0_i32_2 = arith.constant 0 : i32
    return %c0_i32, %c0_i32_0, %c0_i32_1 : i32, i32, i32
  }
  func.func @transform_9(%arg0: i32) -> (i32, i32, i32) {
    %c0_i32 = arith.constant 0 : i32
    %c0_i32_0 = arith.constant 0 : i32
    %c0_i32_1 = arith.constant 0 : i32
    %c0_i32_2 = arith.constant 0 : i32
    return %c0_i32, %c0_i32_0, %c0_i32_1 : i32, i32, i32
  }
  func.func @transform_10(%arg0: i32) -> (i32, i32, i32) {
    %c0_i32 = arith.constant 0 : i32
    %c0_i32_0 = arith.constant 0 : i32
    %c0_i32_1 = arith.constant 0 : i32
    %c0_i32_2 = arith.constant 0 : i32
    return %c0_i32, %c0_i32_0, %c0_i32_1 : i32, i32, i32
  }
  func.func @transform_11(%arg0: i32) -> (i32, i32, i32) {
    %c0_i32 = arith.constant 0 : i32
    %c0_i32_0 = arith.constant 0 : i32
    %c0_i32_1 = arith.constant 0 : i32
    %c0_i32_2 = arith.constant 0 : i32
    return %c0_i32, %c0_i32_0, %c0_i32_1 : i32, i32, i32
  }
  func.func @transform_12(%arg0: i32) -> (i32, i32, i32) {
    %c0_i32 = arith.constant 0 : i32
    %c0_i32_0 = arith.constant 0 : i32
    %c0_i32_1 = arith.constant 0 : i32
    %c0_i32_2 = arith.constant 0 : i32
    return %c0_i32, %c0_i32_0, %c0_i32_1 : i32, i32, i32
  }
  func.func @transform_13(%arg0: i32) -> (i32, i32, i32) {
    %c0_i32 = arith.constant 0 : i32
    %c0_i32_0 = arith.constant 0 : i32
    %c0_i32_1 = arith.constant 0 : i32
    %c0_i32_2 = arith.constant 0 : i32
    return %c0_i32, %c0_i32_0, %c0_i32_1 : i32, i32, i32
  }
  func.func @transform_14(%arg0: i32) -> (i32, i32) {
    %c0_i32 = arith.constant 0 : i32
    %c0_i32_0 = arith.constant 0 : i32
    %c0_i32_1 = arith.constant 0 : i32
    return %c0_i32, %c0_i32_0 : i32, i32
  }
  func.func @transform_15(%arg0: i32) -> (i32, i32) {
    %c0_i32 = arith.constant 0 : i32
    %c0_i32_0 = arith.constant 0 : i32
    %c0_i32_1 = arith.constant 0 : i32
    return %c0_i32, %c0_i32_0 : i32, i32
  }
}

</mosaic_0001>

<bundles_post_ra>
// kernel: conv_net_forward.1
= control target key start
LH: loop header
LB: loop body
LE: loop exit
PB: predicated region body
PF: predicated region fallthrough
CT: control target
= control target key end

     0   :  { %20 = vsyncpa [#allocation3], 0  ;;  %s7033_s0 = inlined_call_operand.vmem [shape: f32[64,128], index: 0, kind: input, shape index: {}]   ;;  %s7034_s1 = inlined_call_operand.vmem [shape: f32[4,128,128], index: 1, kind: input, shape index: {}]   ;;  %s7035_s2 = inlined_call_operand.vmem [shape: f32[4,128,128], index: 2, kind: input, shape index: {}]   ;;  %s7036_s3 = inlined_call_operand.hbm [shape: f32[4,128,128], index: 3, kind: input, shape index: {}]   ;;  %s7037_s4 = inlined_call_operand.hbm [shape: f32[4,128,128], index: 4, kind: input, shape index: {}]   ;;  %s7038_s5 = inlined_call_operand.vmem [shape: f32[4,32,64], index: 5, kind: input, shape index: {}]   ;;  %s7039_s6 = inlined_call_operand.vmem [shape: f32[4,16,32], index: 6, kind: input, shape index: {}]   ;;  %s7040_s7 = inlined_call_operand.vmem [shape: f32[4,8,16], index: 7, kind: input, shape index: {}]   ;;  %s7041_s8 = inlined_call_operand.vmem [shape: f32[4,4,8], index: 8, kind: input, shape index: {}]   ;;  %s7042_s9 = inlined_call_operand.vmem [shape: f32[2,2,4], index: 9, kind: input, shape index: {}]   ;;  %s7043_s10 = inlined_call_operand.hbm [shape: f32[3,128,128], index: 10, kind: input, shape index: {}]   ;;  %s7044_s11 = inlined_call_operand.vmem [shape: f32[3,1,128], index: 11, kind: input, shape index: {}]   ;;  %s7045_s12 = inlined_call_operand.vmem [shape: f32[3,1,128], index: 12, kind: input, shape index: {}]   ;;  %s7046_s13 = inlined_call_operand.vmem [shape: f32[2,128,10], index: 13, kind: input, shape index: {}]   ;;  %s7047_s14 = inlined_call_operand.vmem [shape: f32[1,10], index: 14, kind: input, shape index: {}]   ;;  %s7048_s15 = inlined_call_operand.hbm [shape: f32[2,10], index: 15, kind: output, shape index: {}]  }
   0x1   :  { %21 = vsyncpa [#allocation6], 0 }
   0x2   :  { %22 = vsyncpa [#allocation4], 0  ;;  %s5739_s18 = smov [#allocation5]   ;;  %s5740_s20 = smov [#allocation2]  }
   0x3   :  { %s46_s19 = sshll.u32 %s5739_s18, 4  ;;  %s34_s21 = sshll.u32 %s5740_s20, 4  ;;  %s47_s19 = int_to_ptr.vmem [resolvable:$true] %s46_s19  ;;  %s35_s21 = int_to_ptr.vmem [resolvable:$true] %s34_s21 }
   0x4   :  { %s5661_s22 = scalar_lea.vmem %s47_s19, 8192  ;;  %p5666_p1 = scmp.lt.s32.totalorder %s47_s19, %s47_s19 }
   0x5   :  { %p5662_p0 = scmp.ne.s32.totalorder %s47_s19, %s5661_s22  ;;  %p5667_p2 = scmp.lt.s32.totalorder %s5661_s22, %s5661_s22 }
   0x7   :  { %p5668_p3 = por %p5667_p2, %p5666_p1 }
   0x9   :  { %p5669_p4 = pnand %p5668_p3, %p5662_p0 }
   0xb   :  { %5672 = shalt.err (!%p5669_p4)
}
   0xc   :  { %s5741_s23 = smov 128   ;;  %s5742_s24 = smov 8  }
   0xd   :  { %52 = dma.hbm_to_vmem [thread:$0]  %s7037_s4, 8192, %s47_s19, [#allocation6], %s5741_s23, %s5741_s23, %s5742_s24  }
   0xe   :  { %s5681_s27 = scalar_lea.vmem %s35_s21, 8192  ;;  %p5686_p6 = scmp.lt.s32.totalorder %s35_s21, %s35_s21 }
   0xf   :  { %p5682_p5 = scmp.ne.s32.totalorder %s35_s21, %s5681_s27  ;;  %p5687_p7 = scmp.lt.s32.totalorder %s5681_s27, %s5681_s27 }
  0x11   :  { %p5688_p8 = por %p5687_p7, %p5686_p6 }
  0x13   :  { %p5689_p9 = pnand %p5688_p8, %p5682_p5 }
  0x15   :  { %5692 = shalt.err (!%p5689_p9)
}
  0x16   :  { %40 = dma.hbm_to_vmem [thread:$0]  %s7036_s3, 8192, %s35_s21, [#allocation3], %s5741_s23, %s5741_s23, %s5742_s24  }
  0x17   :  { %s5743_s30 = smov [#allocation7]  }
  0x18   :  { %s68_s16 = sshll.u32 %s5743_s30, 4  ;;  %s69_s16 = int_to_ptr.vmem [resolvable:$true] %s68_s16 }
  0x19   :  { %s5701_s17 = scalar_lea.vmem %s69_s16, 6144  ;;  %p5706_p11 = scmp.lt.s32.totalorder %s69_s16, %s69_s16 }
  0x1a   :  { %p5702_p10 = scmp.ne.s32.totalorder %s69_s16, %s5701_s17  ;;  %p5707_p12 = scmp.lt.s32.totalorder %s5701_s17, %s5701_s17 }
  0x1c   :  { %p5708_p13 = por %p5707_p12, %p5706_p11 }
  0x1e   :  { %p5709_p0 = pnand %p5708_p13, %p5702_p10 }
  0x20   :  { %5712 = shalt.err (!%p5709_p0)
}
  0x21   :  { %74 = dma.hbm_to_vmem [thread:$0]  %s7043_s10, 6144, %s69_s16, [#allocation6], %s5741_s23, %s5741_s23, %s5742_s24  }
  0x22   :  { %5733 = dma.done.wait [#allocation3], 8192  }
  0x23   :  { %5734 = vsyncadd [#allocation3], 4294959104 }
  0x24   :  { %5735 = dma.done.wait [#allocation6], 14336  }
  0x25   :  { %5736 = vsyncadd [#allocation6], 4294952960  ;;  %v5839_v0 = vld [vmem:[%s7033_s0 + $0x38] sm:$0xff]  ;;  %v5844_v1 = vld [vmem:[%s7033_s0 + $0x30] sm:$0xff]  ;;  %vm104_vm0 = vcmask 523264   ;;  %vm5745_vm1 = vmmov 0  }
  0x26   :  { %4593 = vmatprep.subr.mxu0 %v5839_v0  ;;  %4615 = vmatprep.subr.mxu1 %v5839_v0  ;;  %v5853_v2 = vld [vmem:[%s7033_s0 + $0x28] sm:$0xff]  ;;  %v5862_v3 = vld [vmem:[%s7033_s0 + $0x20] sm:$0xff]  ;;  %v5871_v4 = vld [vmem:[%s7033_s0 + $0x18] sm:$0xff]  ;;  %vm1134_vm2 = vcmask 261120   ;;  %vm2040_vm3 = vcmask 130048   ;;  %vm2883_vm4 = vcmask 64512  }
  0x27   :  { %4594 = vmatpush3.msra.mxu0 %v5839_v0  ;;  %4616 = vmatpush3.msra.mxu1 %v5839_v0  ;;  %v5880_v5 = vld [vmem:[%s7033_s0 + $0x10] sm:$0xff]  ;;  %v5889_v6 = vld [vmem:[%s7033_s0 + $0x8] sm:$0xff]  ;;  %v5898_v7 = vld [vmem:[%s7033_s0] sm:$0xff]  ;;  %vm3536_vm5 = vcmask 1043456   ;;  %vm3532_vm6 = vcmask 31744   ;;  %vm3866_vm7 = vcmask 74752  }
  0x28   :  { %4595 = vmatprep.subr.mxu0 %v5844_v1  ;;  %4617 = vmatprep.subr.mxu1 %v5844_v1  ;;  %v100_v8 = vld [vmem:[%s7038_s5] sm:$0xff]  ;;  %v101_v10 = vld [vmem:[%s7038_s5 + $0x8] sm:$0xff]  ;;  %v102_v12 = vld [vmem:[%s7038_s5 + $0x10] sm:$0xff] }
  0x29   :  { %4596 = vmatpush3.msra.mxu0 %v5844_v1  ;;  %4618 = vmatpush3.msra.mxu1 %v5844_v1  ;;  %v3899_v9 = vld [vmem:[%s7038_s5 + $0x20] sm:$0xff]  ;;  %v3900_v11 = vld [vmem:[%s7038_s5 + $0x28] sm:$0xff]  ;;  %v3901_v13 = vld [vmem:[%s7038_s5 + $0x30] sm:$0xff] }
  0x2a   :  { %4597 = vmatprep.subr.mxu0 %v5853_v2  ;;  %4619 = vmatprep.subr.mxu1 %v5853_v2  ;;  %v3922_v14 = vld [vmem:[%s7034_s1 + $0xf8] sm:$0xff]  ;;  %v3921_v18 = vld [vmem:[%s7034_s1 + $0xf0] sm:$0xff]  ;;  %v3920_v20 = vld [vmem:[%s7034_s1 + $0xe8] sm:$0xff] }
  0x2b   :  { %4598 = vmatpush3.msra.mxu0 %v5853_v2  ;;  %4620 = vmatpush3.msra.mxu1 %v5853_v2  ;;  %v217_v15 = vld [vmem:[%s7034_s1 + $0x78] sm:$0xff]  ;;  %v216_v19 = vld [vmem:[%s7034_s1 + $0x70] sm:$0xff]  ;;  %v215_v21 = vld [vmem:[%s7034_s1 + $0x68] sm:$0xff] }
  0x2c   :  { %4599 = vmatprep.subr.mxu0 %v5862_v3  ;;  %4621 = vmatprep.subr.mxu1 %v5862_v3  ;;  %v103_v16 = vld [vmem:[%s7038_s5 + $0x18] sm:$0xff]  ;;  %v3919_v22 = vld [vmem:[%s7034_s1 + $0xe0] sm:$0xff]  ;;  %v3917_v26 = vld [vmem:[%s7034_s1 + $0xd0] sm:$0xff] }
  0x2d   :  { %4600 = vmatpush3.msra.mxu0 %v5862_v3  ;;  %4622 = vmatpush3.msra.mxu1 %v5862_v3  ;;  %v3902_v17 = vld [vmem:[%s7038_s5 + $0x38] sm:$0xff]  ;;  %v214_v23 = vld [vmem:[%s7034_s1 + $0x60] sm:$0xff]  ;;  %v212_v27 = vld [vmem:[%s7034_s1 + $0x50] sm:$0xff] }
  0x2e   :  { %4601 = vmatprep.subr.mxu0 %v5871_v4  ;;  %4623 = vmatprep.subr.mxu1 %v5871_v4  ;;  %v3918_v24 = vld [vmem:[%s7034_s1 + $0xd8] sm:$0xff]  ;;  %v3916_v28 = vld [vmem:[%s7034_s1 + $0xc8] sm:$0xff]  ;;  %v3915_v30 = vld [vmem:[%s7034_s1 + $0xc0] sm:$0xff] }
  0x2f   :  { %4602 = vmatpush3.msra.mxu0 %v5871_v4  ;;  %4624 = vmatpush3.msra.mxu1 %v5871_v4  ;;  %v213_v25 = vld [vmem:[%s7034_s1 + $0x58] sm:$0xff]  ;;  %v211_v29 = vld [vmem:[%s7034_s1 + $0x48] sm:$0xff]  ;;  %v210_v31 = vld [vmem:[%s7034_s1 + $0x40] sm:$0xff] }
  0x30   :  { %4603 = vmatprep.subr.mxu0 %v5880_v5  ;;  %4625 = vmatprep.subr.mxu1 %v5880_v5  ;;  %v3914_v32 = vld [vmem:[%s7034_s1 + $0xb8] sm:$0xff]  ;;  %v3913_v34 = vld [vmem:[%s7034_s1 + $0xb0] sm:$0xff]  ;;  %v3912_v36 = vld [vmem:[%s7034_s1 + $0xa8] sm:$0xff] }
  0x31   :  { %4604 = vmatpush3.msra.mxu0 %v5880_v5  ;;  %4626 = vmatpush3.msra.mxu1 %v5880_v5  ;;  %v209_v33 = vld [vmem:[%s7034_s1 + $0x38] sm:$0xff]  ;;  %v208_v35 = vld [vmem:[%s7034_s1 + $0x30] sm:$0xff]  ;;  %v207_v37 = vld [vmem:[%s7034_s1 + $0x28] sm:$0xff] }
  0x32   :  { %4605 = vmatprep.subr.mxu0 %v5889_v6  ;;  %4627 = vmatprep.subr.mxu1 %v5889_v6  ;;  %v3911_v38 = vld [vmem:[%s7034_s1 + $0xa0] sm:$0xff]  ;;  %v3910_v40 = vld [vmem:[%s7034_s1 + $0x98] sm:$0xff]  ;;  %v3909_v42 = vld [vmem:[%s7034_s1 + $0x90] sm:$0xff] }
  0x33   :  { %4606 = vmatpush3.msra.mxu0 %v5889_v6  ;;  %4628 = vmatpush3.msra.mxu1 %v5889_v6  ;;  %v206_v39 = vld [vmem:[%s7034_s1 + $0x20] sm:$0xff]  ;;  %v205_v41 = vld [vmem:[%s7034_s1 + $0x18] sm:$0xff]  ;;  %v204_v43 = vld [vmem:[%s7034_s1 + $0x10] sm:$0xff] }
  0x34   :  { %4607 = vmatprep.subr.mxu0 %v5898_v7  ;;  %4629 = vmatprep.subr.mxu1 %v5898_v7  ;;  %v3908_v44 = vld [vmem:[%s7034_s1 + $0x88] sm:$0xff]  ;;  %v3907_v46 = vld [vmem:[%s7034_s1 + $0x80] sm:$0xff]  ;;  %v3946_v48 = vld [vmem:[%s7034_s1 + $0x178] sm:$0xff] }
  0x35   :  { %4608 = vmatpush3.msra.mxu0 %v5898_v7  ;;  %4609 = vmatprep.mubr.msk.f32.mxu0 %vm104_vm0, %v100_v8  ;;  %v203_v45 = vld [vmem:[%s7034_s1 + $0x8] sm:$0xff]  ;;  %v202_v47 = vld [vmem:[%s7034_s1] sm:$0xff]  ;;  %v3945_v53 = vld [vmem:[%s7034_s1 + $0x170] sm:$0xff] }
  0x36   :  { %4630 = vmatpush3.msra.mxu1 %v5898_v7  ;;  %4631 = vmatprep.mubr.msk.f32.mxu1 %vm104_vm0, %v3899_v9  ;;  %v3923_v58 = vld [vmem:[%s7038_s5 + $0x40] sm:$0xff]  ;;  %v3944_v59 = vld [vmem:[%s7034_s1 + $0x168] sm:$0xff]  ;;  %v3942_v61 = vld [vmem:[%s7034_s1 + $0x158] sm:$0xff] }
  0x37   :  { %4610 = vmatmul.mubr.msk.f32.vlgmr.msra.gmra.mxu0 %vm104_vm0, %v101_v10  ;;  %4632 = vmatmul.mubr.msk.f32.vlgmr.msra.gmra.mxu1 %vm104_vm0, %v3900_v11  ;;  %v3943_v60 = vld [vmem:[%s7034_s1 + $0x160] sm:$0xff]  ;;  %v3941_v62 = vld [vmem:[%s7034_s1 + $0x150] sm:$0xff]  ;;  %v3924_v63 = vld [vmem:[%s7038_s5 + $0x48] sm:$0xff] }
  0x38   :  { %4612 = vmatprep.mubr.msk.f32.mxu0 %vm104_vm0, %v102_v12  ;;  %4634 = vmatprep.mubr.msk.f32.mxu1 %vm104_vm0, %v3901_v13  ;;  %v3925_v8 = vld [vmem:[%s7038_s5 + $0x50] sm:$0xff]  ;;  %v3940_v9 = vld [vmem:[%s7034_s1 + $0x148] sm:$0xff]  ;;  %v3926_v10 = vld [vmem:[%s7038_s5 + $0x58] sm:$0xff] }
  0x39   :  { %4637 = vmatprep.subr.mxu0 %v3922_v14  ;;  %4675 = vmatprep.subr.mxu1 %v217_v15  ;;  %v3947_v11 = vld [vmem:[%s7038_s5 + $0x60] sm:$0xff]  ;;  %v3936_v12 = vld [vmem:[%s7034_s1 + $0x128] sm:$0xff] }
  0x3a   :  { %4638 = vmatpush3.msra.mxu0 %v3922_v14  ;;  %4676 = vmatpush3.msra.mxu1 %v217_v15  ;;  %v3968_v13 = vld [vmem:[%s7034_s1 + $0x1e8] sm:$0xff]  ;;  %v3935_v14 = vld [vmem:[%s7034_s1 + $0x120] sm:$0xff] }
  0x3b   :  { %4613 = vmatmul.mubr.msk.f32.gmra.mxu0 %vm104_vm0, %v103_v16  ;;  %4635 = vmatmul.mubr.msk.f32.gmra.mxu1 %vm104_vm0, %v3902_v17  ;;  %v3967_v15 = vld [vmem:[%s7034_s1 + $0x1e0] sm:$0xff]  ;;  %v3934_v16 = vld [vmem:[%s7034_s1 + $0x118] sm:$0xff] }
  0x3c   :  { %4639 = vmatprep.subr.mxu0 %v3921_v18  ;;  %4677 = vmatprep.subr.mxu1 %v216_v19  ;;  %v3966_v17 = vld [vmem:[%s7034_s1 + $0x1d8] sm:$0xff] }
  0x3d   :  { %4640 = vmatpush3.msra.mxu0 %v3921_v18  ;;  %4678 = vmatpush3.msra.mxu1 %v216_v19  ;;  %v3933_v18 = vld [vmem:[%s7034_s1 + $0x110] sm:$0xff] }
  0x3e   :  { %4641 = vmatprep.subr.mxu0 %v3920_v20  ;;  %4679 = vmatprep.subr.mxu1 %v215_v21  ;;  %v3965_v19 = vld [vmem:[%s7034_s1 + $0x1d0] sm:$0xff] }
  0x3f   :  { %4642 = vmatpush3.msra.mxu0 %v3920_v20  ;;  %4680 = vmatpush3.msra.mxu1 %v215_v21  ;;  %v3932_v20 = vld [vmem:[%s7034_s1 + $0x108] sm:$0xff] }
  0x40   :  { %4643 = vmatprep.subr.mxu0 %v3919_v22  ;;  %4681 = vmatprep.subr.mxu1 %v214_v23  ;;  %v3964_v21 = vld [vmem:[%s7034_s1 + $0x1c8] sm:$0xff] }
  0x41   :  { %4644 = vmatpush3.msra.mxu0 %v3919_v22  ;;  %4682 = vmatpush3.msra.mxu1 %v214_v23  ;;  %v3931_v22 = vld [vmem:[%s7034_s1 + $0x100] sm:$0xff] }
  0x42   :  { %4645 = vmatprep.subr.mxu0 %v3918_v24  ;;  %4683 = vmatprep.subr.mxu1 %v213_v25  ;;  %v3963_v23 = vld [vmem:[%s7034_s1 + $0x1c0] sm:$0xff] }
  0x43   :  { %4646 = vmatpush3.msra.mxu0 %v3918_v24  ;;  %4684 = vmatpush3.msra.mxu1 %v213_v25  ;;  %v3962_v24 = vld [vmem:[%s7034_s1 + $0x1b8] sm:$0xff]  ;;  %v3961_v25 = vld [vmem:[%s7034_s1 + $0x1b0] sm:$0xff] }
  0x44   :  { %4647 = vmatprep.subr.mxu0 %v3917_v26  ;;  %4685 = vmatprep.subr.mxu1 %v212_v27 }
  0x45   :  { %4648 = vmatpush3.msra.mxu0 %v3917_v26  ;;  %4686 = vmatpush3.msra.mxu1 %v212_v27  ;;  %v3960_v26 = vld [vmem:[%s7034_s1 + $0x1a8] sm:$0xff]  ;;  %v3959_v27 = vld [vmem:[%s7034_s1 + $0x1a0] sm:$0xff] }
  0x46   :  { %4649 = vmatprep.subr.mxu0 %v3916_v28  ;;  %4687 = vmatprep.subr.mxu1 %v211_v29 }
  0x47   :  { %4650 = vmatpush3.msra.mxu0 %v3916_v28  ;;  %4688 = vmatpush3.msra.mxu1 %v211_v29  ;;  %v3958_v28 = vld [vmem:[%s7034_s1 + $0x198] sm:$0xff]  ;;  %v3957_v29 = vld [vmem:[%s7034_s1 + $0x190] sm:$0xff] }
  0x48   :  { %4651 = vmatprep.subr.mxu0 %v3915_v30  ;;  %4689 = vmatprep.subr.mxu1 %v210_v31 }
  0x49   :  { %4652 = vmatpush3.msra.mxu0 %v3915_v30  ;;  %4690 = vmatpush3.msra.mxu1 %v210_v31  ;;  %v3956_v30 = vld [vmem:[%s7034_s1 + $0x188] sm:$0xff]  ;;  %v3955_v31 = vld [vmem:[%s7034_s1 + $0x180] sm:$0xff] }
  0x4a   :  { %4653 = vmatprep.subr.mxu0 %v3914_v32  ;;  %4691 = vmatprep.subr.mxu1 %v209_v33 }
  0x4b   :  { %4654 = vmatpush3.msra.mxu0 %v3914_v32  ;;  %4692 = vmatpush3.msra.mxu1 %v209_v33 }
  0x4c   :  { %4655 = vmatprep.subr.mxu0 %v3913_v34  ;;  %4693 = vmatprep.subr.mxu1 %v208_v35 }
  0x4d   :  { %4656 = vmatpush3.msra.mxu0 %v3913_v34  ;;  %4694 = vmatpush3.msra.mxu1 %v208_v35 }
  0x4e   :  { %4657 = vmatprep.subr.mxu0 %v3912_v36  ;;  %4695 = vmatprep.subr.mxu1 %v207_v37 }
  0x4f   :  { %4658 = vmatpush3.msra.mxu0 %v3912_v36  ;;  %4696 = vmatpush3.msra.mxu1 %v207_v37 }
  0x50   :  { %4659 = vmatprep.subr.mxu0 %v3911_v38  ;;  %4697 = vmatprep.subr.mxu1 %v206_v39 }
  0x51   :  { %4660 = vmatpush3.msra.mxu0 %v3911_v38  ;;  %4698 = vmatpush3.msra.mxu1 %v206_v39 }
  0x52   :  { %4661 = vmatprep.subr.mxu0 %v3910_v40  ;;  %4699 = vmatprep.subr.mxu1 %v205_v41 }
  0x53   :  { %4662 = vmatpush3.msra.mxu0 %v3910_v40  ;;  %4700 = vmatpush3.msra.mxu1 %v205_v41 }
  0x54   :  { %4663 = vmatprep.subr.mxu0 %v3909_v42  ;;  %4701 = vmatprep.subr.mxu1 %v204_v43 }
  0x55   :  { %4664 = vmatpush3.msra.mxu0 %v3909_v42  ;;  %4702 = vmatpush3.msra.mxu1 %v204_v43 }
  0x56   :  { %4665 = vmatprep.subr.mxu0 %v3908_v44  ;;  %4703 = vmatprep.subr.mxu1 %v203_v45 }
  0x57   :  { %4666 = vmatpush3.msra.mxu0 %v3908_v44  ;;  %4704 = vmatpush3.msra.mxu1 %v203_v45  ;;  %v960_v44 = vld [vmem:[#allocation7 + $0x78] sm:$0xff]  ;;  %v5744_v45 = vmov 0.0  }
  0x58   :  { %4667 = vmatprep.subr.mxu0 %v3907_v46  ;;  %4705 = vmatprep.subr.mxu1 %v202_v47 }
  0x59   :  { %4668 = vmatpush3.msra.mxu0 %v3907_v46  ;;  %4706 = vmatpush3.msra.mxu1 %v202_v47  ;;  %v959_v46 = vld [vmem:[#allocation7 + $0x70] sm:$0xff]  ;;  %v958_v47 = vld [vmem:[#allocation7 + $0x68] sm:$0xff] }
  0x5a   :  { %4713 = vmatprep.subr.mxu0 %v5839_v0  ;;  %4735 = vmatprep.subr.mxu1 %v3946_v48 }
  0xf7   :  { %v4611_v49 = vpop.f32.mrf.mxu0  ;;  %v4633_v50 = vpop.f32.mrf.mxu1 }
  0xf9   :  { %v183_v51 = vpop.f32.mrf.mxu0  ;;  %v301_v52 = vpop.f32.mrf.mxu1 }
  0xfa   :  { %4669 = vmatprep.mubr.f32.mxu0 %v301_v52  ;;  %4707 = vmatprep.mubr.f32.mxu1 %v183_v51  ;;  %v954_v51 = vld [vmem:[#allocation7 + $0x48] sm:$0xff]  ;;  %v953_v52 = vld [vmem:[#allocation7 + $0x40] sm:$0xff] }
  0xfb   :  { %4670 = vmatmul.mubr.f32.vlgmr.msra.gmra.mxu0 %v4633_v50  ;;  %4708 = vmatmul.mubr.f32.vlgmr.msra.gmra.mxu1 %v4611_v49  ;;  %v4614_v54 = vpop.f32.mrf.mxu0  ;;  %v4636_v55 = vpop.f32.mrf.mxu1  ;;  %v956_v49 = vld [vmem:[#allocation7 + $0x58] sm:$0xff]  ;;  %v955_v50 = vld [vmem:[#allocation7 + $0x50] sm:$0xff] }
  0xfc   :  { %4714 = vmatpush3.msra.mxu0 %v5839_v0  ;;  %4736 = vmatpush3.msra.mxu1 %v3946_v48  ;;  %v957_v48 = vld [vmem:[#allocation7 + $0x60] sm:$0xff] }
  0xfd   :  { %4715 = vmatprep.subr.mxu0 %v5844_v1  ;;  %v193_v56 = vpop.f32.mrf.mxu0  ;;  %v311_v57 = vpop.f32.mrf.mxu1  ;;  %4737 = vmatprep.subr.mxu1 %v3945_v53 }
  0xfe   :  { %4716 = vmatpush3.msra.mxu0 %v5844_v1  ;;  %4672 = vmatprep.mubr.f32.mxu0 %v311_v57  ;;  %v948_v57 = vld [vmem:[#allocation7 + $0x18] sm:$0xff] }
  0xff   :  { %4717 = vmatprep.subr.mxu0 %v5853_v2  ;;  %4710 = vmatprep.mubr.f32.mxu1 %v193_v56  ;;  %v949_v56 = vld [vmem:[#allocation7 + $0x20] sm:$0xff] }
 0x100   :  { %4718 = vmatpush3.msra.mxu0 %v5853_v2  ;;  %4711 = vmatmul.mubr.f32.gmra.mxu1 %v4614_v54  ;;  %v951_v54 = vld [vmem:[#allocation7 + $0x30] sm:$0xff] }
 0x101   :  { %4719 = vmatprep.subr.mxu0 %v5862_v3  ;;  %4673 = vmatmul.mubr.f32.gmra.mxu0 %v4636_v55  ;;  %v950_v55 = vld [vmem:[#allocation7 + $0x28] sm:$0xff] }
 0x102   :  { %4720 = vmatpush3.msra.mxu0 %v5862_v3  ;;  %4729 = vmatprep.mubr.msk.f32.mxu0 %vm104_vm0, %v3923_v58  ;;  %v947_v58 = vld [vmem:[#allocation7 + $0x10] sm:$0xff] }
 0x103   :  { %4721 = vmatprep.subr.mxu0 %v5871_v4  ;;  %4738 = vmatpush3.msra.mxu1 %v3945_v53  ;;  %v952_v53 = vld [vmem:[#allocation7 + $0x38] sm:$0xff] }
 0x104   :  { %4722 = vmatpush3.msra.mxu0 %v5871_v4  ;;  %4739 = vmatprep.subr.mxu1 %v3944_v59 }
 0x105   :  { %4723 = vmatprep.subr.mxu0 %v5880_v5  ;;  %4740 = vmatpush3.msra.mxu1 %v3944_v59  ;;  %v946_v59 = vld [vmem:[#allocation7 + $0x8] sm:$0xff] }
 0x106   :  { %4724 = vmatpush3.msra.mxu0 %v5880_v5  ;;  %4741 = vmatprep.subr.mxu1 %v3943_v60 }
 0x107   :  { %4725 = vmatprep.subr.mxu0 %v5889_v6  ;;  %4742 = vmatpush3.msra.mxu1 %v3943_v60  ;;  %v945_v60 = vld [vmem:[#allocation7] sm:$0xff] }
 0x108   :  { %4726 = vmatpush3.msra.mxu0 %v5889_v6  ;;  %4743 = vmatprep.subr.mxu1 %v3942_v61 }
 0x109   :  { %4727 = vmatprep.subr.mxu0 %v5898_v7  ;;  %4744 = vmatpush3.msra.mxu1 %v3942_v61 }
 0x10a   :  { %4728 = vmatpush3.msra.mxu0 %v5898_v7  ;;  %4745 = vmatprep.subr.mxu1 %v3941_v62 }
 0x10b   :  { %4730 = vmatmul.mubr.msk.f32.vlgmr.msra.gmra.mxu0 %vm104_vm0, %v3924_v63  ;;  %4773 = vmatprep.subr.mxu0 %v5839_v0 }
 0x10c   :  { %4774 = vmatpush3.msra.mxu0 %v5839_v0  ;;  %4732 = vmatprep.mubr.msk.f32.mxu0 %vm104_vm0, %v3925_v8  ;;  %v3948_v0 = vld [vmem:[%s7038_s5 + $0x68] sm:$0xff] }
 0x10d   :  { %4775 = vmatprep.subr.mxu0 %v5844_v1  ;;  %4746 = vmatpush3.msra.mxu1 %v3941_v62 }
 0x10e   :  { %4776 = vmatpush3.msra.mxu0 %v5844_v1  ;;  %4747 = vmatprep.subr.mxu1 %v3940_v9  ;;  %v3949_v1 = vld [vmem:[%s7038_s5 + $0x70] sm:$0xff] }
 0x10f   :  { %4733 = vmatmul.mubr.msk.f32.gmra.mxu0 %vm104_vm0, %v3926_v10  ;;  %4777 = vmatprep.subr.mxu0 %v5853_v2 }
 0x110   :  { %4778 = vmatpush3.msra.mxu0 %v5853_v2  ;;  %4789 = vmatprep.mubr.msk.f32.mxu0 %vm104_vm0, %v3947_v11  ;;  %v3950_v2 = vld [vmem:[%s7038_s5 + $0x78] sm:$0xff] }
 0x111   :  { %4779 = vmatprep.subr.mxu0 %v5862_v3  ;;  %4748 = vmatpush3.msra.mxu1 %v3940_v9 }
 0x112   :  { %4780 = vmatpush3.msra.mxu0 %v5862_v3  ;;  %v3939_v3 = vld [vmem:[%s7034_s1 + $0x140] sm:$0xff] }
 0x113   :  { %4781 = vmatprep.subr.mxu0 %v5871_v4  ;;  %4749 = vmatprep.subr.mxu1 %v3939_v3 }
 0x114   :  { %4782 = vmatpush3.msra.mxu0 %v5871_v4  ;;  %4750 = vmatpush3.msra.mxu1 %v3939_v3  ;;  %v3938_v4 = vld [vmem:[%s7034_s1 + $0x138] sm:$0xff] }
 0x115   :  { %4783 = vmatprep.subr.mxu0 %v5880_v5  ;;  %4751 = vmatprep.subr.mxu1 %v3938_v4 }
 0x116   :  { %4784 = vmatpush3.msra.mxu0 %v5880_v5  ;;  %v3970_v5 = vld [vmem:[%s7034_s1 + $0x1f8] sm:$0xff]  ;;  %4752 = vmatpush3.msra.mxu1 %v3938_v4 }
 0x117   :  { %4785 = vmatprep.subr.mxu0 %v5889_v6 }
 0x118   :  { %4786 = vmatpush3.msra.mxu0 %v5889_v6  ;;  %v3937_v6 = vld [vmem:[%s7034_s1 + $0x130] sm:$0xff] }
 0x119   :  { %4787 = vmatprep.subr.mxu0 %v5898_v7  ;;  %4753 = vmatprep.subr.mxu1 %v3937_v6 }
 0x11a   :  { %4788 = vmatpush3.msra.mxu0 %v5898_v7  ;;  %v3969_v7 = vld [vmem:[%s7034_s1 + $0x1f0] sm:$0xff]  ;;  %4754 = vmatpush3.msra.mxu1 %v3937_v6 }
 0x11b   :  { %4790 = vmatmul.mubr.msk.f32.vlgmr.msra.gmra.mxu0 %vm104_vm0, %v3948_v0  ;;  %4795 = vmatprep.subr.mxu0 %v3970_v5 }
 0x11c   :  { %4792 = vmatprep.mubr.msk.f32.mxu0 %vm104_vm0, %v3949_v1  ;;  %4796 = vmatpush3.msra.mxu0 %v3970_v5 }
 0x11d   :  { %4797 = vmatprep.subr.mxu0 %v3969_v7  ;;  %4755 = vmatprep.subr.mxu1 %v3936_v12 }
 0x11e   :  { %4798 = vmatpush3.msra.mxu0 %v3969_v7  ;;  %4756 = vmatpush3.msra.mxu1 %v3936_v12 }
 0x11f   :  { %4793 = vmatmul.mubr.msk.f32.gmra.mxu0 %vm104_vm0, %v3950_v2  ;;  %4799 = vmatprep.subr.mxu0 %v3968_v13 }
 0x120   :  { %4800 = vmatpush3.msra.mxu0 %v3968_v13  ;;  %4757 = vmatprep.subr.mxu1 %v3935_v14 }
 0x121   :  { %4801 = vmatprep.subr.mxu0 %v3967_v15  ;;  %4758 = vmatpush3.msra.mxu1 %v3935_v14 }
 0x122   :  { %4802 = vmatpush3.msra.mxu0 %v3967_v15  ;;  %4759 = vmatprep.subr.mxu1 %v3934_v16 }
 0x123   :  { %4803 = vmatprep.subr.mxu0 %v3966_v17  ;;  %4760 = vmatpush3.msra.mxu1 %v3934_v16 }
 0x124   :  { %4804 = vmatpush3.msra.mxu0 %v3966_v17  ;;  %4761 = vmatprep.subr.mxu1 %v3933_v18 }
 0x125   :  { %4805 = vmatprep.subr.mxu0 %v3965_v19  ;;  %4762 = vmatpush3.msra.mxu1 %v3933_v18 }
 0x126   :  { %4806 = vmatpush3.msra.mxu0 %v3965_v19  ;;  %4763 = vmatprep.subr.mxu1 %v3932_v20 }
 0x127   :  { %4807 = vmatprep.subr.mxu0 %v3964_v21  ;;  %4764 = vmatpush3.msra.mxu1 %v3932_v20 }
 0x128   :  { %4808 = vmatpush3.msra.mxu0 %v3964_v21  ;;  %4765 = vmatprep.subr.mxu1 %v3931_v22 }
 0x129   :  { %4809 = vmatprep.subr.mxu0 %v3963_v23  ;;  %4766 = vmatpush3.msra.mxu1 %v3931_v22 }
 0x12a   :  { %4810 = vmatpush3.msra.mxu0 %v3963_v23  ;;  %4833 = vmatprep.subr.mxu1 %v5744_v45 }
 0x12b   :  { %4811 = vmatprep.subr.mxu0 %v3962_v24 }
 0x12c   :  { %4812 = vmatpush3.msra.mxu0 %v3962_v24 }
 0x12d   :  { %4813 = vmatprep.subr.mxu0 %v3961_v25 }
 0x12e   :  { %4814 = vmatpush3.msra.mxu0 %v3961_v25 }
 0x12f   :  { %4815 = vmatprep.subr.mxu0 %v3960_v26 }
 0x130   :  { %4816 = vmatpush3.msra.mxu0 %v3960_v26 }
 0x131   :  { %4817 = vmatprep.subr.mxu0 %v3959_v27 }
 0x132   :  { %4818 = vmatpush3.msra.mxu0 %v3959_v27 }
 0x133   :  { %4819 = vmatprep.subr.mxu0 %v3958_v28 }
 0x134   :  { %4820 = vmatpush3.msra.mxu0 %v3958_v28 }
 0x135   :  { %4821 = vmatprep.subr.mxu0 %v3957_v29 }
 0x136   :  { %4822 = vmatpush3.msra.mxu0 %v3957_v29 }
 0x137   :  { %4823 = vmatprep.subr.mxu0 %v3956_v30 }
 0x138   :  { %4824 = vmatpush3.msra.mxu0 %v3956_v30 }
 0x139   :  { %4825 = vmatprep.subr.mxu0 %v3955_v31 }
 0x13a   :  { %4826 = vmatpush3.msra.mxu0 %v3955_v31 }
 0x13b   :  { %4868 = vmatprep.subr.mxu0 %v5744_v45 }
 0x1bb   :  { %v6196_v32 = vpop.f32.mrf.mxu0  ;;  %v4709_v61 = vpop.f32.mrf.mxu1 }
 0x1bc   :  { %v494_v0 = vadd.f32 %v4709_v61, %v6196_v32 }
 0x1bd   :  { %v6198_v33 = vpop.f32.mrf.mxu0  ;;  %v488_v62 = vpop.f32.mrf.mxu1 }
 0x1be   :  { %v489_v1 = vadd.f32 %v488_v62, %v6198_v33 }
 0x1c0   :  { %v4712_v63 = vpop.f32.mrf.mxu1 }
 0x1c1   :  { %v6200_v34 = vpop.f32.mrf.mxu0 }
 0x1c2   :  { %v498_v8 = vpop.f32.mrf.mxu1  ;;  %v504_v7 = vadd.f32 %v4712_v63, %v6200_v34 }
 0x1c3   :  { %v6202_v35 = vpop.f32.mrf.mxu0 }
 0x1c4   :  { %v499_v12 = vadd.f32 %v498_v8, %v6202_v35 }
 0x1cb   :  { %v4731_v36 = vpop.f32.mrf.mxu0 }
 0x1cd   :  { %v590_v37 = vpop.f32.mrf.mxu0 }
 0x1ce   :  { %4767 = vmatprep.mubr.f32.mxu1 %v590_v37 }
 0x1cf   :  { %v4734_v38 = vpop.f32.mrf.mxu0  ;;  %4768 = vmatmul.mubr.f32.vlgmr.msra.gmra.mxu1 %v4731_v36 }
 0x1d0   :  { %4834 = vmatpush3.msra.mxu1 %v960_v44 }
 0x1d1   :  { %v600_v39 = vpop.f32.mrf.mxu0  ;;  %4835 = vmatprep.subr.mxu1 %v5744_v45 }
 0x1d2   :  { %4770 = vmatprep.mubr.f32.mxu1 %v600_v39  ;;  %4836 = vmatpush3.msra.mxu1 %v959_v46 }
 0x1d3   :  { %4771 = vmatmul.mubr.f32.gmra.mxu1 %v4734_v38  ;;  %4837 = vmatprep.subr.mxu1 %v5744_v45 }
 0x1d4   :  { %4838 = vmatpush3.msra.mxu1 %v958_v47  ;;  %4865 = vmatprep.mubr.msk.f32.mxu1 %vm5745_vm1, %v5744_v45 }
 0x1d5   :  { %4839 = vmatprep.subr.mxu1 %v5744_v45 }
 0x1d6   :  { %4840 = vmatpush3.msra.mxu1 %v957_v48 }
 0x1d7   :  { %4841 = vmatprep.subr.mxu1 %v5744_v45 }
 0x1d8   :  { %4842 = vmatpush3.msra.mxu1 %v956_v49 }
 0x1d9   :  { %4843 = vmatprep.subr.mxu1 %v5744_v45 }
 0x1da   :  { %4844 = vmatpush3.msra.mxu1 %v955_v50 }
 0x1db   :  { %v4791_v40 = vpop.f32.mrf.mxu0  ;;  %4845 = vmatprep.subr.mxu1 %v5744_v45 }
 0x1dc   :  { %4846 = vmatpush3.msra.mxu1 %v954_v51 }
 0x1dd   :  { %v798_v41 = vpop.f32.mrf.mxu0  ;;  %4847 = vmatprep.subr.mxu1 %v5744_v45 }
 0x1de   :  { %4827 = vmatprep.mubr.f32.mxu0 %v798_v41  ;;  %4848 = vmatpush3.msra.mxu1 %v953_v52 }
 0x1df   :  { %v4794_v42 = vpop.f32.mrf.mxu0  ;;  %4828 = vmatmul.mubr.f32.vlgmr.msra.gmra.mxu0 %v4791_v40  ;;  %4849 = vmatprep.subr.mxu1 %v5744_v45 }
 0x1e0   :  { %4869 = vmatpush3.msra.mxu0 %v960_v44  ;;  %4850 = vmatpush3.msra.mxu1 %v952_v53  ;;  %v1230_v44 = vld [vmem:[%s7035_s2 + $0x70] sm:$0xff] }
 0x1e1   :  { %v808_v43 = vpop.f32.mrf.mxu0  ;;  %4870 = vmatprep.subr.mxu0 %v5744_v45  ;;  %4851 = vmatprep.subr.mxu1 %v5744_v45 }
 0x1e2   :  { %4830 = vmatprep.mubr.f32.mxu0 %v808_v43  ;;  %4871 = vmatpush3.msra.mxu0 %v959_v46  ;;  %v1231_v43 = vld [vmem:[%s7035_s2 + $0x78] sm:$0xff]  ;;  %v1229_v46 = vld [vmem:[%s7035_s2 + $0x68] sm:$0xff] }
 0x1e3   :  { %4831 = vmatmul.mubr.f32.gmra.mxu0 %v4794_v42  ;;  %4872 = vmatprep.subr.mxu0 %v5744_v45 }
 0x1e4   :  { %4873 = vmatpush3.msra.mxu0 %v958_v47  ;;  %4852 = vmatpush3.msra.mxu1 %v951_v54  ;;  %v1228_v47 = vld [vmem:[%s7035_s2 + $0x60] sm:$0xff] }
 0x1e5   :  { %4874 = vmatprep.subr.mxu0 %v5744_v45  ;;  %4853 = vmatprep.subr.mxu1 %v5744_v45 }
 0x1e6   :  { %4875 = vmatpush3.msra.mxu0 %v957_v48  ;;  %4854 = vmatpush3.msra.mxu1 %v950_v55  ;;  %v1227_v48 = vld [vmem:[%s7035_s2 + $0x58] sm:$0xff] }
 0x1e7   :  { %4876 = vmatprep.subr.mxu0 %v5744_v45  ;;  %4855 = vmatprep.subr.mxu1 %v5744_v45 }
 0x1e8   :  { %4877 = vmatpush3.msra.mxu0 %v956_v49  ;;  %4856 = vmatpush3.msra.mxu1 %v949_v56  ;;  %v1226_v49 = vld [vmem:[%s7035_s2 + $0x50] sm:$0xff] }
 0x1e9   :  { %4878 = vmatprep.subr.mxu0 %v5744_v45  ;;  %4857 = vmatprep.subr.mxu1 %v5744_v45 }
 0x1ea   :  { %4879 = vmatpush3.msra.mxu0 %v955_v50  ;;  %4858 = vmatpush3.msra.mxu1 %v948_v57  ;;  %v1225_v50 = vld [vmem:[%s7035_s2 + $0x48] sm:$0xff] }
 0x1eb   :  { %4880 = vmatprep.subr.mxu0 %v5744_v45  ;;  %4859 = vmatprep.subr.mxu1 %v5744_v45 }
 0x1ec   :  { %4881 = vmatpush3.msra.mxu0 %v954_v51  ;;  %4860 = vmatpush3.msra.mxu1 %v947_v58  ;;  %v1224_v51 = vld [vmem:[%s7035_s2 + $0x40] sm:$0xff] }
 0x1ed   :  { %4882 = vmatprep.subr.mxu0 %v5744_v45  ;;  %4861 = vmatprep.subr.mxu1 %v5744_v45 }
 0x1ee   :  { %4883 = vmatpush3.msra.mxu0 %v953_v52  ;;  %4862 = vmatpush3.msra.mxu1 %v946_v59  ;;  %v1223_v52 = vld [vmem:[%s7035_s2 + $0x38] sm:$0xff] }
 0x1ef   :  { %4884 = vmatprep.subr.mxu0 %v5744_v45  ;;  %4863 = vmatprep.subr.mxu1 %v5744_v45 }
 0x1f0   :  { %4885 = vmatpush3.msra.mxu0 %v952_v53  ;;  %4864 = vmatpush3.msra.mxu1 %v945_v60  ;;  %v1222_v53 = vld [vmem:[%s7035_s2 + $0x30] sm:$0xff] }
 0x1f1   :  { %4886 = vmatprep.subr.mxu0 %v5744_v45  ;;  %4900 = vmatprep.mubr.msk.f32.mxu0 %vm5745_vm1, %v5744_v45 }
 0x1f2   :  { %4887 = vmatpush3.msra.mxu0 %v951_v54  ;;  %v1221_v54 = vld [vmem:[%s7035_s2 + $0x28] sm:$0xff] }
 0x1f3   :  { %4888 = vmatprep.subr.mxu0 %v5744_v45 }
 0x1f4   :  { %4889 = vmatpush3.msra.mxu0 %v950_v55  ;;  %v1220_v55 = vld [vmem:[%s7035_s2 + $0x20] sm:$0xff] }
 0x1f5   :  { %4890 = vmatprep.subr.mxu0 %v5744_v45 }
 0x1f6   :  { %4891 = vmatpush3.msra.mxu0 %v949_v56  ;;  %v1219_v56 = vld [vmem:[%s7035_s2 + $0x18] sm:$0xff] }
 0x1f7   :  { %4892 = vmatprep.subr.mxu0 %v5744_v45 }
 0x1f8   :  { %4893 = vmatpush3.msra.mxu0 %v948_v57  ;;  %v1218_v57 = vld [vmem:[%s7035_s2 + $0x10] sm:$0xff] }
 0x1f9   :  { %4894 = vmatprep.subr.mxu0 %v5744_v45 }
 0x1fa   :  { %4895 = vmatpush3.msra.mxu0 %v947_v58  ;;  %v1217_v58 = vld [vmem:[%s7035_s2 + $0x8] sm:$0xff] }
 0x1fb   :  { %4896 = vmatprep.subr.mxu0 %v5744_v45 }
 0x1fc   :  { %4897 = vmatpush3.msra.mxu0 %v946_v59  ;;  %v1216_v59 = vld [vmem:[%s7035_s2] sm:$0xff] }
 0x1fd   :  { %4898 = vmatprep.subr.mxu0 %v5744_v45 }
 0x1fe   :  { %4899 = vmatpush3.msra.mxu0 %v945_v60  ;;  %v1132_v60 = vld [vmem:[%s7039_s6] sm:$0xff] }
 0x1ff   :  { %4960 = vmatprep.subr.mxu0 %v1231_v43 }
 0x28f   :  { %v4769_v9 = vpop.f32.mrf.mxu1 }
 0x290   :  { %v712_v3 = vadd.f32 %v4769_v9, %v494_v0  ;;  %v1110_v0 = vlaneseq }
 0x291   :  { %v692_v10 = vpop.f32.mrf.mxu1 }
 0x292   :  { %v711_v4 = vadd.f32 %v692_v10, %v489_v1  ;;  %v1111_v1 = vshrl.u32 %v1110_v0, 7  ;;  %v4007_v0 = vld [vmem:[%s7035_s2 + $0x150] sm:$0xff] }
 0x293   :  { %v4772_v11 = vpop.f32.mrf.mxu1 }
 0x294   :  { %v714_v16 = vadd.f32 %v4772_v11, %v504_v7 }
 0x295   :  { %v702_v5 = vpop.f32.mrf.mxu1 }
 0x296   :  { %v713_v17 = vadd.f32 %v702_v5, %v499_v12 }
 0x29f   :  { %v4829_v2 = vpop.f32.mrf.mxu0 }
 0x2a0   :  { %v6244_v13 = vadd.f32 %v4829_v2, %v712_v3  ;;  %v1105_v2 = vld [vmem:[%s7044_s11] sm:$0x1]  ;;  %v6319_v3 = vsub.s32 0, %v1111_v1  ;;  %v4006_v1 = vld [vmem:[%s7035_s2 + $0x148] sm:$0xff] }
 0x2a1   :  { %v900_v6 = vpop.f32.mrf.mxu0 }
 0x2a2   :  { %v6246_v14 = vadd.f32 %v900_v6, %v711_v4  ;;  %v933_v20 = vmul.f32 %v6244_v13, %v6244_v13  ;;  %v1107_v6 = vld [vmem:[%s7045_s12] sm:$0x1] }
 0x2a3   :  { %v4832_v15 = vpop.f32.mrf.mxu0 }
 0x2a4   :  { %v932_v18 = vmul.f32 %v6246_v14, %v6246_v14  ;;  %v923_v21 = vadd.f32 %v6244_v13, %v6246_v14  ;;  %v6254_v22 = vadd.f32 %v4832_v15, %v714_v16 }
 0x2a5   :  { %v910_v19 = vpop.f32.mrf.mxu0 }
 0x2a6   :  { %v6256_v23 = vadd.f32 %v910_v19, %v713_v17  ;;  %v936_v24 = vadd.f32 %v933_v20, %v932_v18  ;;  %v935_v27 = vmul.f32 %v6254_v22, %v6254_v22 }
 0x2a8   :  { %v924_v25 = vadd.f32 %v923_v21, %v6256_v23  ;;  %v934_v26 = vmul.f32 %v6256_v23, %v6256_v23 }
 0x2aa   :  { %v925_v28 = vadd.f32 %v924_v25, %v6254_v22  ;;  %v937_v29 = vadd.f32 %v936_v24, %v934_v26 }
 0x2ac   :  { %v926_v30 = vrot.slane %v925_v28, 4  ;;  %v938_v31 = vadd.f32 %v937_v29, %v935_v27  ;;  %v3974_v29 = vld [vmem:[%s7039_s6 + $0x18] sm:$0xff] }
 0x2ae   :  { %v927_v32 = vadd.f32 %v926_v30, %v925_v28  ;;  %v939_v33 = vrot.slane %v938_v31, 4  ;;  %v3992_v30 = vld [vmem:[%s7035_s2 + $0xf8] sm:$0xff] }
 0x2b0   :  { %v928_v34 = vrot.slane %v927_v32, 2  ;;  %v940_v35 = vadd.f32 %v939_v33, %v938_v31  ;;  %v3991_v31 = vld [vmem:[%s7035_s2 + $0xf0] sm:$0xff]  ;;  %v3989_v33 = vld [vmem:[%s7035_s2 + $0xe0] sm:$0xff] }
 0x2b2   :  { %v929_v36 = vadd.f32 %v928_v34, %v927_v32  ;;  %v941_v37 = vrot.slane %v940_v35, 2  ;;  %v3990_v32 = vld [vmem:[%s7035_s2 + $0xe8] sm:$0xff]  ;;  %v3988_v34 = vld [vmem:[%s7035_s2 + $0xd8] sm:$0xff] }
 0x2b4   :  { %v930_v38 = vrot.slane %v929_v36, 1  ;;  %v942_v39 = vadd.f32 %v941_v37, %v940_v35  ;;  %v3987_v35 = vld [vmem:[%s7035_s2 + $0xd0] sm:$0xff]  ;;  %v3985_v37 = vld [vmem:[%s7035_s2 + $0xc0] sm:$0xff] }
 0x2b6   :  { %v931_v40 = vadd.f32 %v930_v38, %v929_v36  ;;  %v943_v41 = vrot.slane %v942_v39, 1  ;;  %v3986_v36 = vld [vmem:[%s7035_s2 + $0xc8] sm:$0xff]  ;;  %v3984_v38 = vld [vmem:[%s7035_s2 + $0xb8] sm:$0xff] }
 0x2b8   :  { %4866 = vmatmul.mubr.f32.vlgmr.msra.gmra.mxu1 %v931_v40  ;;  %v944_v42 = vadd.f32 %v943_v41, %v942_v39  ;;  %v3983_v39 = vld [vmem:[%s7035_s2 + $0xb0] sm:$0xff]  ;;  %v3982_v40 = vld [vmem:[%s7035_s2 + $0xa8] sm:$0xff]  ;;  %v3981_v41 = vld [vmem:[%s7035_s2 + $0xa0] sm:$0xff] }
 0x2b9   :  { %4911 = vmatprep.mubr.msk.f32.mxu1 %vm1134_vm2, %v1132_v60  ;;  %v4011_v60 = vld [vmem:[%s7035_s2 + $0x170] sm:$0xff] }
 0x2ba   :  { %4901 = vmatmul.mubr.f32.vlgmr.msra.gmra.mxu0 %v944_v42  ;;  %v3980_v42 = vld [vmem:[%s7035_s2 + $0x98] sm:$0xff] }
 0x2bb   :  { %4961 = vmatpush3.msra.mxu0 %v1231_v43  ;;  %v3979_v43 = vld [vmem:[%s7035_s2 + $0x90] sm:$0xff] }
 0x2bc   :  { %4962 = vmatprep.subr.mxu0 %v1230_v44 }
 0x2bd   :  { %4963 = vmatpush3.msra.mxu0 %v1230_v44  ;;  %v3978_v44 = vld [vmem:[%s7035_s2 + $0x88] sm:$0xff] }
 0x2be   :  { %4964 = vmatprep.subr.mxu0 %v1229_v46 }
 0x2bf   :  { %4965 = vmatpush3.msra.mxu0 %v1229_v46  ;;  %v3977_v46 = vld [vmem:[%s7035_s2 + $0x80] sm:$0xff] }
 0x2c0   :  { %4966 = vmatprep.subr.mxu0 %v1228_v47 }
 0x2c1   :  { %4967 = vmatpush3.msra.mxu0 %v1228_v47 }
 0x2c2   :  { %4968 = vmatprep.subr.mxu0 %v1227_v48 }
 0x2c3   :  { %4969 = vmatpush3.msra.mxu0 %v1227_v48 }
 0x2c4   :  { %4970 = vmatprep.subr.mxu0 %v1226_v49 }
 0x2c5   :  { %4971 = vmatpush3.msra.mxu0 %v1226_v49  ;;  %v4013_v49 = vld [vmem:[%s7039_s6 + $0x30] sm:$0xff] }
 0x2c6   :  { %4972 = vmatprep.subr.mxu0 %v1225_v50 }
 0x2c7   :  { %4973 = vmatpush3.msra.mxu0 %v1225_v50 }
 0x2c8   :  { %4974 = vmatprep.subr.mxu0 %v1224_v51 }
 0x2c9   :  { %4975 = vmatpush3.msra.mxu0 %v1224_v51  ;;  %v4014_v51 = vld [vmem:[%s7039_s6 + $0x38] sm:$0xff] }
 0x2ca   :  { %4976 = vmatprep.subr.mxu0 %v1223_v52 }
 0x2cb   :  { %4977 = vmatpush3.msra.mxu0 %v1223_v52 }
 0x2cc   :  { %4978 = vmatprep.subr.mxu0 %v1222_v53 }
 0x2cd   :  { %4979 = vmatpush3.msra.mxu0 %v1222_v53  ;;  %v3993_v53 = vld [vmem:[%s7039_s6 + $0x20] sm:$0xff] }
 0x2ce   :  { %4980 = vmatprep.subr.mxu0 %v1221_v54 }
 0x2cf   :  { %4981 = vmatpush3.msra.mxu0 %v1221_v54  ;;  %v4032_v54 = vld [vmem:[%s7035_s2 + $0x1f8] sm:$0xff] }
 0x2d0   :  { %4982 = vmatprep.subr.mxu0 %v1220_v55 }
 0x2d1   :  { %4983 = vmatpush3.msra.mxu0 %v1220_v55  ;;  %v4031_v55 = vld [vmem:[%s7035_s2 + $0x1f0] sm:$0xff] }
 0x2d2   :  { %4984 = vmatprep.subr.mxu0 %v1219_v56 }
 0x2d3   :  { %4985 = vmatpush3.msra.mxu0 %v1219_v56  ;;  %v4030_v56 = vld [vmem:[%s7035_s2 + $0x1e8] sm:$0xff] }
 0x2d4   :  { %4986 = vmatprep.subr.mxu0 %v1218_v57 }
 0x2d5   :  { %4987 = vmatpush3.msra.mxu0 %v1218_v57  ;;  %v3994_v57 = vld [vmem:[%s7039_s6 + $0x28] sm:$0xff] }
 0x2d6   :  { %4988 = vmatprep.subr.mxu0 %v1217_v58 }
 0x2d7   :  { %4989 = vmatpush3.msra.mxu0 %v1217_v58  ;;  %v4012_v58 = vld [vmem:[%s7035_s2 + $0x178] sm:$0xff] }
 0x2d8   :  { %4990 = vmatprep.subr.mxu0 %v1216_v59 }
 0x2d9   :  { %4991 = vmatpush3.msra.mxu0 %v1216_v59  ;;  %v4029_v59 = vld [vmem:[%s7035_s2 + $0x1e0] sm:$0xff] }
 0x378   :  { %v1027_v61 = vpop.f32.mrf.mxu1 }
 0x379   :  { %v1101_v62 = vmul.f32 %v1027_v61, %v1027_v61 }
 0x37a   :  { %v4867_v63 = vpop.f32.mrf.mxu1  ;;  %v1097_v8 = vpop.f32.mrf.mxu0 }
 0x37b   :  { %v1102_v9 = vsub.f32 %v1097_v8, %v1101_v62  ;;  %v4010_v62 = vld [vmem:[%s7035_s2 + $0x168] sm:$0xff]  ;;  %v4027_v63 = vld [vmem:[%s7035_s2 + $0x1d0] sm:$0xff]  ;;  %v4009_v8 = vld [vmem:[%s7035_s2 + $0x160] sm:$0xff] }
 0x37c   :  { %v4902_v10 = vpop.f32.mrf.mxu0 }
 0x37d   :  { %v1103_v11 = vadd.f32 1e-05, %v1102_v9  ;;  %v4026_v9 = vld [vmem:[%s7035_s2 + $0x1c8] sm:$0xff]  ;;  %v4008_v10 = vld [vmem:[%s7035_s2 + $0x158] sm:$0xff] }
 0x37f   :  { %5643 = vrsqrt.f32 %v1103_v11  ;;  %v4025_v11 = vld [vmem:[%s7035_s2 + $0x1c0] sm:$0xff] }
 0x38c   :  { %v5644_v4 = vpop.eup %5643 }
 0x38d   :  { %v1106_v5 = vmul.f32 %v5644_v4, %v1105_v2  ;;  %v4024_v2 = vld [vmem:[%s7035_s2 + $0x1b8] sm:$0xff]  ;;  %v4005_v4 = vld [vmem:[%s7035_s2 + $0x140] sm:$0xff] }
 0x38f   :  { %v1108_v7 = vmul.f32 %v1106_v5, %v1027_v61  ;;  %v1113_v12 = vrot.slane %v1106_v5, %v6319_v3  ;;  %v4028_v61 = vld [vmem:[%s7035_s2 + $0x1d8] sm:$0xff]  ;;  %v4023_v5 = vld [vmem:[%s7035_s2 + $0x1b0] sm:$0xff] }
 0x391   :  { %v1109_v15 = vsub.f32 %v1107_v6, %v1108_v7  ;;  %v1116_v16 = vmul.f32 %v1113_v12, %v6256_v23  ;;  %v1117_v17 = vmul.f32 %v1113_v12, %v6254_v22  ;;  %v1115_v19 = vmul.f32 %v1113_v12, %v6244_v13  ;;  %v3973_v23 = vld [vmem:[%s7039_s6 + $0x10] sm:$0xff]  ;;  %v4004_v6 = vld [vmem:[%s7035_s2 + $0x138] sm:$0xff]  ;;  %v4022_v7 = vld [vmem:[%s7035_s2 + $0x1a8] sm:$0xff] }
 0x392   :  { %v1114_v24 = vmul.f32 %v1113_v12, %v6246_v14  ;;  %v1133_v14 = vld [vmem:[%s7039_s6 + $0x8] sm:$0xff]  ;;  %v4003_v12 = vld [vmem:[%s7035_s2 + $0x130] sm:$0xff] }
 0x393   :  { %v1122_v18 = vrot.slane %v1109_v15, %v6319_v3  ;;  %v4021_v15 = vld [vmem:[%s7035_s2 + $0x1a0] sm:$0xff] }
 0x395   :  { %v1126_v20 = vadd.f32 %v1122_v18, %v1116_v16  ;;  %v1127_v21 = vadd.f32 %v1122_v18, %v1117_v17  ;;  %v1125_v25 = vadd.f32 %v1122_v18, %v1115_v19  ;;  %v1124_v27 = vadd.f32 %v1122_v18, %v1114_v24  ;;  %v4002_v16 = vld [vmem:[%s7035_s2 + $0x128] sm:$0xff]  ;;  %v4020_v17 = vld [vmem:[%s7035_s2 + $0x198] sm:$0xff]  ;;  %v4001_v18 = vld [vmem:[%s7035_s2 + $0x120] sm:$0xff] }
 0x396   :  { %v4019_v19 = vld [vmem:[%s7035_s2 + $0x190] sm:$0xff] }
 0x397   :  { %v6330_v26 = vmax.f32 %v1127_v21, 0.0  ;;  %v6332_v28 = vmax.f32 %v1126_v20, 0.0  ;;  %v6337_v22 = vmax.f32 %v1125_v25, 0.0  ;;  %v6341_v13 = vmax.f32 %v1124_v27, 0.0  ;;  %v4000_v20 = vld [vmem:[%s7035_s2 + $0x118] sm:$0xff]  ;;  %v4018_v21 = vld [vmem:[%s7035_s2 + $0x188] sm:$0xff] }
 0x398   :  { %v3999_v24 = vld [vmem:[%s7035_s2 + $0x110] sm:$0xff]  ;;  %v4017_v25 = vld [vmem:[%s7035_s2 + $0x180] sm:$0xff] }
 0x399   :  { %4903 = vmatprep.subr.mxu1 %v6330_v26  ;;  %5041 = vmatprep.subr.mxu0 %v6330_v26  ;;  %v3997_v27 = vld [vmem:[%s7035_s2 + $0x100] sm:$0xff] }
 0x39a   :  { %4904 = vmatpush3.msra.mxu1 %v6330_v26 }
 0x39b   :  { %4905 = vmatprep.subr.mxu1 %v6332_v28 }
 0x39c   :  { %4906 = vmatpush3.msra.mxu1 %v6332_v28 }
 0x39d   :  { %4907 = vmatprep.subr.mxu1 %v6337_v22 }
 0x39e   :  { %4908 = vmatpush3.msra.mxu1 %v6337_v22 }
 0x39f   :  { %4909 = vmatprep.subr.mxu1 %v6341_v13 }
 0x3a0   :  { %4910 = vmatpush3.msra.mxu1 %v6341_v13 }
 0x3a1   :  { %4912 = vmatmul.mubr.msk.f32.vlgmr.msra.gmra.mxu1 %vm1134_vm2, %v1133_v14  ;;  %4914 = vmatprep.subr.mxu1 %v6330_v26 }
 0x3a2   :  { %4915 = vmatpush3.msra.mxu1 %v6330_v26  ;;  %4922 = vmatprep.mubr.msk.f32.mxu1 %vm1134_vm2, %v3973_v23 }
 0x3a3   :  { %4916 = vmatprep.subr.mxu1 %v6332_v28 }
 0x3a4   :  { %4917 = vmatpush3.msra.mxu1 %v6332_v28 }
 0x3a5   :  { %4918 = vmatprep.subr.mxu1 %v6337_v22 }
 0x3a6   :  { %4919 = vmatpush3.msra.mxu1 %v6337_v22 }
 0x3a7   :  { %4920 = vmatprep.subr.mxu1 %v6341_v13 }
 0x3a8   :  { %4921 = vmatpush3.msra.mxu1 %v6341_v13 }
 0x3a9   :  { %4923 = vmatmul.mubr.msk.f32.vlgmr.msra.gmra.mxu1 %vm1134_vm2, %v3974_v29  ;;  %4925 = vmatprep.subr.mxu1 %v3992_v30 }
 0x3aa   :  { %4926 = vmatpush3.msra.mxu1 %v3992_v30 }
 0x3ab   :  { %4927 = vmatprep.subr.mxu1 %v3991_v31 }
 0x3ac   :  { %4928 = vmatpush3.msra.mxu1 %v3991_v31 }
 0x3ad   :  { %4929 = vmatprep.subr.mxu1 %v3990_v32 }
 0x3ae   :  { %4930 = vmatpush3.msra.mxu1 %v3990_v32  ;;  %v1871_v32 = vld [vmem:[#allocation7 + $0xf8] sm:$0xff] }
 0x3af   :  { %4931 = vmatprep.subr.mxu1 %v3989_v33 }
 0x3b0   :  { %4932 = vmatpush3.msra.mxu1 %v3989_v33  ;;  %v1870_v33 = vld [vmem:[#allocation7 + $0xf0] sm:$0xff] }
 0x3b1   :  { %4933 = vmatprep.subr.mxu1 %v3988_v34 }
 0x3b2   :  { %4934 = vmatpush3.msra.mxu1 %v3988_v34 }
 0x3b3   :  { %4935 = vmatprep.subr.mxu1 %v3987_v35 }
 0x3b4   :  { %4936 = vmatpush3.msra.mxu1 %v3987_v35  ;;  %v1869_v35 = vld [vmem:[#allocation7 + $0xe8] sm:$0xff] }
 0x3b5   :  { %4937 = vmatprep.subr.mxu1 %v3986_v36 }
 0x3b6   :  { %4938 = vmatpush3.msra.mxu1 %v3986_v36 }
 0x3b7   :  { %4939 = vmatprep.subr.mxu1 %v3985_v37 }
 0x3b8   :  { %4940 = vmatpush3.msra.mxu1 %v3985_v37  ;;  %v1868_v37 = vld [vmem:[#allocation7 + $0xe0] sm:$0xff] }
 0x3b9   :  { %4941 = vmatprep.subr.mxu1 %v3984_v38 }
 0x3ba   :  { %4942 = vmatpush3.msra.mxu1 %v3984_v38  ;;  %v1867_v38 = vld [vmem:[#allocation7 + $0xd8] sm:$0xff] }
 0x3bb   :  { %4943 = vmatprep.subr.mxu1 %v3983_v39 }
 0x3bc   :  { %4944 = vmatpush3.msra.mxu1 %v3983_v39  ;;  %v1866_v39 = vld [vmem:[#allocation7 + $0xd0] sm:$0xff] }
 0x3bd   :  { %4945 = vmatprep.subr.mxu1 %v3982_v40 }
 0x3be   :  { %4946 = vmatpush3.msra.mxu1 %v3982_v40  ;;  %v1865_v40 = vld [vmem:[#allocation7 + $0xc8] sm:$0xff] }
 0x3bf   :  { %4947 = vmatprep.subr.mxu1 %v3981_v41 }
 0x3c0   :  { %4948 = vmatpush3.msra.mxu1 %v3981_v41  ;;  %v1864_v41 = vld [vmem:[#allocation7 + $0xc0] sm:$0xff] }
 0x3c1   :  { %4949 = vmatprep.subr.mxu1 %v3980_v42 }
 0x3c2   :  { %4950 = vmatpush3.msra.mxu1 %v3980_v42  ;;  %v1863_v42 = vld [vmem:[#allocation7 + $0xb8] sm:$0xff] }
 0x3c3   :  { %4951 = vmatprep.subr.mxu1 %v3979_v43 }
 0x3c4   :  { %4952 = vmatpush3.msra.mxu1 %v3979_v43  ;;  %v1862_v43 = vld [vmem:[#allocation7 + $0xb0] sm:$0xff] }
 0x3c5   :  { %4953 = vmatprep.subr.mxu1 %v3978_v44 }
 0x3c6   :  { %4954 = vmatpush3.msra.mxu1 %v3978_v44  ;;  %v1861_v44 = vld [vmem:[#allocation7 + $0xa8] sm:$0xff] }
 0x3c7   :  { %4955 = vmatprep.subr.mxu1 %v3977_v46 }
 0x3c8   :  { %4956 = vmatpush3.msra.mxu1 %v3977_v46  ;;  %v1860_v46 = vld [vmem:[#allocation7 + $0xa0] sm:$0xff] }
 0x3c9   :  { %4995 = vmatprep.subr.mxu1 %v6330_v26 }
 0x461   :  { %v4913_v47 = vpop.f32.mrf.mxu1 }
 0x463   :  { %v1207_v48 = vpop.f32.mrf.mxu1 }
 0x464   :  { %4992 = vmatprep.mubr.f32.mxu0 %v1207_v48  ;;  %v1858_v48 = vld [vmem:[#allocation7 + $0x90] sm:$0xff] }
 0x465   :  { %4993 = vmatmul.mubr.f32.vlgmr.msra.gmra.mxu0 %v4913_v47  ;;  %v1859_v47 = vld [vmem:[#allocation7 + $0x98] sm:$0xff] }
 0x466   :  { %5042 = vmatpush3.msra.mxu0 %v6330_v26  ;;  %5049 = vmatprep.mubr.msk.f32.mxu0 %vm1134_vm2, %v4013_v49  ;;  %v1857_v49 = vld [vmem:[#allocation7 + $0x88] sm:$0xff] }
 0x467   :  { %5043 = vmatprep.subr.mxu0 %v6332_v28 }
 0x468   :  { %5044 = vmatpush3.msra.mxu0 %v6332_v28 }
 0x469   :  { %5045 = vmatprep.subr.mxu0 %v6337_v22  ;;  %v4924_v50 = vpop.f32.mrf.mxu1 }
 0x46a   :  { %5046 = vmatpush3.msra.mxu0 %v6337_v22 }
 0x46b   :  { %5047 = vmatprep.subr.mxu0 %v6341_v13  ;;  %v1307_v52 = vpop.f32.mrf.mxu1 }
 0x46c   :  { %5048 = vmatpush3.msra.mxu0 %v6341_v13  ;;  %4957 = vmatprep.mubr.f32.mxu1 %v1307_v52 }
 0x46d   :  { %4958 = vmatmul.mubr.f32.vlgmr.msra.gmra.mxu1 %v4924_v50  ;;  %5050 = vmatmul.mubr.msk.f32.vlgmr.msra.gmra.mxu0 %vm1134_vm2, %v4014_v51  ;;  %v1856_v50 = vld [vmem:[#allocation7 + $0x80] sm:$0xff] }
 0x46e   :  { %4996 = vmatpush3.msra.mxu1 %v6330_v26  ;;  %5003 = vmatprep.mubr.msk.f32.mxu1 %vm1134_vm2, %v3993_v53  ;;  %v3998_v26 = vld [vmem:[%s7035_s2 + $0x108] sm:$0xff] }
 0x46f   :  { %4997 = vmatprep.subr.mxu1 %v6332_v28  ;;  %5052 = vmatprep.subr.mxu0 %v4032_v54 }
 0x470   :  { %4998 = vmatpush3.msra.mxu1 %v6332_v28  ;;  %5053 = vmatpush3.msra.mxu0 %v4032_v54 }
 0x471   :  { %4999 = vmatprep.subr.mxu1 %v6337_v22  ;;  %5054 = vmatprep.subr.mxu0 %v4031_v55 }
 0x472   :  { %5000 = vmatpush3.msra.mxu1 %v6337_v22  ;;  %5055 = vmatpush3.msra.mxu0 %v4031_v55 }
 0x473   :  { %5001 = vmatprep.subr.mxu1 %v6341_v13  ;;  %5056 = vmatprep.subr.mxu0 %v4030_v56 }
 0x474   :  { %5002 = vmatpush3.msra.mxu1 %v6341_v13  ;;  %5057 = vmatpush3.msra.mxu0 %v4030_v56 }
 0x475   :  { %5004 = vmatmul.mubr.msk.f32.vlgmr.msra.gmra.mxu1 %vm1134_vm2, %v3994_v57  ;;  %5006 = vmatprep.subr.mxu1 %v4012_v58 }
 0x476   :  { %5007 = vmatpush3.msra.mxu1 %v4012_v58  ;;  %5058 = vmatprep.subr.mxu0 %v4029_v59 }
 0x477   :  { %5008 = vmatprep.subr.mxu1 %v4011_v60  ;;  %5059 = vmatpush3.msra.mxu0 %v4029_v59 }
 0x478   :  { %5009 = vmatpush3.msra.mxu1 %v4011_v60  ;;  %5060 = vmatprep.subr.mxu0 %v4028_v61 }
 0x479   :  { %5010 = vmatprep.subr.mxu1 %v4010_v62  ;;  %5061 = vmatpush3.msra.mxu0 %v4028_v61 }
 0x47a   :  { %5011 = vmatpush3.msra.mxu1 %v4010_v62  ;;  %5062 = vmatprep.subr.mxu0 %v4027_v63 }
 0x47b   :  { %5012 = vmatprep.subr.mxu1 %v4009_v8  ;;  %5063 = vmatpush3.msra.mxu0 %v4027_v63 }
 0x47c   :  { %5013 = vmatpush3.msra.mxu1 %v4009_v8  ;;  %5064 = vmatprep.subr.mxu0 %v4026_v9 }
 0x47d   :  { %5014 = vmatprep.subr.mxu1 %v4008_v10  ;;  %5065 = vmatpush3.msra.mxu0 %v4026_v9 }
 0x47e   :  { %5015 = vmatpush3.msra.mxu1 %v4008_v10  ;;  %5066 = vmatprep.subr.mxu0 %v4025_v11 }
 0x47f   :  { %5016 = vmatprep.subr.mxu1 %v4007_v0  ;;  %5067 = vmatpush3.msra.mxu0 %v4025_v11 }
 0x480   :  { %5017 = vmatpush3.msra.mxu1 %v4007_v0  ;;  %5068 = vmatprep.subr.mxu0 %v4024_v2 }
 0x481   :  { %5018 = vmatprep.subr.mxu1 %v4006_v1  ;;  %5069 = vmatpush3.msra.mxu0 %v4024_v2 }
 0x482   :  { %5019 = vmatpush3.msra.mxu1 %v4006_v1  ;;  %5070 = vmatprep.subr.mxu0 %v4023_v5 }
 0x483   :  { %5020 = vmatprep.subr.mxu1 %v4005_v4  ;;  %5071 = vmatpush3.msra.mxu0 %v4023_v5 }
 0x484   :  { %5021 = vmatpush3.msra.mxu1 %v4005_v4  ;;  %5072 = vmatprep.subr.mxu0 %v4022_v7 }
 0x485   :  { %5022 = vmatprep.subr.mxu1 %v4004_v6  ;;  %5073 = vmatpush3.msra.mxu0 %v4022_v7 }
 0x486   :  { %5023 = vmatpush3.msra.mxu1 %v4004_v6  ;;  %5074 = vmatprep.subr.mxu0 %v4021_v15 }
 0x487   :  { %5024 = vmatprep.subr.mxu1 %v4003_v12  ;;  %5075 = vmatpush3.msra.mxu0 %v4021_v15  ;;  %v2128_v15 = vld [vmem:[#allocation2 + $0x70] sm:$0xff] }
 0x488   :  { %5025 = vmatpush3.msra.mxu1 %v4003_v12  ;;  %5076 = vmatprep.subr.mxu0 %v4020_v17  ;;  %v2129_v12 = vld [vmem:[#allocation2 + $0x78] sm:$0xff] }
 0x489   :  { %5026 = vmatprep.subr.mxu1 %v4002_v16  ;;  %5077 = vmatpush3.msra.mxu0 %v4020_v17  ;;  %v2126_v17 = vld [vmem:[#allocation2 + $0x60] sm:$0xff] }
 0x48a   :  { %5027 = vmatpush3.msra.mxu1 %v4002_v16  ;;  %5078 = vmatprep.subr.mxu0 %v4019_v19  ;;  %v2127_v16 = vld [vmem:[#allocation2 + $0x68] sm:$0xff] }
 0x48b   :  { %5028 = vmatprep.subr.mxu1 %v4001_v18  ;;  %5079 = vmatpush3.msra.mxu0 %v4019_v19  ;;  %v2124_v19 = vld [vmem:[#allocation2 + $0x50] sm:$0xff] }
 0x48c   :  { %5029 = vmatpush3.msra.mxu1 %v4001_v18  ;;  %5080 = vmatprep.subr.mxu0 %v4018_v21  ;;  %v2125_v18 = vld [vmem:[#allocation2 + $0x58] sm:$0xff] }
 0x48d   :  { %5030 = vmatprep.subr.mxu1 %v4000_v20  ;;  %5081 = vmatpush3.msra.mxu0 %v4018_v21  ;;  %v2122_v21 = vld [vmem:[#allocation2 + $0x40] sm:$0xff] }
 0x48e   :  { %5031 = vmatpush3.msra.mxu1 %v4000_v20  ;;  %5082 = vmatprep.subr.mxu0 %v4017_v25  ;;  %v2123_v20 = vld [vmem:[#allocation2 + $0x48] sm:$0xff] }
 0x48f   :  { %5032 = vmatprep.subr.mxu1 %v3999_v24  ;;  %5083 = vmatpush3.msra.mxu0 %v4017_v25  ;;  %v2120_v25 = vld [vmem:[#allocation2 + $0x30] sm:$0xff] }
 0x490   :  { %5033 = vmatpush3.msra.mxu1 %v3999_v24  ;;  %5122 = vmatprep.subr.mxu0 %v5744_v45  ;;  %v2121_v24 = vld [vmem:[#allocation2 + $0x38] sm:$0xff] }
 0x491   :  { %5034 = vmatprep.subr.mxu1 %v3998_v26 }
 0x492   :  { %5035 = vmatpush3.msra.mxu1 %v3998_v26  ;;  %v2119_v26 = vld [vmem:[#allocation2 + $0x28] sm:$0xff] }
 0x493   :  { %5036 = vmatprep.subr.mxu1 %v3997_v27 }
 0x494   :  { %5037 = vmatpush3.msra.mxu1 %v3997_v27  ;;  %v2118_v27 = vld [vmem:[#allocation2 + $0x20] sm:$0xff] }
 0x495   :  { %5087 = vmatprep.subr.mxu1 %v5744_v45 }
 0x525   :  { %v4994_v28 = vpop.f32.mrf.mxu0 }
 0x527   :  { %v1474_v22 = vpop.f32.mrf.mxu0 }
 0x52d   :  { %v4959_v13 = vpop.f32.mrf.mxu1  ;;  %v5051_v14 = vpop.f32.mrf.mxu0 }
 0x52e   :  { %v6544_v23 = vadd.f32 %v4994_v28, %v4959_v13  ;;  %v2117_v28 = vld [vmem:[#allocation2 + $0x18] sm:$0xff]  ;;  %v2115_v13 = vld [vmem:[#allocation2 + $0x8] sm:$0xff] }
 0x52f   :  { %v1399_v29 = vpop.f32.mrf.mxu1  ;;  %v1736_v30 = vpop.f32.mrf.mxu0 }
 0x530   :  { %v6546_v31 = vadd.f32 %v1474_v22, %v1399_v29  ;;  %5084 = vmatprep.mubr.f32.mxu0 %v1736_v30  ;;  %v2116_v22 = vld [vmem:[#allocation2 + $0x10] sm:$0xff] }
 0x531   :  { %5085 = vmatmul.mubr.f32.vlgmr.msra.gmra.mxu0 %v5051_v14  ;;  %v2114_v14 = vld [vmem:[#allocation2] sm:$0xff] }
 0x532   :  { %5123 = vmatpush3.msra.mxu0 %v1871_v32  ;;  %5154 = vmatprep.mubr.msk.f32.mxu0 %vm5745_vm1, %v5744_v45 }
 0x533   :  { %5124 = vmatprep.subr.mxu0 %v5744_v45 }
 0x534   :  { %5125 = vmatpush3.msra.mxu0 %v1870_v33 }
 0x535   :  { %v5005_v34 = vpop.f32.mrf.mxu1  ;;  %5126 = vmatprep.subr.mxu0 %v5744_v45 }
 0x536   :  { %5127 = vmatpush3.msra.mxu0 %v1869_v35 }
 0x537   :  { %v1558_v36 = vpop.f32.mrf.mxu1  ;;  %5128 = vmatprep.subr.mxu0 %v5744_v45 }
 0x538   :  { %5038 = vmatprep.mubr.f32.mxu1 %v1558_v36  ;;  %5129 = vmatpush3.msra.mxu0 %v1868_v37 }
 0x539   :  { %5039 = vmatmul.mubr.f32.vlgmr.msra.gmra.mxu1 %v5005_v34  ;;  %5130 = vmatprep.subr.mxu0 %v5744_v45 }
 0x53a   :  { %5088 = vmatpush3.msra.mxu1 %v1871_v32  ;;  %5119 = vmatprep.mubr.msk.f32.mxu1 %vm5745_vm1, %v5744_v45 }
 0x53b   :  { %5089 = vmatprep.subr.mxu1 %v5744_v45  ;;  %5131 = vmatpush3.msra.mxu0 %v1867_v38 }
 0x53c   :  { %5090 = vmatpush3.msra.mxu1 %v1870_v33  ;;  %5132 = vmatprep.subr.mxu0 %v5744_v45 }
 0x53d   :  { %5091 = vmatprep.subr.mxu1 %v5744_v45  ;;  %5133 = vmatpush3.msra.mxu0 %v1866_v39 }
 0x53e   :  { %5092 = vmatpush3.msra.mxu1 %v1869_v35  ;;  %5134 = vmatprep.subr.mxu0 %v5744_v45  ;;  %v4033_v35 = vld [vmem:[%s7044_s11 + $0x1] sm:$0x1] }
 0x53f   :  { %5093 = vmatprep.subr.mxu1 %v5744_v45  ;;  %5135 = vmatpush3.msra.mxu0 %v1865_v40 }
 0x540   :  { %5094 = vmatpush3.msra.mxu1 %v1868_v37  ;;  %5136 = vmatprep.subr.mxu0 %v5744_v45 }
 0x541   :  { %5095 = vmatprep.subr.mxu1 %v5744_v45  ;;  %5137 = vmatpush3.msra.mxu0 %v1864_v41 }
 0x542   :  { %5096 = vmatpush3.msra.mxu1 %v1867_v38  ;;  %5138 = vmatprep.subr.mxu0 %v5744_v45  ;;  %v4034_v38 = vld [vmem:[%s7045_s12 + $0x1] sm:$0x1] }
 0x543   :  { %5097 = vmatprep.subr.mxu1 %v5744_v45  ;;  %5139 = vmatpush3.msra.mxu0 %v1863_v42 }
 0x544   :  { %5098 = vmatpush3.msra.mxu1 %v1866_v39  ;;  %5140 = vmatprep.subr.mxu0 %v5744_v45 }
 0x545   :  { %5099 = vmatprep.subr.mxu1 %v5744_v45  ;;  %5141 = vmatpush3.msra.mxu0 %v1862_v43 }
 0x546   :  { %5100 = vmatpush3.msra.mxu1 %v1865_v40  ;;  %5142 = vmatprep.subr.mxu0 %v5744_v45 }
 0x547   :  { %5101 = vmatprep.subr.mxu1 %v5744_v45  ;;  %5143 = vmatpush3.msra.mxu0 %v1861_v44 }
 0x548   :  { %5102 = vmatpush3.msra.mxu1 %v1864_v41  ;;  %5144 = vmatprep.subr.mxu0 %v5744_v45 }
 0x549   :  { %5103 = vmatprep.subr.mxu1 %v5744_v45  ;;  %5145 = vmatpush3.msra.mxu0 %v1860_v46 }
 0x54a   :  { %5104 = vmatpush3.msra.mxu1 %v1863_v42  ;;  %5146 = vmatprep.subr.mxu0 %v5744_v45 }
 0x54b   :  { %5105 = vmatprep.subr.mxu1 %v5744_v45  ;;  %5147 = vmatpush3.msra.mxu0 %v1859_v47 }
 0x54c   :  { %5106 = vmatpush3.msra.mxu1 %v1862_v43  ;;  %5148 = vmatprep.subr.mxu0 %v5744_v45 }
 0x54d   :  { %5107 = vmatprep.subr.mxu1 %v5744_v45  ;;  %5149 = vmatpush3.msra.mxu0 %v1858_v48 }
 0x54e   :  { %5108 = vmatpush3.msra.mxu1 %v1861_v44  ;;  %5150 = vmatprep.subr.mxu0 %v5744_v45 }
 0x54f   :  { %5109 = vmatprep.subr.mxu1 %v5744_v45  ;;  %5151 = vmatpush3.msra.mxu0 %v1857_v49 }
 0x550   :  { %5110 = vmatpush3.msra.mxu1 %v1860_v46  ;;  %5152 = vmatprep.subr.mxu0 %v5744_v45 }
 0x551   :  { %5111 = vmatprep.subr.mxu1 %v5744_v45  ;;  %5153 = vmatpush3.msra.mxu0 %v1856_v50 }
 0x552   :  { %5112 = vmatpush3.msra.mxu1 %v1859_v47  ;;  %5206 = vmatprep.subr.mxu0 %v5744_v45 }
 0x553   :  { %5113 = vmatprep.subr.mxu1 %v5744_v45 }
 0x554   :  { %5114 = vmatpush3.msra.mxu1 %v1858_v48 }
 0x555   :  { %5115 = vmatprep.subr.mxu1 %v5744_v45 }
 0x556   :  { %5116 = vmatpush3.msra.mxu1 %v1857_v49 }
 0x557   :  { %5117 = vmatprep.subr.mxu1 %v5744_v45 }
 0x558   :  { %5118 = vmatpush3.msra.mxu1 %v1856_v50  ;;  %v2039_v50 = vld [vmem:[%s7040_s7] sm:$0xff] }
 0x559   :  { %5157 = vmatprep.subr.mxu1 %v5744_v45 }
 0x5f1   :  { %v5086_v51 = vpop.f32.mrf.mxu0 }
 0x5f3   :  { %v1828_v57 = vpop.f32.mrf.mxu0 }
 0x5f9   :  { %v5040_v52 = vpop.f32.mrf.mxu1 }
 0x5fa   :  { %v1660_v53 = vadd.f32 %v5040_v52, %v6544_v23  ;;  %v2221_v52 = vld [vmem:[#allocation2 + $0xf8] sm:$0xff] }
 0x5fb   :  { %v1650_v54 = vpop.f32.mrf.mxu1 }
 0x5fc   :  { %v6585_v55 = vadd.f32 %v5086_v51, %v1660_v53  ;;  %v1659_v56 = vadd.f32 %v1650_v54, %v6546_v31  ;;  %v4036_v51 = vld [vmem:[%s7040_s7 + $0x8] sm:$0xff]  ;;  %v2220_v53 = vld [vmem:[#allocation2 + $0xf0] sm:$0xff] }
 0x5fd   :  { %v2219_v54 = vld [vmem:[#allocation2 + $0xe8] sm:$0xff] }
 0x5fe   :  { %v6588_v58 = vadd.f32 %v1828_v57, %v1659_v56  ;;  %v1847_v59 = vmul.f32 %v6585_v55, %v6585_v55  ;;  %v2217_v56 = vld [vmem:[#allocation2 + $0xd8] sm:$0xff]  ;;  %v2216_v57 = vld [vmem:[#allocation2 + $0xd0] sm:$0xff] }
 0x600   :  { %v1839_v60 = vadd.f32 %v6585_v55, %v6588_v58  ;;  %v1846_v61 = vmul.f32 %v6588_v58, %v6588_v58 }
 0x602   :  { %v1840_v62 = vrot.slane %v1839_v60, 4  ;;  %v1848_v63 = vadd.f32 %v1847_v59, %v1846_v61  ;;  %v2214_v59 = vld [vmem:[#allocation2 + $0xc0] sm:$0xff]  ;;  %v2212_v61 = vld [vmem:[#allocation2 + $0xb0] sm:$0xff] }
 0x604   :  { %v1841_v8 = vadd.f32 %v1840_v62, %v1839_v60  ;;  %v1849_v9 = vrot.slane %v1848_v63, 4  ;;  %v2213_v60 = vld [vmem:[#allocation2 + $0xb8] sm:$0xff]  ;;  %v2211_v62 = vld [vmem:[#allocation2 + $0xa8] sm:$0xff] }
 0x606   :  { %v1842_v10 = vrot.slane %v1841_v8, 2  ;;  %v1850_v11 = vadd.f32 %v1849_v9, %v1848_v63  ;;  %v2210_v63 = vld [vmem:[#allocation2 + $0xa0] sm:$0xff]  ;;  %v2208_v9 = vld [vmem:[#allocation2 + $0x90] sm:$0xff] }
 0x608   :  { %v1843_v0 = vadd.f32 %v1842_v10, %v1841_v8  ;;  %v1851_v1 = vrot.slane %v1850_v11, 2  ;;  %v2209_v8 = vld [vmem:[#allocation2 + $0x98] sm:$0xff]  ;;  %v2207_v10 = vld [vmem:[#allocation2 + $0x88] sm:$0xff] }
 0x60a   :  { %v1844_v2 = vrot.slane %v1843_v0, 1  ;;  %v1852_v4 = vadd.f32 %v1851_v1, %v1850_v11  ;;  %v2206_v11 = vld [vmem:[#allocation2 + $0x80] sm:$0xff] }
 0x60c   :  { %v1845_v5 = vadd.f32 %v1844_v2, %v1843_v0  ;;  %v1853_v6 = vrot.slane %v1852_v4, 1  ;;  %v4040_v2 = vld [vmem:[%s7040_s7 + $0x18] sm:$0xff] }
 0x60e   :  { %5120 = vmatmul.mubr.f32.vlgmr.msra.gmra.mxu1 %v1845_v5  ;;  %v1854_v7 = vadd.f32 %v1853_v6, %v1852_v4  ;;  %v2616_v5 = vld [vmem:[#allocation2 + $0x1f8] sm:$0xff] }
 0x60f   :  { %5161 = vmatprep.mubr.msk.f32.mxu1 %vm5745_vm1, %v5744_v45 }
 0x610   :  { %5155 = vmatmul.mubr.f32.vlgmr.msra.gmra.mxu0 %v1854_v7  ;;  %v4038_v7 = vld [vmem:[%s7040_s7 + $0x10] sm:$0xff] }
 0x611   :  { %5238 = vmatprep.mubr.msk.f32.mxu0 %vm5745_vm1, %v5744_v45  ;;  %5207 = vmatpush3.msra.mxu0 %v2129_v12  ;;  %v2453_v12 = vld [vmem:[#allocation2 + $0x178] sm:$0xff] }
 0x612   :  { %5208 = vmatprep.subr.mxu0 %v5744_v45 }
 0x613   :  { %5209 = vmatpush3.msra.mxu0 %v2128_v15  ;;  %v2615_v15 = vld [vmem:[#allocation2 + $0x1f0] sm:$0xff] }
 0x614   :  { %5210 = vmatprep.subr.mxu0 %v5744_v45 }
 0x615   :  { %5211 = vmatpush3.msra.mxu0 %v2127_v16  ;;  %v2452_v16 = vld [vmem:[#allocation2 + $0x170] sm:$0xff] }
 0x616   :  { %5212 = vmatprep.subr.mxu0 %v5744_v45 }
 0x617   :  { %5213 = vmatpush3.msra.mxu0 %v2126_v17  ;;  %v2614_v17 = vld [vmem:[#allocation2 + $0x1e8] sm:$0xff] }
 0x618   :  { %5214 = vmatprep.subr.mxu0 %v5744_v45 }
 0x619   :  { %5215 = vmatpush3.msra.mxu0 %v2125_v18  ;;  %v2451_v18 = vld [vmem:[#allocation2 + $0x168] sm:$0xff] }
 0x61a   :  { %5216 = vmatprep.subr.mxu0 %v5744_v45 }
 0x61b   :  { %5217 = vmatpush3.msra.mxu0 %v2124_v19  ;;  %v2613_v19 = vld [vmem:[#allocation2 + $0x1e0] sm:$0xff] }
 0x61c   :  { %5218 = vmatprep.subr.mxu0 %v5744_v45 }
 0x61d   :  { %5219 = vmatpush3.msra.mxu0 %v2123_v20  ;;  %v2450_v20 = vld [vmem:[#allocation2 + $0x160] sm:$0xff] }
 0x61e   :  { %5220 = vmatprep.subr.mxu0 %v5744_v45 }
 0x61f   :  { %5221 = vmatpush3.msra.mxu0 %v2122_v21  ;;  %v2612_v21 = vld [vmem:[#allocation2 + $0x1d8] sm:$0xff] }
 0x620   :  { %5222 = vmatprep.subr.mxu0 %v5744_v45 }
 0x621   :  { %5223 = vmatpush3.msra.mxu0 %v2121_v24  ;;  %v2449_v24 = vld [vmem:[#allocation2 + $0x158] sm:$0xff] }
 0x622   :  { %5224 = vmatprep.subr.mxu0 %v5744_v45 }
 0x623   :  { %5225 = vmatpush3.msra.mxu0 %v2120_v25  ;;  %v2611_v25 = vld [vmem:[#allocation2 + $0x1d0] sm:$0xff] }
 0x624   :  { %5226 = vmatprep.subr.mxu0 %v5744_v45 }
 0x625   :  { %5227 = vmatpush3.msra.mxu0 %v2119_v26  ;;  %v2448_v26 = vld [vmem:[#allocation2 + $0x150] sm:$0xff] }
 0x626   :  { %5228 = vmatprep.subr.mxu0 %v5744_v45 }
 0x627   :  { %5229 = vmatpush3.msra.mxu0 %v2118_v27  ;;  %v2610_v27 = vld [vmem:[#allocation2 + $0x1c8] sm:$0xff] }
 0x628   :  { %5230 = vmatprep.subr.mxu0 %v5744_v45 }
 0x629   :  { %5231 = vmatpush3.msra.mxu0 %v2117_v28  ;;  %v2447_v28 = vld [vmem:[#allocation2 + $0x148] sm:$0xff] }
 0x62a   :  { %5232 = vmatprep.subr.mxu0 %v5744_v45 }
 0x62b   :  { %5233 = vmatpush3.msra.mxu0 %v2116_v22  ;;  %v2609_v22 = vld [vmem:[#allocation2 + $0x1c0] sm:$0xff] }
 0x62c   :  { %5234 = vmatprep.subr.mxu0 %v5744_v45 }
 0x62d   :  { %5235 = vmatpush3.msra.mxu0 %v2115_v13  ;;  %v2446_v13 = vld [vmem:[#allocation2 + $0x140] sm:$0xff] }
 0x62e   :  { %5236 = vmatprep.subr.mxu0 %v5744_v45 }
 0x62f   :  { %5237 = vmatpush3.msra.mxu0 %v2114_v14  ;;  %v2608_v14 = vld [vmem:[#allocation2 + $0x1b8] sm:$0xff] }
 0x630   :  { %5283 = vmatprep.subr.mxu0 %v5744_v45 }
 0x6ce   :  { %v1938_v23 = vpop.f32.mrf.mxu1 }
 0x6cf   :  { %v2012_v29 = vmul.f32 %v1938_v23, %v1938_v23 }
 0x6d0   :  { %v5121_v30 = vpop.f32.mrf.mxu1  ;;  %v2008_v31 = vpop.f32.mrf.mxu0 }
 0x6d1   :  { %v2013_v32 = vsub.f32 %v2008_v31, %v2012_v29  ;;  %v2607_v29 = vld [vmem:[#allocation2 + $0x1b0] sm:$0xff]  ;;  %v2606_v31 = vld [vmem:[#allocation2 + $0x1a8] sm:$0xff] }
 0x6d2   :  { %v5156_v33 = vpop.f32.mrf.mxu0  ;;  %v2444_v30 = vld [vmem:[#allocation2 + $0x130] sm:$0xff] }
 0x6d3   :  { %v2014_v34 = vadd.f32 1e-05, %v2013_v32  ;;  %v2443_v32 = vld [vmem:[#allocation2 + $0x128] sm:$0xff]  ;;  %v2442_v33 = vld [vmem:[#allocation2 + $0x120] sm:$0xff] }
 0x6d5   :  { %5645 = vrsqrt.f32 %v2014_v34  ;;  %v2605_v34 = vld [vmem:[#allocation2 + $0x1a0] sm:$0xff] }
 0x6e2   :  { %v5646_v36 = vpop.eup %5645 }
 0x6e3   :  { %v2018_v37 = vmul.f32 %v5646_v36, %v4033_v35  ;;  %v2441_v35 = vld [vmem:[#allocation2 + $0x118] sm:$0xff] }
 0x6e4   :  { %v2604_v36 = vld [vmem:[#allocation2 + $0x198] sm:$0xff] }
 0x6e5   :  { %v2021_v39 = vmul.f32 %v2018_v37, %v1938_v23  ;;  %v2026_v40 = vrot.slane %v2018_v37, %v6319_v3  ;;  %v2445_v23 = vld [vmem:[#allocation2 + $0x138] sm:$0xff]  ;;  %v2440_v37 = vld [vmem:[#allocation2 + $0x110] sm:$0xff] }
 0x6e7   :  { %v2022_v41 = vsub.f32 %v4034_v38, %v2021_v39  ;;  %v2028_v42 = vmul.f32 %v2026_v40, %v6585_v55  ;;  %v2027_v44 = vmul.f32 %v2026_v40, %v6588_v58  ;;  %v2218_v55 = vld [vmem:[#allocation2 + $0xe0] sm:$0xff]  ;;  %v2215_v58 = vld [vmem:[#allocation2 + $0xc8] sm:$0xff]  ;;  %v2603_v38 = vld [vmem:[#allocation2 + $0x190] sm:$0xff] }
 0x6e8   :  { %v2439_v39 = vld [vmem:[#allocation2 + $0x108] sm:$0xff] }
 0x6e9   :  { %v2033_v43 = vrot.slane %v2022_v41, %v6319_v3  ;;  %v2602_v40 = vld [vmem:[#allocation2 + $0x188] sm:$0xff]  ;;  %v2438_v41 = vld [vmem:[#allocation2 + $0x100] sm:$0xff] }
 0x6eb   :  { %v2036_v46 = vadd.f32 %v2033_v43, %v2028_v42  ;;  %v2035_v47 = vadd.f32 %v2033_v43, %v2027_v44  ;;  %v2601_v42 = vld [vmem:[#allocation2 + $0x180] sm:$0xff] }
 0x6ed   :  { %v6626_v48 = vmax.f32 %v2036_v46, 0.0  ;;  %v6629_v49 = vmax.f32 %v2035_v47, 0.0 }
 0x6ef   :  { %5158 = vmatpush3.msra.mxu1 %v6626_v48 }
 0x6f0   :  { %5159 = vmatprep.subr.mxu1 %v5744_v45 }
 0x6f1   :  { %5160 = vmatpush3.msra.mxu1 %v6629_v49 }
 0x6f2   :  { %5162 = vmatmul.mubr.msk.f32.vlgmr.msra.gmra.mxu1 %vm2040_vm3, %v2039_v50  ;;  %5164 = vmatprep.subr.mxu1 %v5744_v45 }
 0x6f3   :  { %5165 = vmatpush3.msra.mxu1 %v6626_v48  ;;  %5168 = vmatprep.mubr.msk.f32.mxu1 %vm5745_vm1, %v5744_v45 }
 0x6f4   :  { %5166 = vmatprep.subr.mxu1 %v5744_v45 }
 0x6f5   :  { %5167 = vmatpush3.msra.mxu1 %v6629_v49 }
 0x6f6   :  { %5169 = vmatmul.mubr.msk.f32.vlgmr.msra.gmra.mxu1 %vm2040_vm3, %v4036_v51  ;;  %5171 = vmatprep.subr.mxu1 %v5744_v45 }
 0x6f7   :  { %5172 = vmatpush3.msra.mxu1 %v2221_v52  ;;  %5203 = vmatprep.mubr.msk.f32.mxu1 %vm5745_vm1, %v5744_v45  ;;  %v2716_v52 = vld [vmem:[#allocation7 + $0x170] sm:$0xff] }
 0x6f8   :  { %5173 = vmatprep.subr.mxu1 %v5744_v45 }
 0x6f9   :  { %5174 = vmatpush3.msra.mxu1 %v2220_v53 }
 0x6fa   :  { %5175 = vmatprep.subr.mxu1 %v5744_v45 }
 0x6fb   :  { %5176 = vmatpush3.msra.mxu1 %v2219_v54  ;;  %v2715_v54 = vld [vmem:[#allocation7 + $0x168] sm:$0xff] }
 0x6fc   :  { %5177 = vmatprep.subr.mxu1 %v5744_v45 }
 0x6fd   :  { %5178 = vmatpush3.msra.mxu1 %v2218_v55 }
 0x6fe   :  { %5179 = vmatprep.subr.mxu1 %v5744_v45 }
 0x6ff   :  { %5180 = vmatpush3.msra.mxu1 %v2217_v56  ;;  %v2714_v56 = vld [vmem:[#allocation7 + $0x160] sm:$0xff] }
 0x700   :  { %5181 = vmatprep.subr.mxu1 %v5744_v45 }
 0x701   :  { %5182 = vmatpush3.msra.mxu1 %v2216_v57  ;;  %v2713_v57 = vld [vmem:[#allocation7 + $0x158] sm:$0xff] }
 0x702   :  { %5183 = vmatprep.subr.mxu1 %v5744_v45 }
 0x703   :  { %5184 = vmatpush3.msra.mxu1 %v2215_v58  ;;  %v2712_v58 = vld [vmem:[#allocation7 + $0x150] sm:$0xff] }
 0x704   :  { %5185 = vmatprep.subr.mxu1 %v5744_v45 }
 0x705   :  { %5186 = vmatpush3.msra.mxu1 %v2214_v59  ;;  %v2711_v59 = vld [vmem:[#allocation7 + $0x148] sm:$0xff] }
 0x706   :  { %5187 = vmatprep.subr.mxu1 %v5744_v45 }
 0x707   :  { %5188 = vmatpush3.msra.mxu1 %v2213_v60  ;;  %v2710_v60 = vld [vmem:[#allocation7 + $0x140] sm:$0xff] }
 0x708   :  { %5189 = vmatprep.subr.mxu1 %v5744_v45 }
 0x709   :  { %5190 = vmatpush3.msra.mxu1 %v2212_v61  ;;  %v2709_v61 = vld [vmem:[#allocation7 + $0x138] sm:$0xff] }
 0x70a   :  { %5191 = vmatprep.subr.mxu1 %v5744_v45 }
 0x70b   :  { %5192 = vmatpush3.msra.mxu1 %v2211_v62  ;;  %v2708_v62 = vld [vmem:[#allocation7 + $0x130] sm:$0xff] }
 0x70c   :  { %5193 = vmatprep.subr.mxu1 %v5744_v45 }
 0x70d   :  { %5194 = vmatpush3.msra.mxu1 %v2210_v63  ;;  %v2707_v63 = vld [vmem:[#allocation7 + $0x128] sm:$0xff] }
 0x70e   :  { %5195 = vmatprep.subr.mxu1 %v5744_v45 }
 0x70f   :  { %5196 = vmatpush3.msra.mxu1 %v2209_v8  ;;  %v2706_v8 = vld [vmem:[#allocation7 + $0x120] sm:$0xff] }
 0x710   :  { %5197 = vmatprep.subr.mxu1 %v5744_v45 }
 0x711   :  { %5198 = vmatpush3.msra.mxu1 %v2208_v9  ;;  %v2705_v9 = vld [vmem:[#allocation7 + $0x118] sm:$0xff] }
 0x712   :  { %5199 = vmatprep.subr.mxu1 %v5744_v45 }
 0x713   :  { %5200 = vmatpush3.msra.mxu1 %v2207_v10  ;;  %v2704_v10 = vld [vmem:[#allocation7 + $0x110] sm:$0xff] }
 0x714   :  { %5201 = vmatprep.subr.mxu1 %v5744_v45 }
 0x715   :  { %5202 = vmatpush3.msra.mxu1 %v2206_v11  ;;  %v2703_v11 = vld [vmem:[#allocation7 + $0x108] sm:$0xff] }
 0x716   :  { %5241 = vmatprep.subr.mxu1 %v5744_v45 }
 0x7b2   :  { %v2110_v0 = vpop.f32.mrf.mxu1 }
 0x7b3   :  { %5239 = vmatmul.mubr.f32.vlgmr.msra.gmra.mxu0 %v2110_v0  ;;  %v2702_v0 = vld [vmem:[#allocation7 + $0x100] sm:$0xff] }
 0x7b4   :  { %5284 = vmatpush3.msra.mxu0 %v6626_v48  ;;  %v5163_v1 = vpop.f32.mrf.mxu1  ;;  %5287 = vmatprep.mubr.msk.f32.mxu0 %vm5745_vm1, %v5744_v45 }
 0x7b5   :  { %5285 = vmatprep.subr.mxu0 %v5744_v45 }
 0x7b6   :  { %5286 = vmatpush3.msra.mxu0 %v6629_v49  ;;  %v2201_v4 = vpop.f32.mrf.mxu1 }
 0x7b7   :  { %5204 = vmatmul.mubr.f32.vlgmr.msra.gmra.mxu1 %v2201_v4  ;;  %5288 = vmatmul.mubr.msk.f32.vlgmr.msra.gmra.mxu0 %vm2040_vm3, %v4040_v2 }
 0x7b8   :  { %5242 = vmatpush3.msra.mxu1 %v6626_v48  ;;  %v5170_v6 = vpop.f32.mrf.mxu1  ;;  %5245 = vmatprep.mubr.msk.f32.mxu1 %vm5745_vm1, %v5744_v45 }
 0x7b9   :  { %5243 = vmatprep.subr.mxu1 %v5744_v45  ;;  %5290 = vmatprep.subr.mxu0 %v5744_v45 }
 0x7ba   :  { %5244 = vmatpush3.msra.mxu1 %v6629_v49  ;;  %5291 = vmatpush3.msra.mxu0 %v2616_v5  ;;  %v2717_v49 = vld [vmem:[#allocation7 + $0x178] sm:$0xff] }
 0x7bb   :  { %5246 = vmatmul.mubr.msk.f32.vlgmr.msra.gmra.mxu1 %vm2040_vm3, %v4038_v7  ;;  %5248 = vmatprep.subr.mxu1 %v5744_v45 }
 0x7bc   :  { %5249 = vmatpush3.msra.mxu1 %v2453_v12  ;;  %5292 = vmatprep.subr.mxu0 %v5744_v45 }
 0x7bd   :  { %5250 = vmatprep.subr.mxu1 %v5744_v45  ;;  %5293 = vmatpush3.msra.mxu0 %v2615_v15 }
 0x7be   :  { %5251 = vmatpush3.msra.mxu1 %v2452_v16  ;;  %5294 = vmatprep.subr.mxu0 %v5744_v45 }
 0x7bf   :  { %5252 = vmatprep.subr.mxu1 %v5744_v45  ;;  %5295 = vmatpush3.msra.mxu0 %v2614_v17 }
 0x7c0   :  { %5253 = vmatpush3.msra.mxu1 %v2451_v18  ;;  %5296 = vmatprep.subr.mxu0 %v5744_v45 }
 0x7c1   :  { %5254 = vmatprep.subr.mxu1 %v5744_v45  ;;  %5297 = vmatpush3.msra.mxu0 %v2613_v19 }
 0x7c2   :  { %5255 = vmatpush3.msra.mxu1 %v2450_v20  ;;  %5298 = vmatprep.subr.mxu0 %v5744_v45 }
 0x7c3   :  { %5256 = vmatprep.subr.mxu1 %v5744_v45  ;;  %5299 = vmatpush3.msra.mxu0 %v2612_v21 }
 0x7c4   :  { %5257 = vmatpush3.msra.mxu1 %v2449_v24  ;;  %5300 = vmatprep.subr.mxu0 %v5744_v45 }
 0x7c5   :  { %5258 = vmatprep.subr.mxu1 %v5744_v45  ;;  %5301 = vmatpush3.msra.mxu0 %v2611_v25 }
 0x7c6   :  { %5259 = vmatpush3.msra.mxu1 %v2448_v26  ;;  %5302 = vmatprep.subr.mxu0 %v5744_v45 }
 0x7c7   :  { %5260 = vmatprep.subr.mxu1 %v5744_v45  ;;  %5303 = vmatpush3.msra.mxu0 %v2610_v27 }
 0x7c8   :  { %5261 = vmatpush3.msra.mxu1 %v2447_v28  ;;  %5304 = vmatprep.subr.mxu0 %v5744_v45 }
 0x7c9   :  { %5262 = vmatprep.subr.mxu1 %v5744_v45  ;;  %5305 = vmatpush3.msra.mxu0 %v2609_v22  ;;  %v3064_v22 = vld [vmem:[#allocation5 + $0xf8] sm:$0xff] }
 0x7ca   :  { %5263 = vmatpush3.msra.mxu1 %v2446_v13  ;;  %5306 = vmatprep.subr.mxu0 %v5744_v45  ;;  %v3063_v13 = vld [vmem:[#allocation5 + $0xf0] sm:$0xff] }
 0x7cb   :  { %5264 = vmatprep.subr.mxu1 %v5744_v45  ;;  %5307 = vmatpush3.msra.mxu0 %v2608_v14  ;;  %v3062_v14 = vld [vmem:[#allocation5 + $0xe8] sm:$0xff] }
 0x7cc   :  { %5265 = vmatpush3.msra.mxu1 %v2445_v23  ;;  %5308 = vmatprep.subr.mxu0 %v5744_v45  ;;  %v3061_v23 = vld [vmem:[#allocation5 + $0xe0] sm:$0xff] }
 0x7cd   :  { %5266 = vmatprep.subr.mxu1 %v5744_v45  ;;  %5309 = vmatpush3.msra.mxu0 %v2607_v29  ;;  %v3060_v29 = vld [vmem:[#allocation5 + $0xd8] sm:$0xff] }
 0x7ce   :  { %5267 = vmatpush3.msra.mxu1 %v2444_v30  ;;  %5310 = vmatprep.subr.mxu0 %v5744_v45  ;;  %v3059_v30 = vld [vmem:[#allocation5 + $0xd0] sm:$0xff] }
 0x7cf   :  { %5268 = vmatprep.subr.mxu1 %v5744_v45  ;;  %5311 = vmatpush3.msra.mxu0 %v2606_v31  ;;  %v3058_v31 = vld [vmem:[#allocation5 + $0xc8] sm:$0xff] }
 0x7d0   :  { %5269 = vmatpush3.msra.mxu1 %v2443_v32  ;;  %5312 = vmatprep.subr.mxu0 %v5744_v45  ;;  %v3057_v32 = vld [vmem:[#allocation5 + $0xc0] sm:$0xff] }
 0x7d1   :  { %5270 = vmatprep.subr.mxu1 %v5744_v45  ;;  %5280 = vmatprep.mubr.msk.f32.mxu1 %vm5745_vm1, %v5744_v45 }
 0x7d2   :  { %5322 = vmatprep.mubr.msk.f32.mxu0 %vm5745_vm1, %v5744_v45  ;;  %5271 = vmatpush3.msra.mxu1 %v2442_v33  ;;  %v3056_v33 = vld [vmem:[#allocation5 + $0xb8] sm:$0xff] }
 0x7d3   :  { %5313 = vmatpush3.msra.mxu0 %v2605_v34  ;;  %5272 = vmatprep.subr.mxu1 %v5744_v45  ;;  %v3055_v34 = vld [vmem:[#allocation5 + $0xb0] sm:$0xff] }
 0x7d4   :  { %5314 = vmatprep.subr.mxu0 %v5744_v45  ;;  %5273 = vmatpush3.msra.mxu1 %v2441_v35  ;;  %v3054_v35 = vld [vmem:[#allocation5 + $0xa8] sm:$0xff] }
 0x7d5   :  { %5315 = vmatpush3.msra.mxu0 %v2604_v36  ;;  %5274 = vmatprep.subr.mxu1 %v5744_v45  ;;  %v3053_v36 = vld [vmem:[#allocation5 + $0xa0] sm:$0xff] }
 0x7d6   :  { %5316 = vmatprep.subr.mxu0 %v5744_v45  ;;  %5275 = vmatpush3.msra.mxu1 %v2440_v37  ;;  %v3052_v37 = vld [vmem:[#allocation5 + $0x98] sm:$0xff] }
 0x7d7   :  { %5317 = vmatpush3.msra.mxu0 %v2603_v38  ;;  %5276 = vmatprep.subr.mxu1 %v5744_v45  ;;  %v3051_v38 = vld [vmem:[#allocation5 + $0x90] sm:$0xff] }
 0x7d8   :  { %5318 = vmatprep.subr.mxu0 %v5744_v45  ;;  %5277 = vmatpush3.msra.mxu1 %v2439_v39 }
 0x7d9   :  { %5319 = vmatpush3.msra.mxu0 %v2602_v40  ;;  %5278 = vmatprep.subr.mxu1 %v5744_v45 }
 0x7da   :  { %5320 = vmatprep.subr.mxu0 %v5744_v45  ;;  %5279 = vmatpush3.msra.mxu1 %v2438_v41 }
 0x7db   :  { %5321 = vmatpush3.msra.mxu0 %v2601_v42  ;;  %5325 = vmatprep.subr.mxu1 %v5744_v45 }
 0x7dc   :  { %5360 = vmatprep.subr.mxu0 %v5744_v45 }
 0x873   :  { %v2358_v43 = vpop.f32.mrf.mxu0 }
 0x875   :  { %v5240_v44 = vpop.f32.mrf.mxu0 }
 0x877   :  { %v2288_v46 = vpop.f32.mrf.mxu1  ;;  %v2596_v47 = vpop.f32.mrf.mxu0 }
 0x878   :  { %v6722_v48 = vadd.f32 %v2358_v43, %v2288_v46  ;;  %5323 = vmatmul.mubr.f32.vlgmr.msra.gmra.mxu0 %v2596_v47  ;;  %v4042_v47 = vld [vmem:[%s7044_s11 + $0x2] sm:$0x1] }
 0x879   :  { %v5205_v50 = vpop.f32.mrf.mxu1  ;;  %v5289_v51 = vpop.f32.mrf.mxu0  ;;  %5361 = vmatpush3.msra.mxu0 %v2717_v49  ;;  %5392 = vmatprep.mubr.msk.f32.mxu0 %vm5745_vm1, %v5744_v45 }
 0x87a   :  { %5362 = vmatprep.subr.mxu0 %v5744_v45  ;;  %v4043_v50 = vld [vmem:[%s7045_s12 + $0x2] sm:$0x1] }
 0x87b   :  { %v2433_v53 = vpop.f32.mrf.mxu1  ;;  %5363 = vmatpush3.msra.mxu0 %v2716_v52 }
 0x87c   :  { %5281 = vmatmul.mubr.f32.vlgmr.msra.gmra.mxu1 %v2433_v53  ;;  %5364 = vmatprep.subr.mxu0 %v5744_v45 }
 0x87d   :  { %v5247_v55 = vpop.f32.mrf.mxu1  ;;  %5326 = vmatpush3.msra.mxu1 %v2717_v49  ;;  %5365 = vmatpush3.msra.mxu0 %v2715_v54 }
 0x87e   :  { %5327 = vmatprep.subr.mxu1 %v5744_v45  ;;  %5366 = vmatprep.subr.mxu0 %v5744_v45 }
 0x87f   :  { %5328 = vmatpush3.msra.mxu1 %v2716_v52  ;;  %5367 = vmatpush3.msra.mxu0 %v2714_v56 }
 0x880   :  { %5329 = vmatprep.subr.mxu1 %v5744_v45  ;;  %5368 = vmatprep.subr.mxu0 %v5744_v45 }
 0x881   :  { %5330 = vmatpush3.msra.mxu1 %v2715_v54  ;;  %5369 = vmatpush3.msra.mxu0 %v2713_v57 }
 0x882   :  { %5331 = vmatprep.subr.mxu1 %v5744_v45  ;;  %5370 = vmatprep.subr.mxu0 %v5744_v45 }
 0x883   :  { %5332 = vmatpush3.msra.mxu1 %v2714_v56  ;;  %5371 = vmatpush3.msra.mxu0 %v2712_v58 }
 0x884   :  { %5333 = vmatprep.subr.mxu1 %v5744_v45  ;;  %5372 = vmatprep.subr.mxu0 %v5744_v45 }
 0x885   :  { %5334 = vmatpush3.msra.mxu1 %v2713_v57  ;;  %5373 = vmatpush3.msra.mxu0 %v2711_v59 }
 0x886   :  { %5335 = vmatprep.subr.mxu1 %v5744_v45  ;;  %5374 = vmatprep.subr.mxu0 %v5744_v45 }
 0x887   :  { %5336 = vmatpush3.msra.mxu1 %v2712_v58  ;;  %5357 = vmatprep.mubr.msk.f32.mxu1 %vm5745_vm1, %v5744_v45  ;;  %v2882_v58 = vld [vmem:[%s7041_s8] sm:$0xf] }
 0x888   :  { %5337 = vmatprep.subr.mxu1 %v5744_v45  ;;  %5375 = vmatpush3.msra.mxu0 %v2710_v60 }
 0x889   :  { %5338 = vmatpush3.msra.mxu1 %v2711_v59  ;;  %5376 = vmatprep.subr.mxu0 %v5744_v45  ;;  %v2972_v59 = vld [vmem:[#allocation5 + $0x78] sm:$0xff] }
 0x88a   :  { %5339 = vmatprep.subr.mxu1 %v5744_v45  ;;  %5377 = vmatpush3.msra.mxu0 %v2709_v61 }
 0x88b   :  { %5340 = vmatpush3.msra.mxu1 %v2710_v60  ;;  %5378 = vmatprep.subr.mxu0 %v5744_v45  ;;  %v2971_v60 = vld [vmem:[#allocation5 + $0x70] sm:$0xff] }
 0x88c   :  { %5341 = vmatprep.subr.mxu1 %v5744_v45  ;;  %5379 = vmatpush3.msra.mxu0 %v2708_v62 }
 0x88d   :  { %5342 = vmatpush3.msra.mxu1 %v2709_v61  ;;  %5380 = vmatprep.subr.mxu0 %v5744_v45  ;;  %v2970_v61 = vld [vmem:[#allocation5 + $0x68] sm:$0xff] }
 0x88e   :  { %5343 = vmatprep.subr.mxu1 %v5744_v45  ;;  %5381 = vmatpush3.msra.mxu0 %v2707_v63 }
 0x88f   :  { %5344 = vmatpush3.msra.mxu1 %v2708_v62  ;;  %5382 = vmatprep.subr.mxu0 %v5744_v45  ;;  %v2969_v62 = vld [vmem:[#allocation5 + $0x60] sm:$0xff] }
 0x890   :  { %5345 = vmatprep.subr.mxu1 %v5744_v45  ;;  %5383 = vmatpush3.msra.mxu0 %v2706_v8 }
 0x891   :  { %5346 = vmatpush3.msra.mxu1 %v2707_v63  ;;  %5384 = vmatprep.subr.mxu0 %v5744_v45  ;;  %v2968_v63 = vld [vmem:[#allocation5 + $0x58] sm:$0xff] }
 0x892   :  { %5347 = vmatprep.subr.mxu1 %v5744_v45  ;;  %5385 = vmatpush3.msra.mxu0 %v2705_v9 }
 0x893   :  { %5348 = vmatpush3.msra.mxu1 %v2706_v8  ;;  %5386 = vmatprep.subr.mxu0 %v5744_v45  ;;  %v2967_v8 = vld [vmem:[#allocation5 + $0x50] sm:$0xff] }
 0x894   :  { %5349 = vmatprep.subr.mxu1 %v5744_v45  ;;  %5387 = vmatpush3.msra.mxu0 %v2704_v10 }
 0x895   :  { %5350 = vmatpush3.msra.mxu1 %v2705_v9  ;;  %5388 = vmatprep.subr.mxu0 %v5744_v45  ;;  %v2966_v9 = vld [vmem:[#allocation5 + $0x48] sm:$0xff] }
 0x896   :  { %5351 = vmatprep.subr.mxu1 %v5744_v45  ;;  %5389 = vmatpush3.msra.mxu0 %v2703_v11 }
 0x897   :  { %5352 = vmatpush3.msra.mxu1 %v2704_v10  ;;  %5390 = vmatprep.subr.mxu0 %v5744_v45  ;;  %v2965_v10 = vld [vmem:[#allocation5 + $0x40] sm:$0xff] }
 0x898   :  { %5353 = vmatprep.subr.mxu1 %v5744_v45  ;;  %5391 = vmatpush3.msra.mxu0 %v2702_v0 }
 0x899   :  { %5354 = vmatpush3.msra.mxu1 %v2703_v11  ;;  %5405 = vmatprep.subr.mxu0 %v5744_v45  ;;  %v2964_v11 = vld [vmem:[#allocation5 + $0x38] sm:$0xff] }
 0x89a   :  { %5355 = vmatprep.subr.mxu1 %v5744_v45 }
 0x89b   :  { %5356 = vmatpush3.msra.mxu1 %v2702_v0  ;;  %v2963_v0 = vld [vmem:[#allocation5 + $0x30] sm:$0xff] }
 0x89c   :  { %5395 = vmatprep.subr.mxu1 %v5744_v45 }
 0x938   :  { %v2683_v1 = vpop.f32.mrf.mxu0 }
 0x93a   :  { %v5324_v2 = vpop.f32.mrf.mxu0 }
 0x93b   :  { %v2961_v2 = vld [vmem:[#allocation5 + $0x20] sm:$0xff] }
 0x93c   :  { %v2520_v4 = vpop.f32.mrf.mxu1 }
 0x93d   :  { %v2524_v5 = vadd.f32 %v2520_v4, %v6722_v48  ;;  %v2960_v4 = vld [vmem:[#allocation5 + $0x18] sm:$0xff] }
 0x93e   :  { %v5282_v6 = vpop.f32.mrf.mxu1 }
 0x93f   :  { %v6761_v7 = vadd.f32 %v2683_v1, %v2524_v5  ;;  %v2962_v1 = vld [vmem:[#allocation5 + $0x28] sm:$0xff]  ;;  %v2959_v5 = vld [vmem:[#allocation5 + $0x10] sm:$0xff] }
 0x940   :  { %v2958_v6 = vld [vmem:[#allocation5 + $0x8] sm:$0xff] }
 0x941   :  { %v2688_v12 = vrot.slane %v6761_v7, 4  ;;  %v2694_v15 = vmul.f32 %v6761_v7, %v6761_v7 }
 0x943   :  { %v2689_v16 = vadd.f32 %v2688_v12, %v6761_v7  ;;  %v2695_v17 = vrot.slane %v2694_v15, 4  ;;  %v3050_v12 = vld [vmem:[#allocation5 + $0x88] sm:$0xff] }
 0x945   :  { %v2690_v18 = vrot.slane %v2689_v16, 2  ;;  %v2696_v19 = vadd.f32 %v2695_v17, %v2694_v15  ;;  %v3049_v15 = vld [vmem:[#allocation5 + $0x80] sm:$0xff] }
 0x947   :  { %v2691_v20 = vadd.f32 %v2690_v18, %v2689_v16  ;;  %v2697_v21 = vrot.slane %v2696_v19, 2  ;;  %v3296_v16 = vld [vmem:[#allocation5 + $0x178] sm:$0xff]  ;;  %v3295_v18 = vld [vmem:[#allocation5 + $0x170] sm:$0xff] }
 0x949   :  { %v2692_v24 = vrot.slane %v2691_v20, 1  ;;  %v2698_v25 = vadd.f32 %v2697_v21, %v2696_v19  ;;  %v3294_v21 = vld [vmem:[#allocation5 + $0x168] sm:$0xff] }
 0x94b   :  { %v2693_v26 = vadd.f32 %v2692_v24, %v2691_v20  ;;  %v2699_v27 = vrot.slane %v2698_v25, 1 }
 0x94d   :  { %5358 = vmatmul.mubr.f32.vlgmr.msra.gmra.mxu1 %v2693_v26  ;;  %v2700_v28 = vadd.f32 %v2699_v27, %v2698_v25  ;;  %v4047_v25 = vld [vmem:[%s7041_s8 + $0x8] sm:$0xf]  ;;  %v3293_v26 = vld [vmem:[#allocation5 + $0x160] sm:$0xff]  ;;  %v3292_v27 = vld [vmem:[#allocation5 + $0x158] sm:$0xff] }
 0x94e   :  { %5397 = vmatprep.mubr.msk.f32.mxu1 %vm5745_vm1, %v5744_v45 }
 0x94f   :  { %5393 = vmatmul.mubr.f32.vlgmr.msra.gmra.mxu0 %v2700_v28  ;;  %v4049_v28 = vld [vmem:[%s7041_s8 + $0xc] sm:$0xf] }
 0x950   :  { %5437 = vmatprep.mubr.msk.f32.mxu0 %vm5745_vm1, %v5744_v45  ;;  %5406 = vmatpush3.msra.mxu0 %v3064_v22  ;;  %v3459_v22 = vld [vmem:[#allocation5 + $0x1f8] sm:$0xff] }
 0x951   :  { %5407 = vmatprep.subr.mxu0 %v5744_v45 }
 0x952   :  { %5408 = vmatpush3.msra.mxu0 %v3063_v13  ;;  %v3291_v13 = vld [vmem:[#allocation5 + $0x150] sm:$0xff] }
 0x953   :  { %5409 = vmatprep.subr.mxu0 %v5744_v45 }
 0x954   :  { %5410 = vmatpush3.msra.mxu0 %v3062_v14  ;;  %v3458_v14 = vld [vmem:[#allocation5 + $0x1f0] sm:$0xff] }
 0x955   :  { %5411 = vmatprep.subr.mxu0 %v5744_v45 }
 0x956   :  { %5412 = vmatpush3.msra.mxu0 %v3061_v23  ;;  %v3290_v23 = vld [vmem:[#allocation5 + $0x148] sm:$0xff] }
 0x957   :  { %5413 = vmatprep.subr.mxu0 %v5744_v45 }
 0x958   :  { %5414 = vmatpush3.msra.mxu0 %v3060_v29  ;;  %v3457_v29 = vld [vmem:[#allocation5 + $0x1e8] sm:$0xff] }
 0x959   :  { %5415 = vmatprep.subr.mxu0 %v5744_v45 }
 0x95a   :  { %5416 = vmatpush3.msra.mxu0 %v3059_v30  ;;  %v3289_v30 = vld [vmem:[#allocation5 + $0x140] sm:$0xff] }
 0x95b   :  { %5417 = vmatprep.subr.mxu0 %v5744_v45 }
 0x95c   :  { %5418 = vmatpush3.msra.mxu0 %v3058_v31  ;;  %v3456_v31 = vld [vmem:[#allocation5 + $0x1e0] sm:$0xff] }
 0x95d   :  { %5419 = vmatprep.subr.mxu0 %v5744_v45 }
 0x95e   :  { %5420 = vmatpush3.msra.mxu0 %v3057_v32  ;;  %v3288_v32 = vld [vmem:[#allocation5 + $0x138] sm:$0xff] }
 0x95f   :  { %5421 = vmatprep.subr.mxu0 %v5744_v45 }
 0x960   :  { %5422 = vmatpush3.msra.mxu0 %v3056_v33  ;;  %v3455_v33 = vld [vmem:[#allocation5 + $0x1d8] sm:$0xff] }
 0x961   :  { %5423 = vmatprep.subr.mxu0 %v5744_v45 }
 0x962   :  { %5424 = vmatpush3.msra.mxu0 %v3055_v34  ;;  %v3287_v34 = vld [vmem:[#allocation5 + $0x130] sm:$0xff] }
 0x963   :  { %5425 = vmatprep.subr.mxu0 %v5744_v45 }
 0x964   :  { %5426 = vmatpush3.msra.mxu0 %v3054_v35  ;;  %v3454_v35 = vld [vmem:[#allocation5 + $0x1d0] sm:$0xff] }
 0x965   :  { %5427 = vmatprep.subr.mxu0 %v5744_v45 }
 0x966   :  { %5428 = vmatpush3.msra.mxu0 %v3053_v36  ;;  %v3286_v36 = vld [vmem:[#allocation5 + $0x128] sm:$0xff] }
 0x967   :  { %5429 = vmatprep.subr.mxu0 %v5744_v45 }
 0x968   :  { %5430 = vmatpush3.msra.mxu0 %v3052_v37  ;;  %v3453_v37 = vld [vmem:[#allocation5 + $0x1c8] sm:$0xff] }
 0x969   :  { %5431 = vmatprep.subr.mxu0 %v5744_v45 }
 0x96a   :  { %5432 = vmatpush3.msra.mxu0 %v3051_v38  ;;  %v3452_v38 = vld [vmem:[#allocation5 + $0x1c0] sm:$0xff] }
 0x96b   :  { %5433 = vmatprep.subr.mxu0 %v5744_v45 }
 0x96c   :  { %5434 = vmatpush3.msra.mxu0 %v3050_v12 }
 0x96d   :  { %5435 = vmatprep.subr.mxu0 %v5744_v45 }
 0x96e   :  { %5436 = vmatpush3.msra.mxu0 %v3049_v15 }
 0x96f   :  { %5475 = vmatprep.subr.mxu0 %v5744_v45 }
 0xa0d   :  { %v2784_v39 = vpop.f32.mrf.mxu1 }
 0xa0e   :  { %v2858_v40 = vmul.f32 %v2784_v39, %v2784_v39 }
 0xa0f   :  { %v5359_v41 = vpop.f32.mrf.mxu1  ;;  %v2854_v42 = vpop.f32.mrf.mxu0 }
 0xa10   :  { %v2859_v43 = vsub.f32 %v2854_v42, %v2858_v40  ;;  %v3285_v40 = vld [vmem:[#allocation5 + $0x120] sm:$0xff]  ;;  %v3450_v41 = vld [vmem:[#allocation5 + $0x1b0] sm:$0xff]  ;;  %v3284_v42 = vld [vmem:[#allocation5 + $0x118] sm:$0xff] }
 0xa11   :  { %v5394_v44 = vpop.f32.mrf.mxu0 }
 0xa12   :  { %v2860_v46 = vadd.f32 1e-05, %v2859_v43  ;;  %v3449_v43 = vld [vmem:[#allocation5 + $0x1a8] sm:$0xff]  ;;  %v3283_v44 = vld [vmem:[#allocation5 + $0x110] sm:$0xff] }
 0xa14   :  { %5647 = vrsqrt.f32 %v2860_v46  ;;  %v3448_v46 = vld [vmem:[#allocation5 + $0x1a0] sm:$0xff] }
 0xa21   :  { %v5648_v48 = vpop.eup %5647 }
 0xa22   :  { %v2864_v49 = vmul.f32 %v5648_v48, %v4042_v47  ;;  %v3282_v47 = vld [vmem:[#allocation5 + $0x108] sm:$0xff]  ;;  %v3447_v48 = vld [vmem:[#allocation5 + $0x198] sm:$0xff] }
 0xa24   :  { %v2867_v51 = vmul.f32 %v2864_v49, %v2784_v39  ;;  %v2872_v52 = vrot.slane %v2864_v49, %v6319_v3  ;;  %v3451_v39 = vld [vmem:[#allocation5 + $0x1b8] sm:$0xff]  ;;  %v3281_v49 = vld [vmem:[#allocation5 + $0x100] sm:$0xff] }
 0xa26   :  { %v2868_v53 = vsub.f32 %v4043_v50, %v2867_v51  ;;  %v2873_v54 = vmul.f32 %v2872_v52, %v6761_v7  ;;  %v2957_v7 = vld [vmem:[#allocation5] sm:$0xff]  ;;  %v3446_v50 = vld [vmem:[#allocation5 + $0x190] sm:$0xff]  ;;  %v3445_v51 = vld [vmem:[#allocation5 + $0x188] sm:$0xff] }
 0xa27   :  { %v3444_v52 = vld [vmem:[#allocation5 + $0x180] sm:$0xff] }
 0xa28   :  { %v2878_v55 = vrot.slane %v2868_v53, %v6319_v3  ;;  %v4045_v3 = vld [vmem:[%s7041_s8 + $0x4] sm:$0xf] }
 0xa2a   :  { %v2880_v56 = vadd.f32 %v2878_v55, %v2873_v54 }
 0xa2c   :  { %v6794_v57 = vmax.f32 %v2880_v56, 0.0 }
 0xa2e   :  { %5396 = vmatpush3.msra.mxu1 %v6794_v57 }
 0xa2f   :  { %5398 = vmatmul.mubr.msk.f32.vlgmr.msra.gmra.mxu1 %vm2883_vm4, %v2882_v58  ;;  %5400 = vmatprep.subr.mxu1 %v5744_v45 }
 0xa30   :  { %5401 = vmatpush3.msra.mxu1 %v6794_v57  ;;  %5402 = vmatprep.mubr.msk.f32.mxu1 %vm5745_vm1, %v5744_v45 }
 0xa31   :  { %5440 = vmatprep.subr.mxu1 %v5744_v45 }
 0xa33   :  { %5403 = vmatmul.mubr.msk.f32.vlgmr.msra.gmra.mxu1 %vm2883_vm4, %v4045_v3 }
 0xa34   :  { %5441 = vmatpush3.msra.mxu1 %v2972_v59  ;;  %5472 = vmatprep.mubr.msk.f32.mxu1 %vm5745_vm1, %v5744_v45 }
 0xa35   :  { %5442 = vmatprep.subr.mxu1 %v5744_v45 }
 0xa36   :  { %5443 = vmatpush3.msra.mxu1 %v2971_v60 }
 0xa37   :  { %5444 = vmatprep.subr.mxu1 %v5744_v45 }
 0xa38   :  { %5445 = vmatpush3.msra.mxu1 %v2970_v61  ;;  %v4071_v61 = vld [vmem:[%s7046_s13 + $0xf8] sm:$0xff] }
 0xa39   :  { %5446 = vmatprep.subr.mxu1 %v5744_v45 }
 0xa3a   :  { %5447 = vmatpush3.msra.mxu1 %v2969_v62  ;;  %v4070_v62 = vld [vmem:[%s7046_s13 + $0xf0] sm:$0xff] }
 0xa3b   :  { %5448 = vmatprep.subr.mxu1 %v5744_v45 }
 0xa3c   :  { %5449 = vmatpush3.msra.mxu1 %v2968_v63  ;;  %v4069_v63 = vld [vmem:[%s7046_s13 + $0xe8] sm:$0xff] }
 0xa3d   :  { %5450 = vmatprep.subr.mxu1 %v5744_v45 }
 0xa3e   :  { %5451 = vmatpush3.msra.mxu1 %v2967_v8  ;;  %v4068_v8 = vld [vmem:[%s7046_s13 + $0xe0] sm:$0xff] }
 0xa3f   :  { %5452 = vmatprep.subr.mxu1 %v5744_v45 }
 0xa40   :  { %5453 = vmatpush3.msra.mxu1 %v2966_v9  ;;  %v4067_v9 = vld [vmem:[%s7046_s13 + $0xd8] sm:$0xff] }
 0xa41   :  { %5454 = vmatprep.subr.mxu1 %v5744_v45 }
 0xa42   :  { %5455 = vmatpush3.msra.mxu1 %v2965_v10  ;;  %v4066_v10 = vld [vmem:[%s7046_s13 + $0xd0] sm:$0xff] }
 0xa43   :  { %5456 = vmatprep.subr.mxu1 %v5744_v45 }
 0xa44   :  { %5457 = vmatpush3.msra.mxu1 %v2964_v11  ;;  %v4065_v11 = vld [vmem:[%s7046_s13 + $0xc8] sm:$0xff] }
 0xa45   :  { %5458 = vmatprep.subr.mxu1 %v5744_v45 }
 0xa46   :  { %5459 = vmatpush3.msra.mxu1 %v2963_v0  ;;  %v4064_v0 = vld [vmem:[%s7046_s13 + $0xc0] sm:$0xff] }
 0xa47   :  { %5460 = vmatprep.subr.mxu1 %v5744_v45 }
 0xa48   :  { %5461 = vmatpush3.msra.mxu1 %v2962_v1  ;;  %v4063_v1 = vld [vmem:[%s7046_s13 + $0xb8] sm:$0xff] }
 0xa49   :  { %5462 = vmatprep.subr.mxu1 %v5744_v45 }
 0xa4a   :  { %5463 = vmatpush3.msra.mxu1 %v2961_v2  ;;  %v4062_v2 = vld [vmem:[%s7046_s13 + $0xb0] sm:$0xff] }
 0xa4b   :  { %5464 = vmatprep.subr.mxu1 %v5744_v45 }
 0xa4c   :  { %5465 = vmatpush3.msra.mxu1 %v2960_v4  ;;  %v4061_v4 = vld [vmem:[%s7046_s13 + $0xa8] sm:$0xff] }
 0xa4d   :  { %5466 = vmatprep.subr.mxu1 %v5744_v45 }
 0xa4e   :  { %5467 = vmatpush3.msra.mxu1 %v2959_v5  ;;  %v4060_v5 = vld [vmem:[%s7046_s13 + $0xa0] sm:$0xff] }
 0xa4f   :  { %5468 = vmatprep.subr.mxu1 %v5744_v45 }
 0xa50   :  { %5469 = vmatpush3.msra.mxu1 %v2958_v6  ;;  %v4059_v6 = vld [vmem:[%s7046_s13 + $0x98] sm:$0xff] }
 0xa51   :  { %5470 = vmatprep.subr.mxu1 %v5744_v45 }
 0xa52   :  { %5471 = vmatpush3.msra.mxu1 %v2957_v7 }
 0xa53   :  { %5480 = vmatprep.subr.mxu1 %v5744_v45 }
 0xaef   :  { %v2953_v17 = vpop.f32.mrf.mxu1 }
 0xaf0   :  { %5473 = vmatmul.mubr.f32.vlgmr.msra.gmra.mxu1 %v2953_v17 }
 0xaf1   :  { %v5399_v19 = vpop.f32.mrf.mxu1  ;;  %5481 = vmatpush3.msra.mxu1 %v3296_v16  ;;  %5512 = vmatprep.mubr.msk.f32.mxu1 %vm5745_vm1, %v5744_v45 }
 0xaf2   :  { %5482 = vmatprep.subr.mxu1 %v5744_v45 }
 0xaf3   :  { %v3044_v20 = vpop.f32.mrf.mxu1  ;;  %5483 = vmatpush3.msra.mxu1 %v3295_v18  ;;  %v3531_v18 = vld [vmem:[%s7042_s9] sm:$0x3] }
 0xaf4   :  { %5438 = vmatmul.mubr.f32.vlgmr.msra.gmra.mxu0 %v3044_v20  ;;  %5484 = vmatprep.subr.mxu1 %v5744_v45  ;;  %v4053_v20 = vld [vmem:[%s7042_s9 + $0x2] sm:$0x3] }
 0xaf5   :  { %5476 = vmatpush3.msra.mxu0 %v6794_v57  ;;  %v5404_v24 = vpop.f32.mrf.mxu1  ;;  %5477 = vmatprep.mubr.msk.f32.mxu0 %vm5745_vm1, %v5744_v45 }
 0xaf6   :  { %5515 = vmatprep.subr.mxu0 %v5744_v45  ;;  %5485 = vmatpush3.msra.mxu1 %v3294_v21  ;;  %v3625_v21 = vld [vmem:[%s7046_s13 + $0x78] sm:$0xff]  ;;  %v3624_v24 = vld [vmem:[%s7046_s13 + $0x70] sm:$0xff] }
 0xaf7   :  { %5486 = vmatprep.subr.mxu1 %v5744_v45 }
 0xaf8   :  { %5478 = vmatmul.mubr.msk.f32.vlgmr.msra.gmra.mxu0 %vm2883_vm4, %v4047_v25  ;;  %5487 = vmatpush3.msra.mxu1 %v3293_v26  ;;  %v3623_v25 = vld [vmem:[%s7046_s13 + $0x68] sm:$0xff]  ;;  %v3622_v26 = vld [vmem:[%s7046_s13 + $0x60] sm:$0xff] }
 0xaf9   :  { %5516 = vmatpush3.msra.mxu0 %v6794_v57  ;;  %5517 = vmatprep.mubr.msk.f32.mxu0 %vm5745_vm1, %v5744_v45 }
 0xafa   :  { %5520 = vmatprep.subr.mxu0 %v5744_v45  ;;  %5488 = vmatprep.subr.mxu1 %v5744_v45 }
 0xafb   :  { %5489 = vmatpush3.msra.mxu1 %v3292_v27  ;;  %v3621_v27 = vld [vmem:[%s7046_s13 + $0x58] sm:$0xff] }
 0xafc   :  { %5518 = vmatmul.mubr.msk.f32.vlgmr.msra.gmra.mxu0 %vm2883_vm4, %v4049_v28  ;;  %5490 = vmatprep.subr.mxu1 %v5744_v45  ;;  %v3620_v28 = vld [vmem:[%s7046_s13 + $0x50] sm:$0xff] }
 0xafd   :  { %5521 = vmatpush3.msra.mxu0 %v3459_v22  ;;  %5491 = vmatpush3.msra.mxu1 %v3291_v13  ;;  %v3619_v22 = vld [vmem:[%s7046_s13 + $0x48] sm:$0xff]  ;;  %v3618_v13 = vld [vmem:[%s7046_s13 + $0x40] sm:$0xff] }
 0xafe   :  { %5522 = vmatprep.subr.mxu0 %v5744_v45  ;;  %5492 = vmatprep.subr.mxu1 %v5744_v45 }
 0xaff   :  { %5523 = vmatpush3.msra.mxu0 %v3458_v14  ;;  %5493 = vmatpush3.msra.mxu1 %v3290_v23  ;;  %v3617_v14 = vld [vmem:[%s7046_s13 + $0x38] sm:$0xff]  ;;  %v3616_v23 = vld [vmem:[%s7046_s13 + $0x30] sm:$0xff] }
 0xb00   :  { %5524 = vmatprep.subr.mxu0 %v5744_v45  ;;  %5494 = vmatprep.subr.mxu1 %v5744_v45 }
 0xb01   :  { %5525 = vmatpush3.msra.mxu0 %v3457_v29  ;;  %5495 = vmatpush3.msra.mxu1 %v3289_v30  ;;  %v3615_v29 = vld [vmem:[%s7046_s13 + $0x28] sm:$0xff]  ;;  %v3614_v30 = vld [vmem:[%s7046_s13 + $0x20] sm:$0xff] }
 0xb02   :  { %5526 = vmatprep.subr.mxu0 %v5744_v45  ;;  %5496 = vmatprep.subr.mxu1 %v5744_v45 }
 0xb03   :  { %5527 = vmatpush3.msra.mxu0 %v3456_v31  ;;  %5497 = vmatpush3.msra.mxu1 %v3288_v32  ;;  %v3613_v31 = vld [vmem:[%s7046_s13 + $0x18] sm:$0xff]  ;;  %v3612_v32 = vld [vmem:[%s7046_s13 + $0x10] sm:$0xff] }
 0xb04   :  { %5528 = vmatprep.subr.mxu0 %v5744_v45  ;;  %5498 = vmatprep.subr.mxu1 %v5744_v45 }
 0xb05   :  { %5529 = vmatpush3.msra.mxu0 %v3455_v33  ;;  %5499 = vmatpush3.msra.mxu1 %v3287_v34  ;;  %v3611_v33 = vld [vmem:[%s7046_s13 + $0x8] sm:$0xff]  ;;  %v4058_v34 = vld [vmem:[%s7046_s13 + $0x90] sm:$0xff] }
 0xb06   :  { %5530 = vmatprep.subr.mxu0 %v5744_v45  ;;  %5500 = vmatprep.subr.mxu1 %v5744_v45 }
 0xb07   :  { %5531 = vmatpush3.msra.mxu0 %v3454_v35  ;;  %5501 = vmatpush3.msra.mxu1 %v3286_v36  ;;  %v3610_v35 = vld [vmem:[%s7046_s13] sm:$0xff]  ;;  %v4057_v36 = vld [vmem:[%s7046_s13 + $0x88] sm:$0xff] }
 0xb08   :  { %5532 = vmatprep.subr.mxu0 %v5744_v45  ;;  %5502 = vmatprep.subr.mxu1 %v5744_v45 }
 0xb09   :  { %5533 = vmatpush3.msra.mxu0 %v3453_v37  ;;  %5552 = vmatprep.mubr.msk.f32.mxu0 %vm5745_vm1, %v5744_v45  ;;  %v4056_v37 = vld [vmem:[%s7046_s13 + $0x80] sm:$0xff]  ;;  %s5746_s13 = smov [#allocation8]  }
 0xb0a   :  { %5534 = vmatprep.subr.mxu0 %v5744_v45  ;;  %5503 = vmatpush3.msra.mxu1 %v3285_v40  ;;  %s3885_s26 = sshll.u32 %s5746_s13, 4  ;;  %s3886_s26 = int_to_ptr.vmem [resolvable:$true] %s3885_s26 }
 0xb0b   :  { %5535 = vmatpush3.msra.mxu0 %v3452_v38  ;;  %5504 = vmatprep.subr.mxu1 %v5744_v45  ;;  %p5718_p2 = scmp.lt.s32.totalorder %s3886_s26, %s3886_s26 }
 0xb0c   :  { %5536 = vmatprep.subr.mxu0 %v5744_v45  ;;  %5505 = vmatpush3.msra.mxu1 %v3284_v42 }
 0xb0d   :  { %5537 = vmatpush3.msra.mxu0 %v3451_v39  ;;  %5506 = vmatprep.subr.mxu1 %v5744_v45 }
 0xb0e   :  { %5538 = vmatprep.subr.mxu0 %v5744_v45  ;;  %5507 = vmatpush3.msra.mxu1 %v3283_v44 }
 0xb0f   :  { %5539 = vmatpush3.msra.mxu0 %v3450_v41  ;;  %5508 = vmatprep.subr.mxu1 %v5744_v45 }
 0xb10   :  { %5540 = vmatprep.subr.mxu0 %v5744_v45  ;;  %5509 = vmatpush3.msra.mxu1 %v3282_v47 }
 0xb11   :  { %5541 = vmatpush3.msra.mxu0 %v3449_v43  ;;  %5510 = vmatprep.subr.mxu1 %v5744_v45 }
 0xb12   :  { %5542 = vmatprep.subr.mxu0 %v5744_v45  ;;  %5511 = vmatpush3.msra.mxu1 %v3281_v49 }
 0xb13   :  { %5543 = vmatpush3.msra.mxu0 %v3448_v46  ;;  %5555 = vmatprep.subr.mxu1 %v5744_v45  ;;  %v4072_v46 = vld [vmem:[%s7047_s14] ss:$0 sm:$0xff]  ;;  %s5713_s14 = scalar_lea.vmem %s3886_s26, 32 }
 0xb14   :  { %5544 = vmatprep.subr.mxu0 %v5744_v45  ;;  %p5714_p1 = scmp.ne.s32.totalorder %s3886_s26, %s5713_s14  ;;  %p5719_p3 = scmp.lt.s32.totalorder %s5713_s14, %s5713_s14 }
 0xb15   :  { %5545 = vmatpush3.msra.mxu0 %v3447_v48 }
 0xb16   :  { %5546 = vmatprep.subr.mxu0 %v5744_v45  ;;  %p5720_p4 = por %p5719_p3, %p5718_p2 }
 0xb17   :  { %5547 = vmatpush3.msra.mxu0 %v3446_v50 }
 0xb18   :  { %5548 = vmatprep.subr.mxu0 %v5744_v45  ;;  %p5721_p5 = pnand %p5720_p4, %p5714_p1 }
 0xb19   :  { %5549 = vmatpush3.msra.mxu0 %v3445_v51 }
 0xb1a   :  { %5550 = vmatprep.subr.mxu0 %v5744_v45 }
 0xb1b   :  { %5551 = vmatpush3.msra.mxu0 %v3444_v52 }
 0xb1c   :  { %5565 = vmatprep.subr.mxu0 %v5744_v45 }
 0xbb0   :  { %v3201_v53 = vpop.f32.mrf.mxu1 }
 0xbb2   :  { %v5474_v54 = vpop.f32.mrf.mxu1 }
 0xbb4   :  { %v3131_v55 = vpop.f32.mrf.mxu0 }
 0xbb5   :  { %v3202_v56 = vadd.f32 %v3201_v53, %v3131_v55 }
 0xbb6   :  { %v5439_v57 = vpop.f32.mrf.mxu0 }
 0xbb8   :  { %v3276_v58 = vpop.f32.mrf.mxu0 }
 0xbb9   :  { %5513 = vmatmul.mubr.f32.vlgmr.msra.gmra.mxu1 %v3276_v58 }
 0xbba   :  { %v5479_v3 = vpop.f32.mrf.mxu0  ;;  %5557 = vmatprep.mubr.msk.f32.mxu1 %vm5745_vm1, %v5744_v45 }
 0xbbc   :  { %v3439_v59 = vpop.f32.mrf.mxu0 }
 0xbbd   :  { %5553 = vmatmul.mubr.f32.vlgmr.msra.gmra.mxu0 %v3439_v59 }
 0xbbe   :  { %v5519_v60 = vpop.f32.mrf.mxu0  ;;  %5597 = vmatprep.mubr.msk.f32.mxu0 %vm5745_vm1, %v5744_v45  ;;  %5566 = vmatpush3.msra.mxu0 %v4071_v61 }
 0xbbf   :  { %5567 = vmatprep.subr.mxu0 %v5744_v45 }
 0xbc0   :  { %5568 = vmatpush3.msra.mxu0 %v4070_v62 }
 0xbc1   :  { %5569 = vmatprep.subr.mxu0 %v5744_v45 }
 0xbc2   :  { %5570 = vmatpush3.msra.mxu0 %v4069_v63 }
 0xbc3   :  { %5571 = vmatprep.subr.mxu0 %v5744_v45 }
 0xbc4   :  { %5572 = vmatpush3.msra.mxu0 %v4068_v8 }
 0xbc5   :  { %5573 = vmatprep.subr.mxu0 %v5744_v45 }
 0xbc6   :  { %5574 = vmatpush3.msra.mxu0 %v4067_v9 }
 0xbc7   :  { %5575 = vmatprep.subr.mxu0 %v5744_v45 }
 0xbc8   :  { %5576 = vmatpush3.msra.mxu0 %v4066_v10 }
 0xbc9   :  { %5577 = vmatprep.subr.mxu0 %v5744_v45 }
 0xbca   :  { %5578 = vmatpush3.msra.mxu0 %v4065_v11 }
 0xbcb   :  { %5579 = vmatprep.subr.mxu0 %v5744_v45 }
 0xbcc   :  { %5580 = vmatpush3.msra.mxu0 %v4064_v0 }
 0xbcd   :  { %5581 = vmatprep.subr.mxu0 %v5744_v45 }
 0xbce   :  { %5582 = vmatpush3.msra.mxu0 %v4063_v1 }
 0xbcf   :  { %5583 = vmatprep.subr.mxu0 %v5744_v45 }
 0xbd0   :  { %5584 = vmatpush3.msra.mxu0 %v4062_v2 }
 0xbd1   :  { %5585 = vmatprep.subr.mxu0 %v5744_v45 }
 0xbd2   :  { %5586 = vmatpush3.msra.mxu0 %v4061_v4 }
 0xbd3   :  { %5587 = vmatprep.subr.mxu0 %v5744_v45 }
 0xbd4   :  { %5588 = vmatpush3.msra.mxu0 %v4060_v5 }
 0xbd5   :  { %5589 = vmatprep.subr.mxu0 %v5744_v45 }
 0xbd6   :  { %5590 = vmatpush3.msra.mxu0 %v4059_v6 }
 0xbd7   :  { %5591 = vmatprep.subr.mxu0 %v5744_v45 }
 0xbd8   :  { %5592 = vmatpush3.msra.mxu0 %v4058_v34 }
 0xbd9   :  { %5593 = vmatprep.subr.mxu0 %v5744_v45 }
 0xbda   :  { %5594 = vmatpush3.msra.mxu0 %v4057_v36 }
 0xbdb   :  { %5595 = vmatprep.subr.mxu0 %v5744_v45 }
 0xbdc   :  { %5596 = vmatpush3.msra.mxu0 %v4056_v37 }
 0xc79   :  { %v3363_v7 = vpop.f32.mrf.mxu1 }
 0xc7a   :  { %v3367_v15 = vadd.f32 %v3363_v7, %v3202_v56 }
 0xc7b   :  { %v5514_v12 = vpop.f32.mrf.mxu1 }
 0xc7d   :  { %v3526_v16 = vpop.f32.mrf.mxu0 }
 0xc7e   :  { %v3530_v17 = vadd.f32 %v3526_v16, %v3367_v15 }
 0xc7f   :  { %v5554_v19 = vpop.f32.mrf.mxu0 }
 0xc80   :  { %5556 = vmatpush3.msk.msra.mxu1 %vm3536_vm5, %v3530_v17 }
 0xc81   :  { %5558 = vmatmul.mubr.msk.f32.vlgmr.msra.gmra.mxu1 %vm3532_vm6, %v3531_v18  ;;  %5560 = vmatprep.subr.mxu1 %v5744_v45 }
 0xc82   :  { %5561 = vmatpush3.msk.msra.mxu1 %vm3536_vm5, %v3530_v17  ;;  %5562 = vmatprep.mubr.msk.f32.mxu1 %vm5745_vm1, %v5744_v45 }
 0xc83   :  { %5600 = vmatprep.subr.mxu1 %v5744_v45 }
 0xc85   :  { %5563 = vmatmul.mubr.msk.f32.vlgmr.msra.gmra.mxu1 %vm3532_vm6, %v4053_v20 }
 0xc86   :  { %5601 = vmatpush3.msra.mxu1 %v3625_v21  ;;  %5632 = vmatprep.mubr.msk.f32.mxu1 %vm5745_vm1, %v5744_v45 }
 0xc87   :  { %5602 = vmatprep.subr.mxu1 %v5744_v45 }
 0xc88   :  { %5603 = vmatpush3.msra.mxu1 %v3624_v24 }
 0xc89   :  { %5604 = vmatprep.subr.mxu1 %v5744_v45 }
 0xc8a   :  { %5605 = vmatpush3.msra.mxu1 %v3623_v25 }
 0xc8b   :  { %5606 = vmatprep.subr.mxu1 %v5744_v45 }
 0xc8c   :  { %5607 = vmatpush3.msra.mxu1 %v3622_v26 }
 0xc8d   :  { %5608 = vmatprep.subr.mxu1 %v5744_v45 }
 0xc8e   :  { %5609 = vmatpush3.msra.mxu1 %v3621_v27 }
 0xc8f   :  { %5610 = vmatprep.subr.mxu1 %v5744_v45 }
 0xc90   :  { %5611 = vmatpush3.msra.mxu1 %v3620_v28 }
 0xc91   :  { %5612 = vmatprep.subr.mxu1 %v5744_v45 }
 0xc92   :  { %5613 = vmatpush3.msra.mxu1 %v3619_v22 }
 0xc93   :  { %5614 = vmatprep.subr.mxu1 %v5744_v45 }
 0xc94   :  { %5615 = vmatpush3.msra.mxu1 %v3618_v13 }
 0xc95   :  { %5616 = vmatprep.subr.mxu1 %v5744_v45 }
 0xc96   :  { %5617 = vmatpush3.msra.mxu1 %v3617_v14 }
 0xc97   :  { %5618 = vmatprep.subr.mxu1 %v5744_v45 }
 0xc98   :  { %5619 = vmatpush3.msra.mxu1 %v3616_v23 }
 0xc99   :  { %5620 = vmatprep.subr.mxu1 %v5744_v45 }
 0xc9a   :  { %5621 = vmatpush3.msra.mxu1 %v3615_v29 }
 0xc9b   :  { %5622 = vmatprep.subr.mxu1 %v5744_v45 }
 0xc9c   :  { %5623 = vmatpush3.msra.mxu1 %v3614_v30 }
 0xc9d   :  { %5624 = vmatprep.subr.mxu1 %v5744_v45 }
 0xc9e   :  { %5625 = vmatpush3.msra.mxu1 %v3613_v31 }
 0xc9f   :  { %5626 = vmatprep.subr.mxu1 %v5744_v45 }
 0xca0   :  { %5627 = vmatpush3.msra.mxu1 %v3612_v32 }
 0xca1   :  { %5628 = vmatprep.subr.mxu1 %v5744_v45 }
 0xca2   :  { %5629 = vmatpush3.msra.mxu1 %v3611_v33 }
 0xca3   :  { %5630 = vmatprep.subr.mxu1 %v5744_v45 }
 0xca4   :  { %5631 = vmatpush3.msra.mxu1 %v3610_v35 }
 0xd41   :  { %v3606_v38 = vpop.f32.mrf.mxu1 }
 0xd42   :  { %5633 = vmatmul.mubr.f32.vlgmr.msra.gmra.mxu1 %v3606_v38 }
 0xd43   :  { %v5559_v39 = vpop.f32.mrf.mxu1 }
 0xd45   :  { %v3697_v40 = vpop.f32.mrf.mxu1 }
 0xd46   :  { %5598 = vmatmul.mubr.f32.vlgmr.msra.gmra.mxu0 %v3697_v40 }
 0xd47   :  { %v5564_v41 = vpop.f32.mrf.mxu1 }
 0xe02   :  { %v3854_v42 = vpop.f32.mrf.mxu1 }
 0xe04   :  { %v5634_v43 = vpop.f32.mrf.mxu1 }
 0xe06   :  { %v3784_v44 = vpop.f32.mrf.mxu0 }
 0xe07   :  { %v3855_v47 = vadd.f32 %v3854_v42, %v3784_v44 }
 0xe08   :  { %v5599_v45 = vpop.f32.mrf.mxu0 }
 0xe09   :  { %v3865_v48 = vadd.f32 %v4072_v46, %v3855_v47 }
 0xe0b   :  { %v3867_v49 = vsel %vm3866_vm7, %v3865_v48, -inf }
 0xe0c   :  { %3868 = vmax.xlane.f32.xlu0 %v3867_v49 }
 0xe95   :  { %v3869_v50 = vpop.xlane.xlu0 %3868 }
 0xe96   :  { %v3870_v51 = vsub.f32 %v3865_v48, %v3869_v50 }
 0xe98   :  { %v3871_v52 = vmul.f32 1.442695, %v3870_v51 }
 0xe9a   :  { %5649 = vpow2.f32 %v3871_v52 }
 0xea7   :  { %v5650_v53 = vpop.eup %5649 }
 0xea8   :  { %v3873_v54 = vsel %vm3866_vm7, %v5650_v53, 0.0 }
 0xea9   :  { %3874 = vadd.xlane.f32.xlu0 %v3873_v54 }
 0xf32   :  { %v3875_v55 = vpop.xlane.xlu0 %3874 }
 0xf33   :  { %5651 = vrcp.f32 %v3875_v55 }
 0xf40   :  { %v5652_v56 = vpop.eup %5651 }
 0xf41   :  { %v3877_v57 = vmul.f32 %v5652_v56, %v5650_v53 }
 0xf43   :  { %3878 = vst.msk [vmem:[#allocation8] sm:$0x3] %vm3866_vm7, %v3877_v57 }
 0xf44   :  { %5724 = shalt.err (!%p5721_p5)
}
 0xf45   :  { %3888 = dma.vmem_to_hbm [thread:$0]  %s3886_s26, 32, %s7048_s15, [#allocation4]  }
 0xf46   :  { %5737 = dma.done.wait [#allocation4], 32  }
 0xf47   :  { %5738 = vsyncadd [#allocation4], 4294967264 }
 0xf48   :  { %3892 = vsyncpa [#allocation3], 1 }
 0xf49   :  { %3893 = vsyncpa [#allocation6], 1 }
 0xf4a   :  { %3894 = vsyncpa [#allocation4], 1 }

</bundles_post_ra>
